<compile_context>
chip_gen: v7x
topology: tpu7x:2x2x1
jax: 0.10.0
libtpu: 0.0.40
codegen_flags: <defaults>
</compile_context>

<pallas_src>
import jax
import jax.numpy as jnp
import numpy as np
from jax.experimental import pallas as pl
from jax.experimental.pallas import tpu as pltpu

K_IN = 256 * 256       # 65536 : linear in_features
HID = 256              # linear out_features
NAV = 5                # navigation_layer out_features
INT = 32 * 32          # 1024  : interaction_layer out_features
NSPLIT = 2             # split HID into 2 halves (maps to the 2 TCs on v7x)
NH = HID // NSPLIT     # 128
TK = 16384             # K tile: bf16 W1 tile = (16384, 128) = 4 MiB


# ----------------------------- Pallas kernel ------------------------------ #
def head_kernel(x_ref, w1_ref, b1_ref, wn_ref, wi_ref,
                nav_ref, itr_ref, acc_ref):
    # grid = (n: HID half [parallel], k: K tile [arbitrary / reduction])
    k = pl.program_id(1)

    @pl.when(k == 0)
    def _():
        acc_ref[...] = jnp.zeros_like(acc_ref)

    # x_cat is VMEM-resident; slice the current K chunk (lane-dim, aligned).
    off = pl.multiple_of(k * TK, TK)
    x_blk = x_ref[:, pl.ds(off, TK)]                         # (2, TK) bf16
    acc_ref[...] += jnp.dot(x_blk, w1_ref[...],              # (2, NH) f32 acc
                            preferred_element_type=jnp.float32)

    @pl.when(k == pl.num_programs(1) - 1)
    def _():
        # h_half = relu(x @ W1^T[:, half] + b1[half])        -> (2, 128) f32
        h = jnp.maximum(acc_ref[...] + b1_ref[...], 0.0)
        # Partial logits for this half; cross-half sum + bias + log_softmax
        # happen in plain JAX (only 2x(5+1024) elements).
        nav_ref[0] = jnp.dot(h, wn_ref[...], preferred_element_type=jnp.float32)
        itr_ref[0] = jnp.dot(h, wi_ref[...], preferred_element_type=jnp.float32)


def fused_head(x_cat_bf16, w1t_bf16, b1, wnt, wit):
    """x_cat_bf16: (2, 65536) bf16 -> partial (nav (2,2,5), itr (2,2,1024)) f32."""
    grid = (NSPLIT, K_IN // TK)
    return pl.pallas_call(
        head_kernel,
        out_shape=(jax.ShapeDtypeStruct((NSPLIT, 2, NAV), jnp.float32),
                   jax.ShapeDtypeStruct((NSPLIT, 2, INT), jnp.float32)),
        grid_spec=pltpu.PrefetchScalarGridSpec(
            num_scalar_prefetch=0,
            grid=grid,
            in_specs=[
                pl.BlockSpec((2, K_IN), lambda n, k: (0, 0)),    # x_cat, resident
                pl.BlockSpec((TK, NH), lambda n, k: (k, n)),     # W1^T tile (bf16)
                pl.BlockSpec((1, NH), lambda n, k: (0, n)),      # b1 half
                pl.BlockSpec((NH, NAV), lambda n, k: (n, 0)),    # Wn^T half
                pl.BlockSpec((NH, INT), lambda n, k: (n, 0)),    # Wi^T half
            ],
            out_specs=[
                pl.BlockSpec((1, 2, NAV), lambda n, k: (n, 0, 0)),
                pl.BlockSpec((1, 2, INT), lambda n, k: (n, 0, 0)),
            ],
            scratch_shapes=[pltpu.VMEM((2, NH), jnp.float32)],
        ),
        compiler_params=pltpu.CompilerParams(
            dimension_semantics=("parallel", "arbitrary")),
    )(x_cat_bf16, w1t_bf16, b1, wnt, wit)


# ------------------------------ glue / module ------------------------------ #
def init_linear(key, fan_in, fan_out):
    """nn.Linear-like init: uniform weights, small nonzero biases (exercises bias path)."""
    kw, kb = jax.random.split(key)
    w_bound = np.sqrt(6.0 / (fan_in + fan_out))
    w = jax.random.uniform(kw, (fan_out, fan_in), jnp.float32,
                           minval=-w_bound, maxval=w_bound)
    b = jax.random.uniform(kb, (1, fan_out), jnp.float32,
                           minval=-w_bound, maxval=w_bound)
    return w, b


def make_params(key):
    k1, k2, k3 = jax.random.split(key, 3)
    w1, b1 = init_linear(k1, K_IN, HID)     # linear            (256, 65536)
    wn, bn = init_linear(k2, HID, NAV)      # navigation_layer  (5, 256)
    wi, bi = init_linear(k3, HID, INT)      # interaction_layer (1024, 256)
    w1t = jnp.asarray(w1.T)                 # (K, HID) row-major, stride-1 DMA
    return dict(
        w1t=w1t,                              # f32 copy (reference only)
        w1t_bf16=w1t.astype(jnp.bfloat16),    # kernel weight stream (half the bytes)
        b1=b1, wnt=wn.T, bn=bn, wit=wi.T, bi=bi)


def image_module(image):
    # stub image tower: NCHW (1, 64, 32, 32) -> (1, 65536) embedding
    return image.reshape(1, -1)


def text_module(instructions):
    # stub text tower: (1, 8) tokens -> (text_emb (1,256), text_emb_raw (1,65536))
    base = jnp.tanh(instructions.astype(jnp.float32) * 0.1)          # (1, 8)
    text_emb_raw = jnp.tile(base, (1, K_IN // base.shape[1]))        # (1, 65536)
    text_emb = text_emb_raw[:, :HID]
    return text_emb, text_emb_raw


def forward(params, image, instructions, tx, mode, model_state):
    image_emb = image_module(image)
    if model_state is None:
        text_emb, text_emb_raw = text_module(instructions)
        model_state = (text_emb, text_emb_raw)
    else:
        text_emb, text_emb_raw = model_state

    x_cat = jnp.concatenate(
        [text_emb_raw.reshape(1, -1), image_emb.reshape(1, -1)], axis=0)  # (2, 65536)
    x_cat_bf16 = x_cat.astype(jnp.bfloat16)

    nav_p, itr_p = fused_head(x_cat_bf16, params["w1t_bf16"], params["b1"],
                              params["wnt"], params["wit"])

    # Tiny epilogue in plain JAX (2x5 + 2x1024 elements): sum the per-half
    # partial logits, add biases, flattened log_softmax, nav[5] * interaction.
    nav = nav_p.sum(axis=0) + params["bn"]                 # (2, 5)
    itr = itr_p.sum(axis=0) + params["bi"]                 # (2, 1024)
    nav_lp = jax.nn.log_softmax(nav.reshape(-1))           # (10,)
    itr_lp = jax.nn.log_softmax(itr.reshape(-1))           # (2048,)

    # x = cat([navigation_log_prob[0:4], navigation_log_prob[5] * interaction_log_prob])
    out = jnp.concatenate([nav_lp[0:4], nav_lp[5] * itr_lp])   # (2052,)
    return out, model_state, image_emb, out


# ------------------------------- reference -------------------------------- #
def forward_ref(params, image, instructions):
    image_emb = image_module(image)
    _, text_emb_raw = text_module(instructions)
    x = jnp.concatenate([text_emb_raw.reshape(1, -1),
                         image_emb.reshape(1, -1)], axis=0)
    h = jax.nn.relu(x @ params["w1t"] + params["b1"])
    nav = (h @ params["wnt"] + params["bn"]).reshape(-1)
    itr = (h @ params["wit"] + params["bi"]).reshape(-1)
    nav_lp = jax.nn.log_softmax(nav)
    itr_lp = jax.nn.log_softmax(itr)
    return jnp.concatenate([nav_lp[0:4], nav_lp[5] * itr_lp])


if __name__ == "__main__":
    key = jax.random.PRNGKey(0)
    kp, ki, kt = jax.random.split(key, 3)

    params = make_params(kp)
    image = jax.random.normal(ki, (1, 64, 32, 32), jnp.float32)   # NCHW
    instructions = jax.random.randint(kt, (1, 8), 0, 10)
    tx, mode, model_state = 0, None, None

    out, model_state, image_emb, out2 = forward(
        params, image, instructions, tx, mode, model_state)
    jax.block_until_ready(out)

    ref = forward_ref(params, image, instructions)
    np.testing.assert_allclose(np.asarray(out), np.asarray(ref),
                               rtol=5e-2, atol=5e-2)
    assert out.shape == (2052,)
    print("KERNEL_OK")
</pallas_src>

<mosaic_0001>
module attributes {stable_mosaic.version = 11 : i64} {
  func.func @head_kernel(%arg0: i32, %arg1: i32, %arg2: memref<2x65536xbf16, #tpu.memory_space<vmem>>, %arg3: memref<16384x128xbf16, #tpu.memory_space<vmem>>, %arg4: memref<1x128xf32, #tpu.memory_space<vmem>>, %arg5: memref<128x5xf32, #tpu.memory_space<vmem>>, %arg6: memref<128x1024xf32, #tpu.memory_space<vmem>>, %arg7: memref<1x2x5xf32, #tpu.memory_space<vmem>>, %arg8: memref<1x2x1024xf32, #tpu.memory_space<vmem>>, %arg9: memref<2x128xf32, #tpu.memory_space<vmem>>) attributes {dimension_semantics = [#tpu.dimension_semantics<parallel>, #tpu.dimension_semantics<arbitrary>], iteration_bounds = array<i64: 2, 4>, scalar_prefetch = 0 : i64, scratch_operands = 1 : i64, tpu.core_type = #tpu.core_type<tc>, window_params = [{pipeline_mode = #tpu.pipeline_mode<synchronous>, transform_indices = @transform_0, window_bounds = array<i64: 2, 65536>}, {transform_indices = @transform_1, window_bounds = array<i64: 16384, 128>}, {transform_indices = @transform_2, window_bounds = array<i64: 1, 128>}, {transform_indices = @transform_3, window_bounds = array<i64: 128, 5>}, {transform_indices = @transform_4, window_bounds = array<i64: 128, 1024>}, {transform_indices = @transform_5, window_bounds = array<i64: 1, 2, 5>}, {transform_indices = @transform_6, window_bounds = array<i64: 1, 2, 1024>}]} {
    %c0_i32 = arith.constant 0 : i32
    %0 = arith.cmpi eq, %arg1, %c0_i32 : i32
    %1 = arith.extui %0 : i1 to i32
    %c0_i32_0 = arith.constant 0 : i32
    %2 = arith.cmpi ne, %1, %c0_i32_0 : i32
    scf.if %2 {
      %cst_8 = arith.constant 0.000000e+00 : f32
      %15 = vector.broadcast %cst_8 : f32 to vector<2x128xf32>
      %c0_9 = arith.constant 0 : index
      %c0_10 = arith.constant 0 : index
      %16 = vector.load %arg9[%c0_9, %c0_10] : memref<2x128xf32, #tpu.memory_space<vmem>>, vector<2x128xf32>
      tpu.vector_store %arg9[%c0_9, %c0_10], %15 {strides = array<i32>} : memref<2x128xf32, #tpu.memory_space<vmem>>, vector<2x128xf32>,
    } else {
    }
    %c16384_i32 = arith.constant 16384 : i32
    %3 = arith.muli %arg1, %c16384_i32 : i32
    %4 = tpu.assume_multiple %3, 16384 : i32
    %c0 = arith.constant 0 : index
    %5 = arith.index_cast %4 : i32 to index
    %6 = vector.load %arg2[%c0, %5] : memref<2x65536xbf16, #tpu.memory_space<vmem>>, vector<2x16384xbf16>
    %c0_1 = arith.constant 0 : index
    %c0_2 = arith.constant 0 : index
    %7 = vector.load %arg9[%c0_1, %c0_2] : memref<2x128xf32, #tpu.memory_space<vmem>>, vector<2x128xf32>
    %c0_3 = arith.constant 0 : index
    %c0_4 = arith.constant 0 : index
    %8 = vector.load %arg3[%c0_3, %c0_4] : memref<16384x128xbf16, #tpu.memory_space<vmem>>, vector<16384x128xbf16>
    %cst = arith.constant dense<0.000000e+00> : vector<2x128xf32>
    %9 = tpu.matmul %6, %8, %cst {dimension_numbers = #tpu.dot_dimension_numbers<[1], [0], [0], [1], [0, 0, 1, 1], [], []>} : vector<2x16384xbf16>, vector<16384x128xbf16>, vector<2x128xf32> -> vector<2x128xf32>
    %10 = arith.addf %7, %9 : vector<2x128xf32>
    %c0_5 = arith.constant 0 : index
    %c0_6 = arith.constant 0 : index
    %11 = vector.load %arg9[%c0_5, %c0_6] : memref<2x128xf32, #tpu.memory_space<vmem>>, vector<2x128xf32>
    tpu.vector_store %arg9[%c0_5, %c0_6], %10 {strides = array<i32>} : memref<2x128xf32, #tpu.memory_space<vmem>>, vector<2x128xf32>,
    %c3_i32 = arith.constant 3 : i32
    %12 = arith.cmpi eq, %arg1, %c3_i32 : i32
    %13 = arith.extui %12 : i1 to i32
    %c0_i32_7 = arith.constant 0 : i32
    %14 = arith.cmpi ne, %13, %c0_i32_7 : i32
    scf.if %14 {
      %c0_8 = arith.constant 0 : index
      %c0_9 = arith.constant 0 : index
      %15 = vector.load %arg9[%c0_8, %c0_9] : memref<2x128xf32, #tpu.memory_space<vmem>>, vector<2x128xf32>
      %c0_10 = arith.constant 0 : index
      %c0_11 = arith.constant 0 : index
      %16 = vector.load %arg4[%c0_10, %c0_11] : memref<1x128xf32, #tpu.memory_space<vmem>>, vector<1x128xf32>
      %17 = vector.broadcast %16 : vector<1x128xf32> to vector<2x128xf32>
      %18 = arith.addf %15, %17 : vector<2x128xf32>
      %cst_12 = arith.constant 0.000000e+00 : f32
      %19 = vector.broadcast %cst_12 : f32 to vector<2x128xf32>
      %20 = arith.maximumf %18, %19 : vector<2x128xf32>
      %c0_13 = arith.constant 0 : index
      %c0_14 = arith.constant 0 : index
      %21 = vector.load %arg5[%c0_13, %c0_14] : memref<128x5xf32, #tpu.memory_space<vmem>>, vector<128x5xf32>
      %cst_15 = arith.constant dense<0.000000e+00> : vector<2x5xf32>
      %22 = tpu.matmul %20, %21, %cst_15 {dimension_numbers = #tpu.dot_dimension_numbers<[1], [0], [0], [1], [0, 0, 1, 1], [], []>} : vector<2x128xf32>, vector<128x5xf32>, vector<2x5xf32> -> vector<2x5xf32>
      %c0_16 = arith.constant 0 : index
      %c0_17 = arith.constant 0 : index
      %c0_18 = arith.constant 0 : index
      %23 = vector.load %arg7[%c0_16, %c0_17, %c0_18] : memref<1x2x5xf32, #tpu.memory_space<vmem>>, vector<1x2x5xf32>
      %24 = vector.shape_cast %23 : vector<1x2x5xf32> to vector<2x5xf32>
      %25 = vector.shape_cast %22 : vector<2x5xf32> to vector<1x2x5xf32>
      tpu.vector_store %arg7[%c0_16, %c0_17, %c0_18], %25 {strides = array<i32>} : memref<1x2x5xf32, #tpu.memory_space<vmem>>, vector<1x2x5xf32>,
      %c0_19 = arith.constant 0 : index
      %c0_20 = arith.constant 0 : index
      %26 = vector.load %arg6[%c0_19, %c0_20] : memref<128x1024xf32, #tpu.memory_space<vmem>>, vector<128x1024xf32>
      %cst_21 = arith.constant dense<0.000000e+00> : vector<2x1024xf32>
      %27 = tpu.matmul %20, %26, %cst_21 {dimension_numbers = #tpu.dot_dimension_numbers<[1], [0], [0], [1], [0, 0, 1, 1], [], []>} : vector<2x128xf32>, vector<128x1024xf32>, vector<2x1024xf32> -> vector<2x1024xf32>
      %c0_22 = arith.constant 0 : index
      %c0_23 = arith.constant 0 : index
      %c0_24 = arith.constant 0 : index
      %28 = vector.load %arg8[%c0_22, %c0_23, %c0_24] : memref<1x2x1024xf32, #tpu.memory_space<vmem>>, vector<1x2x1024xf32>
      %29 = vector.shape_cast %28 : vector<1x2x1024xf32> to vector<2x1024xf32>
      %30 = vector.shape_cast %27 : vector<2x1024xf32> to vector<1x2x1024xf32>
      tpu.vector_store %arg8[%c0_22, %c0_23, %c0_24], %30 {strides = array<i32>} : memref<1x2x1024xf32, #tpu.memory_space<vmem>>, vector<1x2x1024xf32>,
    } else {
    }
    return
  }
  func.func @transform_0(%arg0: i32, %arg1: i32) -> (i32, i32) {
    %c0_i32 = arith.constant 0 : i32
    %c0_i32_0 = arith.constant 0 : i32
    %c0_i32_1 = arith.constant 0 : i32
    return %c0_i32, %c0_i32_0 : i32, i32
  }
  func.func @transform_1(%arg0: i32, %arg1: i32) -> (i32, i32) {
    %c0_i32 = arith.constant 0 : i32
    return %arg1, %arg0 : i32, i32
  }
  func.func @transform_2(%arg0: i32, %arg1: i32) -> (i32, i32) {
    %c0_i32 = arith.constant 0 : i32
    %c0_i32_0 = arith.constant 0 : i32
    return %c0_i32, %arg0 : i32, i32
  }
  func.func @transform_3(%arg0: i32, %arg1: i32) -> (i32, i32) {
    %c0_i32 = arith.constant 0 : i32
    %c0_i32_0 = arith.constant 0 : i32
    return %arg0, %c0_i32 : i32, i32
  }
  func.func @transform_4(%arg0: i32, %arg1: i32) -> (i32, i32) {
    %c0_i32 = arith.constant 0 : i32
    %c0_i32_0 = arith.constant 0 : i32
    return %arg0, %c0_i32 : i32, i32
  }
  func.func @transform_5(%arg0: i32, %arg1: i32) -> (i32, i32, i32) {
    %c0_i32 = arith.constant 0 : i32
    %c0_i32_0 = arith.constant 0 : i32
    %c0_i32_1 = arith.constant 0 : i32
    return %arg0, %c0_i32, %c0_i32_0 : i32, i32, i32
  }
  func.func @transform_6(%arg0: i32, %arg1: i32) -> (i32, i32, i32) {
    %c0_i32 = arith.constant 0 : i32
    %c0_i32_0 = arith.constant 0 : i32
    %c0_i32_1 = arith.constant 0 : i32
    return %arg0, %c0_i32, %c0_i32_0 : i32, i32, i32
  }
}

</mosaic_0001>

<bundles_post_ra>
// kernel: tpu_custom_call.1
= control target key start
LH: loop header
LB: loop body
LE: loop exit
PB: predicated region body
PF: predicated region fallthrough
CT: control target
= control target key end

     0   :  { %s18961_s0 = inlined_call_operand.hbm [shape: bf16[2,65536], index: 0, kind: input, shape index: {}]   ;;  %s18962_s1 = inlined_call_operand.hbm [shape: bf16[65536,256], index: 1, kind: input, shape index: {}]   ;;  %s18963_s2 = inlined_call_operand.hbm [shape: f32[1,256], index: 2, kind: input, shape index: {}]   ;;  %s18964_s3 = inlined_call_operand.vmem [shape: f32[256,5], index: 3, kind: input, shape index: {}]   ;;  %s18965_s4 = inlined_call_operand.hbm [shape: f32[256,1024], index: 4, kind: input, shape index: {}]   ;;  %s18966_s5 = inlined_call_operand.hbm [shape: f32[2,2,5], index: 5, kind: output, shape index: {0}]   ;;  %s18967_s6 = inlined_call_operand.hbm [shape: f32[2,2,1024], index: 6, kind: output, shape index: {1}]  }
   0x1   :  { %18986 = sst [smem:[#allocation29_spill]] %s18962_s1 }
   0x2   :  { %18987 = sst [smem:[#allocation30_spill]] %s18966_s5 }
   0x3   :  { %18988 = sst [smem:[#allocation31_spill]] %s18967_s6 }
   0x4   :  { %12 = vsyncpa [#allocation4], 0 }
   0x5   :  { %13 = vsyncpa [#allocation7], 0 }
   0x6   :  { %15 = vsyncpa [#allocation7 + $0x1], 0 }
   0x7   :  { %16 = vsyncpa [#allocation10], 0 }
   0x8   :  { %18 = vsyncpa [#allocation10 + $0x1], 0 }
   0x9   :  { %19 = vsyncpa [#allocation5], 0 }
   0xa   :  { %21 = vsyncpa [#allocation5 + $0x1], 0 }
   0xb   :  { %22 = vsyncpa [#allocation13], 0 }
   0xc   :  { %24 = vsyncpa [#allocation13 + $0x1], 0  ;;  %s17076_s21 = smov 0   ;;  %s17078_s22 = smov 0  }
   0xd   :  { %s17080_s23 = smov 0   ;;  %s17082_s24 = smov 0  }
   0xe   :  { %s17084_s25 = smov 0   ;;  %s17086_s26 = smov 0  }
   0xf   :  { %s17088_s27 = smov 0   ;;  %s17090_s28 = smov 0  }
  0x10   :  { %s17092_s29 = smov 0   ;;  %s17094_s30 = smov 0  }
  0x11   :  { %s17096_s7 = smov 0  }
  0x12 LB: > { %18989 = sst [smem:[#allocation20_spill]] %s16991_s23  ;;  %s39_s8 = sadd.s32 1, %s17015_s29  ;;  %s17023_s7 = sphi %s17096_s7, %s30_s7   ;;  %s17019_s30 = sphi %s17094_s30, %s19037_s30   ;;  %s17015_s29 = sphi %s17092_s29, %s19030_s29   ;;  %s17011_s28 = sphi %s17090_s28, %s19036_s28   ;;  %s17007_s27 = sphi %s17088_s27, %s19029_s27   ;;  %s17003_s26 = sphi %s17086_s26, %s19028_s26   ;;  %s16999_s25 = sphi %s17084_s25, %s19035_s25   ;;  %s16995_s24 = sphi %s17082_s24, %s19034_s24   ;;  %s16991_s23 = sphi %s17080_s23, %s19026_s23   ;;  %s16987_s22 = sphi %s17078_s22, %s19033_s22   ;;  %s16983_s21 = sphi %s17076_s21, %s19032_s21  }
  0x13   : > { %18990 = sst [smem:[#allocation21_spill]] %s17003_s26  ;;  %s42_s9 = sadd.s32 1, %s17019_s30 }
  0x14   : > { %18991 = sst [smem:[#allocation22_spill]] %s17007_s27  ;;  %p40_p0 = scmp.ge.s32.totalorder %s39_s8, 4 }
  0x15   : > { %18992 = sst [smem:[#allocation23_spill]] %s17015_s29  ;;  %s72_s10 = sadd.s32 1, %s17003_s26 }
  0x16   : > { %p79_p1 = scmp.ne.s32.totalorder %s17003_s26, %s16999_s25  ;;  %p18974_p2 = scmp.eq.s32.totalorder %s17023_s7, 0 }
  0x17   : > { %s19039_s8 = smov (%p40_p0, %s39_s8), 0  ;;  %s19041_s9 = smov (!%p40_p0, %s42_s9), %s17019_s30 }
  0x18   : > { %18993 = sst [smem:[#allocation24_spill]] %s19039_s8  ;;  %s67_s11 = ssub.s32 %s17015_s29, %s19039_s8 }
  0x19   : > { %p17144_p3 = por %p18974_p2, %p79_p1  ;;  %p44_p4 = scmp.ge.s32.totalorder %s19041_s9, 2 }
  0x1a   : > { %p18973_p5 = scmp.lt.s32.totalorder %s17023_s7, 8  ;;  %s250_s13 = sand.u32 1, %s17023_s7  }
  0x1b   : > { %s19043_s9 = smov (%p44_p4, %s19041_s9), 0  ;;  %s252_s14 = sand.u32 1, %s17003_s26  }
  0x1c   : > { %18995 = sst [smem:[#allocation25_spill]] %s19043_s9  ;;  %s17155_s15 = ssub.s32 %s17019_s30, %s19043_s9 }
  0x1d   : > { %s12893_s16 = sshll.u32 %s252_s14, 13  ;;  %s69_s17 = sor.u32 %s17155_s15, %s67_s11 }
  0x1e   : > { %p96_p6 = scmp.eq.s32.totalorder %s17155_s15, 0  ;;  %p70_p7 = scmp.eq.s32.totalorder %s69_s17, 0 }
  0x1f   : > { %s13945_s18 = sshll.u32 %s17015_s29, 12  ;;  %s254_s19 = scalar_lea.vmem [#allocation6], %s12893_s16 }
  0x20   : > { %s263_s20 = sshll.u32 %s254_s19, 4  ;;  %s260_s6 = sadd.s32 %s17019_s30, %s13945_s18  ;;  %s17164_s20 = int_to_ptr.vmem [resolvable:$true] %s263_s20 }
  0x21   : > { %s17161_s8 = scalar_select %p70_p7, %s17003_s26, %s72_s10  }
  0x22   : > { %s12896_s5 = sshll.u32 %s260_s6, 6  ;;  %p17170_p8 = pnand %p18973_p5, %p17144_p3 }
  0x23   : > { %18996 = sst [smem:[#allocation26_spill]] %s17161_s8  ;;  %s17179_s10 = scalar_lea.sflag [#allocation7], %s250_s13 }
  0x24   : > { %s18998_s1 = sld [smem:[#allocation29_spill]]  ;;  %p16741_p10 = pneg %p17170_p8 }
  0x2a   : > { %s17177_s11 = scalar_lea.hbm %s18998_s1, %s12896_s5  ;;  %s16744_s16 = scalar_lea.hbm %s18998_s1, 1048576 }
  0x2b   : > { %s16739_s6 = scalar_lea.hbm %s17177_s11, 131072  ;;  %p16745_p13 = scmp.lt.u32.totalorder %s17177_s11, %s18998_s1 }
  0x2c   : > { %p16740_p9 = scmp.ne.s32.totalorder %s17177_s11, %s16739_s6  ;;  %p16746_p0 = scmp.lt.u32.totalorder %s16744_s16, %s16739_s6 }
  0x2d   : > { %p16748_p3 = scmp.lt.u32.totalorder %s16739_s6, %s17177_s11 }
  0x2e   : > { %p16742_p11 = pnand %p16741_p10, %p16740_p9  ;;  %p16747_p1 = por %p16746_p0, %p16745_p13 }
  0x30   : > { %p16743_p12 = pneg %p16742_p11  ;;  %p16749_p4 = por %p16748_p3, %p16747_p1 }
  0x32   : > { %p16750_p7 = pnand %p16749_p4, %p16743_p12 }
  0x34   : > { %16753 = shalt.err (!%p16750_p7)
}
  0x35   : > { %s16754_s13 = scalar_lea.vmem %s17164_s20, 131072  ;;  %s17025_s18 = smov [#allocation6]  }
  0x36   : > { %p16755_p9 = scmp.ne.s32.totalorder %s17164_s20, %s16754_s13  ;;  %s16759_s19 = sshll.u32 %s17025_s18, 4  ;;  %s16760_s19 = int_to_ptr.vmem [resolvable:$false] %s16759_s19 }
  0x37   : > { %s16761_s14 = scalar_lea.vmem %s16760_s19, 262144  ;;  %p16762_p2 = scmp.lt.s32.totalorder %s17164_s20, %s16760_s19 }
  0x38   : > { %p16757_p11 = pnand %p16755_p9, %p16741_p10  ;;  %p16763_p13 = scmp.lt.s32.totalorder %s16761_s14, %s16754_s13 }
  0x3a   : > { %p16758_p5 = pneg %p16757_p11  ;;  %p16764_p0 = por %p16763_p13, %p16762_p2 }
  0x3c   : > { %p16765_p1 = pnand %p16764_p0, %p16758_p5 }
  0x3e   : > { %16768 = shalt.err (!%p16765_p1)
}
  0x3f   : > { %s17026_s6 = smov 128   ;;  %s18975_s12 = smov 64  }
  0x40   : > { %s17028_s27 = smov 4   ;;  %s17209_s16 = sadd.s32 4294967295, %s17023_s7  }
  0x41   : > { %15582 = dma.hbm_to_vmem [thread:$0]  (!%p17170_p8), %s17177_s11, 131072, %s17164_s20, %s17179_s10, %s17026_s6, %s18975_s12, %s17028_s27  }
  0x42   : > { %s12889_s5 = sadd.s32 4294967294, %s17023_s7   ;;  %p85_p2 = scmp.ne.s32.totalorder %s16999_s25, %s16995_s24 }
  0x43   : > { %p18980_p5 = scmp.eq.s32.totalorder %s17209_s16, 0  ;;  %s98_s17 = sadd.s32 1, %s16991_s23 }
  0x44   : > { %s17219_s13 = scalar_select %p96_p6, %s16991_s23, %s98_s17  }
  0x45   : > { %p17223_p10 = por %p18980_p5, %p85_p2  ;;  %p105_p8 = scmp.ne.s32.totalorder %s16991_s23, %s16987_s22 }
  0x46   : > { %18999 = sst [smem:[#allocation27_spill]] %s17219_s13  ;;  %p111_p12 = scmp.ne.s32.totalorder %s16987_s22, %s16983_s21 }
  0x47   : > { %s19000_s9 = scalar_select %p17223_p10, 1, 0 }
  0x48   : > { %p187_p3 = scmp.eq.s32.totalorder %s17209_s16, 7  ;;  %p193_p4 = scmp.eq.s32.totalorder %s12889_s5, 7 }
  0x49   : > { %p12890_p7 = scmp.ge.s32.totalorder %s17023_s7, 1  ;;  %p17235_p9 = por %p111_p12, %p18980_p5 }
  0x4a   : > { %p17242_p6 = por %p187_p3, %p105_p8  ;;  %p17246_p11 = por %p193_p4, %p111_p12 }
  0x4b   : > { %s19001_s24 = scalar_select %p17235_p9, 1, 0 }
  0x4c   : > { %s19002_s15 = scalar_select %p17242_p6, 1, 0 }
  0x4d   : > { %s19003_s20 = scalar_select %p17246_p11, 1, 0 }
  0x4e   : > { %p226_p13 = scmp.lt.s32.totalorder %s17023_s7, 9  ;;  %s17029_s18 = smov [#allocation3]  }
  0x4f   : > { %19004 = sst [smem:[#allocation28_spill]] %s19003_s20  ;;  %s239_s19 = sshll.u32 %s17029_s18, 4  ;;  %s240_s19 = int_to_ptr.vmem [resolvable:$true] %s239_s19 }
  0x50   : > { %p17251_p0 = pnand %p12890_p7, %p226_p13  ;;  %p19006_p1 = scmp.eq.s32.totalorder %s17023_s7, 0 }
  0x51   : > { %s17263_s14 = sand.u32 1, %s16991_s23   ;;  %s12897_s6 = sshll.u32 %s17019_s30, 4 }
  0x52   : > { %s19005_s11 = scalar_select %p17251_p0, 1, 0 }
  0x53   : > { %p107_p2 = por %p105_p8, %p19006_p1  ;;  %p15575_p3 = pneg %p17251_p0 }
  0x54   : > { %s17275_s18 = scalar_lea.hbm %s18963_s2, %s12897_s6  ;;  %s276_s12 = scalar_lea.vmem [#allocation8], %s17263_s14 }
  0x55   : > { %p17268_p12 = pnand %p15575_p3, %p18980_p5  ;;  %s283_s1 = sshll.u32 %s276_s12, 4  ;;  %s17284_s1 = int_to_ptr.vmem [resolvable:$true] %s283_s1 }
  0x56   : > { %p19008_p8 = scmp.lt.s32.totalorder %s17023_s7, 8  ;;  %s16769_s13 = scalar_lea.hbm %s18961_s0, 8192 }
  0x57   : > { %p16770_p7 = scmp.ne.s32.totalorder %s18961_s0, %s16769_s13  ;;  %p16771_p13 = pneg %p17268_p12 }
  0x58   : > { %p17280_p4 = pnand %p19008_p8, %p107_p2  ;;  %p16776_p2 = scmp.lt.u32.totalorder %s16769_s13, %s18961_s0 }
  0x59   : > { %p16772_p1 = pnand %p16771_p13, %p16770_p7 }
  0x5a   : > { %s19009_s29 = scalar_select %p17280_p4, 1, 0 }
  0x5b   : > { %p16773_p3 = pneg %p16772_p1 }
  0x5d   : > { %p16778_p8 = pnand %p16776_p2, %p16773_p3 }
  0x5f   : > { %16781 = shalt.err (!%p16778_p8)
}
  0x60   : > { %s16782_s5 = scalar_lea.vmem %s240_s19, 8192  ;;  %p16790_p9 = scmp.lt.s32.totalorder %s240_s19, %s240_s19 }
  0x61   : > { %p16783_p5 = scmp.ne.s32.totalorder %s240_s19, %s16782_s5  ;;  %p16791_p10 = scmp.lt.s32.totalorder %s16782_s5, %s16782_s5 }
  0x63   : > { %p16785_p11 = pnand %p16783_p5, %p16771_p13  ;;  %p16792_p0 = por %p16791_p10, %p16790_p9 }
  0x65   : > { %p16786_p6 = pneg %p16785_p11 }
  0x67   : > { %p16793_p4 = pnand %p16792_p0, %p16786_p6 }
  0x69   : > { %16796 = shalt.err (!%p16793_p4)
}
  0x6a   : > { %15578 = dma.hbm_to_vmem [thread:$0]  (!%p17268_p12), %s18961_s0, 8192, %s240_s19, [#allocation4]  }
  0x6b   : > { %s16797_s8 = scalar_lea.hbm %s17275_s18, 16  ;;  %p19010_p11 = scmp.ne.s32.totalorder %s19009_s29, 0 }
  0x6c   : > { %p16798_p5 = scmp.ne.s32.totalorder %s17275_s18, %s16797_s8  ;;  %s16802_s27 = scalar_lea.hbm %s18963_s2, 32 }
  0x6d   : > { %p16799_p7 = pneg %p19010_p11  ;;  %p16803_p6 = scmp.lt.u32.totalorder %s17275_s18, %s18963_s2 }
  0x6e   : > { %p16804_p0 = scmp.lt.u32.totalorder %s16802_s27, %s16797_s8  ;;  %p16806_p13 = scmp.lt.u32.totalorder %s16797_s8, %s17275_s18 }
  0x6f   : > { %p16800_p10 = pnand %p16799_p7, %p16798_p5 }
  0x70   : > { %p16805_p4 = por %p16804_p0, %p16803_p6 }
  0x71   : > { %p16801_p9 = pneg %p16800_p10 }
  0x72   : > { %p16807_p12 = por %p16806_p13, %p16805_p4 }
  0x74   : > { %p16808_p1 = pnand %p16807_p12, %p16801_p9 }
  0x76   : > { %16811 = shalt.err (!%p16808_p1)
}
  0x77   : > { %s16812_s19 = scalar_lea.vmem %s17284_s1, 16  ;;  %s17030_s6 = smov [#allocation8]  }
  0x78   : > { %p16813_p3 = scmp.ne.s32.totalorder %s17284_s1, %s16812_s19  ;;  %s16817_s5 = sshll.u32 %s17030_s6, 4  ;;  %s16818_s5 = int_to_ptr.vmem [resolvable:$false] %s16817_s5 }
  0x79   : > { %s16819_s23 = scalar_lea.vmem %s16818_s5, 32  ;;  %p16820_p5 = scmp.lt.s32.totalorder %s17284_s1, %s16818_s5 }
  0x7a   : > { %p16815_p2 = pnand %p16813_p3, %p16799_p7  ;;  %p16821_p10 = scmp.lt.s32.totalorder %s16819_s23, %s16812_s19 }
  0x7c   : > { %p16816_p8 = pneg %p16815_p2  ;;  %p16822_p6 = por %p16821_p10, %p16820_p5 }
  0x7e   : > { %p16823_p0 = pnand %p16822_p6, %p16816_p8 }
  0x80   : > { %16826 = shalt.err (!%p16823_p0)
}
  0x81   : > { %15585 = dma.hbm_to_vmem [thread:$0]  (!%p19010_p11), %s17275_s18, 16, %s17284_s1, %s17179_s10  }
  0x82   : > { %s12898_s26 = sshll.u32 %s17263_s14, 10  ;;  %s13947_s8 = sshll.u32 %s17019_s30, 14 }
  0x83   : > { %s17333_s27 = scalar_lea.hbm %s18965_s4, %s13947_s8  ;;  %s303_s17 = scalar_lea.vmem [#allocation9], %s12898_s26 }
  0x84   : > { %s311_s12 = sshll.u32 %s303_s17, 4  ;;  %s300_s19 = scalar_lea.sflag [#allocation10], %s17263_s14  ;;  %s17335_s12 = int_to_ptr.vmem [resolvable:$true] %s311_s12 }
  0x85   : > { %s16827_s6 = scalar_lea.hbm %s17333_s27, 16384  ;;  %s16832_s18 = scalar_lea.hbm %s18965_s4, 32768 }
  0x86   : > { %p16828_p9 = scmp.ne.s32.totalorder %s17333_s27, %s16827_s6  ;;  %p16833_p12 = scmp.lt.u32.totalorder %s17333_s27, %s18965_s4 }
  0x87   : > { %p16834_p1 = scmp.lt.u32.totalorder %s16832_s18, %s16827_s6  ;;  %p16836_p2 = scmp.lt.u32.totalorder %s16827_s6, %s17333_s27 }
  0x88   : > { %p16830_p4 = pnand %p16828_p9, %p16799_p7 }
  0x89   : > { %p16835_p3 = por %p16834_p1, %p16833_p12 }
  0x8a   : > { %p16831_p13 = pneg %p16830_p4 }
  0x8b   : > { %p16837_p8 = por %p16836_p2, %p16835_p3 }
  0x8d   : > { %p16838_p5 = pnand %p16837_p8, %p16831_p13 }
  0x8f   : > { %16841 = shalt.err (!%p16838_p5)
}
  0x90   : > { %s16842_s26 = scalar_lea.vmem %s17335_s12, 16384  ;;  %s17031_s8 = smov [#allocation9]  }
  0x91   : > { %p16843_p10 = scmp.ne.s32.totalorder %s17335_s12, %s16842_s26  ;;  %s16847_s13 = sshll.u32 %s17031_s8, 4  ;;  %s16848_s13 = int_to_ptr.vmem [resolvable:$false] %s16847_s13 }
  0x92   : > { %s16849_s20 = scalar_lea.vmem %s16848_s13, 32768  ;;  %p16850_p9 = scmp.lt.s32.totalorder %s17335_s12, %s16848_s13 }
  0x93   : > { %p16845_p6 = pnand %p16843_p10, %p16799_p7  ;;  %p16851_p4 = scmp.lt.s32.totalorder %s16849_s20, %s16842_s26 }
  0x95   : > { %p16846_p0 = pneg %p16845_p6  ;;  %p16852_p12 = por %p16851_p4, %p16850_p9 }
  0x97   : > { %p16853_p1 = pnand %p16852_p12, %p16846_p0 }
  0x99   : > { %16856 = shalt.err (!%p16853_p1)
}
  0x9a   : > { %s17032_s17 = smov 1024   ;;  %s19011_s6 = smov 64  }
  0x9b   : > { %15588 = dma.hbm_to_vmem [thread:$0]  (!%p19010_p11), %s17333_s27, 16384, %s17335_s12, %s300_s19, %s17032_s17, %s17032_s17, %s19011_s6  }
  0x9c   : > { %p19012_p7 = scmp.ne.s32.totalorder %s19005_s11, 0 }
  0x9d   : > { %p19013_p13 = scmp.eq.s32.totalorder (!%p19012_p7), %s17209_s16, 0 }
  0x9e   : > { %323 = sbr.rel (%p19012_p7) target bundleno = 1789 (0x6fd), region = 40 }
  0xa5   : > { %16958 = dma.done.wait (%p19013_p13), [#allocation4], 8192   ;;  %p19014_p3 = pmov %p19013_p13 }
  0xa6   : > { %s329_s1 = sand.u32 1, %s17209_s16   ;;  %s331_s29 = sand.u32 1, %s16999_s25  }
  0xa7   : > { %16960 = vsyncadd (%p19014_p3), [#allocation4], 4294959104  ;;  %s12904_s10 = sshll.u32 %s331_s29, 13  ;;  %s330_s18 = scalar_lea.sflag [#allocation7], %s329_s1 }
  0xa8   : > { %s17372_s14 = scalar_lea.vmem [#allocation6], %s12904_s10  ;;  %p19015_p2 = scmp.ne.s32.totalorder %s19000_s9, 0 }
  0xaa   : > { %16962 = dma.done.wait (%p19015_p2), %s330_s18, 131072  }
  0xab   : > { %16964 = vsyncadd (%p19015_p2), %s330_s18, 4294836224  ;;  %s17379_s11 = sand.u32 1, %s16987_s22   ;;  %p19016_p11 = scmp.ne.s32.totalorder %s19001_s24, 0 }
  0xac   : > { %s341_s27 = scalar_lea.vmem [#allocation8], %s17379_s11 }
  0xad   : > { %16966 = dma.done.wait (%p19016_p11), %s330_s18, 16  }
  0xae   : > { %16968 = vsyncadd (%p19016_p11), %s330_s18, 4294967280  ;;  %s12905_s16 = sshll.u32 %s17379_s11, 10  ;;  %s347_s12 = scalar_lea.sflag [#allocation10], %s17379_s11 }
  0xaf   : > { %s17388_s19 = scalar_lea.vmem [#allocation9], %s12905_s16 }
  0xb0   : > { %16970 = dma.done.wait (%p19016_p11), %s347_s12, 16384  }
  0xb1   : > { %16972 = vsyncadd (%p19016_p11), %s347_s12, 4294950912  ;;  %s12906_s9 = sshll.u32 %s17379_s11, 1  ;;  %s12907_s5 = sshll.u32 %s17379_s11, 4 }
  0xb2   : > { %s12908_s23 = sshll.u32 %s17011_s28, 4  ;;  %s17402_s17 = scalar_lea.vmem [#allocation11], %s12906_s9 }
  0xb3   : > { %p400_p8 = scmp.lt.s32.totalorder %s12908_s23, 31  ;;  %s17404_s6 = scalar_lea.vmem [#allocation12], %s12907_s5 }
  0xb4   : > { %s19017_s24 = sld [smem:[#allocation22_spill]] }
  0xb5   : > { %s19045_s23 = smov (!%p400_p8, %s12908_s23), 31 }
  0xb6   : > { %s12909_s26 = sshll.u32 %s19045_s23, 3 }
  0xb7   : > { %s17400_s20 = scalar_lea.vmem %s18964_s3, %s12909_s26 }
  0xba   : > { %p12910_p5 = scmp.ne.s32.totalorder %s19017_s24, 0 }
  0xbb   : > { %v17033_v0 = vmov (!%p12910_p5), 0.0  }
  0xbc   : > { %410 = sbr.rel (%p12910_p5) target bundleno = 195 (0xc3), region = 60  ;;  %411 = vst [vmem:[#allocation2] sm:$0x3] (!%p12910_p5), %v17033_v0 }
  0xc3 PF: > { %v15699_v1 = vld [vmem:[%s17372_s14 + $0x40] sm:$0xff]   ;;  %v15703_v5 = vld [vmem:[%s17372_s14 + $0x48] sm:$0xff]   ;;  %v15707_v9 = vld [vmem:[%s17372_s14 + $0x50] sm:$0xff]   ;;  %s19018_s1 = sld [smem:[#allocation22_spill]]  ;;  %v2501_v29 = vlaneseq  ;;  %v17034_v37 = vmov 1966171168  }
  0xc4   : > { %v15700_v2 = vld [vmem:[%s17372_s14 + $0xc0] sm:$0xff]   ;;  %13949 = vmatprep.subr.bf16.mxu0 %v15699_v1  ;;  %v15704_v6 = vld [vmem:[%s17372_s14 + $0xc8] sm:$0xff]   ;;  %v15708_v10 = vld [vmem:[%s17372_s14 + $0xd0] sm:$0xff]   ;;  %v2499_v38 = vunpack.c.l.s4 %v17034_v37 }
  0xc5   : > { %v15701_v3 = vld [vmem:[%s17372_s14] sm:$0xff]   ;;  %13971 = vmatprep.subr.bf16.mxu1 %v15700_v2  ;;  %v15705_v7 = vld [vmem:[%s17372_s14 + $0x8] sm:$0xff]   ;;  %v15709_v11 = vld [vmem:[%s17372_s14 + $0x10] sm:$0xff]   ;;  %v17440_v34 = vshrl.u32 %v2501_v29, 7 }
  0xc6   : > { %v15702_v4 = vld [vmem:[%s17372_s14 + $0x80] sm:$0xff]   ;;  %13950 = vmatpush3.bf16.msra.mxu0 %v15701_v3  ;;  %v15706_v8 = vld [vmem:[%s17372_s14 + $0x88] sm:$0xff]   ;;  %v15710_v12 = vld [vmem:[%s17372_s14 + $0x90] sm:$0xff]   ;;  %v2500_v41 = vunpack.c.0.s8 %v2499_v38 }
  0xc7   : > { %13972 = vmatpush3.bf16.msra.mxu1 %v15702_v4  ;;  %13951 = vmatprep.subr.bf16.mxu0 %v15703_v5  ;;  %v15711_v13 = vld [vmem:[%s17372_s14 + $0x58] sm:$0xff]   ;;  %v15715_v17 = vld [vmem:[%s17372_s14 + $0x60] sm:$0xff]   ;;  %v15719_v21 = vld [vmem:[%s17372_s14 + $0x68] sm:$0xff]  }
  0xc8   : > { %13973 = vmatprep.subr.bf16.mxu1 %v15704_v6  ;;  %v15712_v14 = vld [vmem:[%s17372_s14 + $0xd8] sm:$0xff]   ;;  %v15716_v18 = vld [vmem:[%s17372_s14 + $0xe0] sm:$0xff]   ;;  %v15720_v22 = vld [vmem:[%s17372_s14 + $0xe8] sm:$0xff]   ;;  %v17448_v42 = vsub.s32 %v2500_v41, %v17440_v34 }
  0xc9   : > { %v15713_v15 = vld [vmem:[%s17372_s14 + $0x18] sm:$0xff]   ;;  %v15717_v19 = vld [vmem:[%s17372_s14 + $0x20] sm:$0xff]   ;;  %v15721_v23 = vld [vmem:[%s17372_s14 + $0x28] sm:$0xff]   ;;  %s12911_s29 = sshll.u32 %s19018_s1, 14  ;;  %p13936_p10 = scmp.ne.s32.totalorder %s19018_s1, 3 }
  0xca   : > { %13952 = vmatpush3.bf16.msra.mxu0 %v15705_v7  ;;  %v15714_v16 = vld [vmem:[%s17372_s14 + $0x98] sm:$0xff]   ;;  %v15718_v20 = vld [vmem:[%s17372_s14 + $0xa0] sm:$0xff]   ;;  %v15722_v24 = vld [vmem:[%s17372_s14 + $0xa8] sm:$0xff]   ;;  %s413_s10 = sshra.s32 %s12911_s29, 7  ;;  %vm17036_vm0 = vmmov (!%p13936_p10), 0   ;;  %vm12215_vm1 = vcmask (!%p13936_p10), 33792  }
  0xcb   : > { %13974 = vmatpush3.bf16.msra.mxu1 %v15706_v8  ;;  %13953 = vmatprep.subr.bf16.mxu0 %v15707_v9  ;;  %v15723_v25 = vld [vmem:[%s17372_s14 + $0x70] sm:$0xff]   ;;  %v15727_v30 = vld [vmem:[%s17372_s14 + $0x78] sm:$0xff]   ;;  %s17442_s18 = scalar_lea.vmem [#allocation3], %s413_s10  ;;  %v15732_v36 = vld [vmem:[%s17372_s14 + $0x140] sm:$0xff]  }
  0xcc   : > { %13975 = vmatprep.subr.bf16.mxu1 %v15708_v10  ;;  %v15724_v26 = vld [vmem:[%s17372_s14 + $0xf0] sm:$0xff]   ;;  %v15728_v31 = vld [vmem:[%s17372_s14 + $0xf8] sm:$0xff]   ;;  %v15733_v39 = vld [vmem:[%s17372_s14 + $0x1c0] sm:$0xff]  }
  0xcd   : > { %v15725_v27 = vld [vmem:[%s17372_s14 + $0x30] sm:$0xff]   ;;  %v15729_v32 = vld [vmem:[%s17372_s14 + $0x38] sm:$0xff]   ;;  %v15734_v48 = vld [vmem:[%s17372_s14 + $0x100] sm:$0xff]  }
  0xce   : > { %13954 = vmatpush3.bf16.msra.mxu0 %v15709_v11  ;;  %v15726_v28 = vld [vmem:[%s17372_s14 + $0xb0] sm:$0xff]   ;;  %v15730_v33 = vld [vmem:[%s17372_s14 + $0xb8] sm:$0xff]   ;;  %v15735_v50 = vld [vmem:[%s17372_s14 + $0x180] sm:$0xff]  }
  0xcf   : > { %13976 = vmatpush3.bf16.msra.mxu1 %v15710_v12  ;;  %13955 = vmatprep.subr.bf16.mxu0 %v15711_v13  ;;  %v416_v35 = vld [vmem:[%s17442_s18] sm:$0xff]  ;;  %v15736_v53 = vld [vmem:[%s17372_s14 + $0x148] sm:$0xff]   ;;  %v15740_v59 = vld [vmem:[%s17372_s14 + $0x150] sm:$0xff]  }
  0xd0   : > { %13977 = vmatprep.subr.bf16.mxu1 %v15712_v14  ;;  %v2497_v40 = vcombine.high %v416_v35, %v416_v35  ;;  %v2504_v43 = vrot.slane %v416_v35, %v17448_v42  ;;  %v15737_v55 = vld [vmem:[%s17372_s14 + $0x1c8] sm:$0xff]   ;;  %v15741_v60 = vld [vmem:[%s17372_s14 + $0x1d0] sm:$0xff]   ;;  %v15744_v63 = vld [vmem:[%s17372_s14 + $0x158] sm:$0xff]  }
  0xd1   : > { %v15738_v56 = vld [vmem:[%s17372_s14 + $0x108] sm:$0xff]   ;;  %v15742_v61 = vld [vmem:[%s17372_s14 + $0x110] sm:$0xff]   ;;  %v15745_v0 = vld [vmem:[%s17372_s14 + $0x1d8] sm:$0xff]  }
  0xd2   : > { %13956 = vmatpush3.bf16.msra.mxu0 %v15713_v15  ;;  %v17452_v44 = vrot.slane %v2497_v40, %v17448_v42  ;;  %v2512_v45 = vcombine.high %v2504_v43, %v2504_v43  ;;  %v2520_v46 = vrot.slane %v2504_v43, %v17448_v42  ;;  %v15739_v58 = vld [vmem:[%s17372_s14 + $0x188] sm:$0xff]   ;;  %v15743_v62 = vld [vmem:[%s17372_s14 + $0x190] sm:$0xff]   ;;  %v15746_v1 = vld [vmem:[%s17372_s14 + $0x118] sm:$0xff]  }
  0xd3   : > { %13978 = vmatpush3.bf16.msra.mxu1 %v15714_v16  ;;  %13957 = vmatprep.subr.bf16.mxu0 %v15715_v17  ;;  %v15747_v2 = vld [vmem:[%s17372_s14 + $0x198] sm:$0xff]   ;;  %v15748_v3 = vld [vmem:[%s17372_s14 + $0x160] sm:$0xff]   ;;  %v15752_v7 = vld [vmem:[%s17372_s14 + $0x168] sm:$0xff]  }
  0xd4   : > { %13979 = vmatprep.subr.bf16.mxu1 %v15716_v18  ;;  %v2513_v47 = vcombine.high %v17452_v44, %v17452_v44  ;;  %v2534_v49 = vrot.slane %v2512_v45, %v17448_v42  ;;  %v2542_v52 = vcombine.high %v2520_v46, %v2520_v46  ;;  %v15749_v4 = vld [vmem:[%s17372_s14 + $0x1e0] sm:$0xff]   ;;  %v15753_v8 = vld [vmem:[%s17372_s14 + $0x1e8] sm:$0xff]   ;;  %v15756_v11 = vld [vmem:[%s17372_s14 + $0x170] sm:$0xff]  }
  0xd5   : > { %v15750_v5 = vld [vmem:[%s17372_s14 + $0x120] sm:$0xff]   ;;  %v15754_v9 = vld [vmem:[%s17372_s14 + $0x128] sm:$0xff]   ;;  %v15757_v12 = vld [vmem:[%s17372_s14 + $0x1f0] sm:$0xff]  }
  0xd6   : > { %13958 = vmatpush3.bf16.msra.mxu0 %v15717_v19  ;;  %v2541_v51 = vrot.slane %v2513_v47, %v17448_v42  ;;  %9585 = vmatprep.mubr.bf16.mxu0 %v2534_v49  ;;  %v2544_v54 = vcombine.high %v2534_v49, %v2534_v49  ;;  %v15751_v6 = vld [vmem:[%s17372_s14 + $0x1a0] sm:$0xff]   ;;  %v15755_v10 = vld [vmem:[%s17372_s14 + $0x1a8] sm:$0xff]   ;;  %v15758_v13 = vld [vmem:[%s17372_s14 + $0x130] sm:$0xff]   ;;  %v2527_v19 = vrot.slane %v17452_v44, %v17448_v42 }
  0xd7   : > { %13980 = vmatpush3.bf16.msra.mxu1 %v15718_v20  ;;  %13959 = vmatprep.subr.bf16.mxu0 %v15719_v21  ;;  %v15759_v14 = vld [vmem:[%s17372_s14 + $0x1b0] sm:$0xff]   ;;  %v15760_v15 = vld [vmem:[%s17372_s14 + $0x178] sm:$0xff]   ;;  %v15764_v20 = vld [vmem:[%s17372_s14 + $0x240] sm:$0xff]  }
  0xd8   : > { %13981 = vmatprep.subr.bf16.mxu1 %v15720_v22  ;;  %v2545_v57 = vcombine.high %v2541_v51, %v2541_v51  ;;  %9625 = vmatprep.mubr.bf16.mxu1 %v2544_v54  ;;  %v15761_v16 = vld [vmem:[%s17372_s14 + $0x1f8] sm:$0xff]   ;;  %v15765_v21 = vld [vmem:[%s17372_s14 + $0x2c0] sm:$0xff]   ;;  %v15772_v29 = vld [vmem:[%s17372_s14 + $0x250] sm:$0xff]  }
  0xd9   : > { %v15762_v17 = vld [vmem:[%s17372_s14 + $0x138] sm:$0xff]   ;;  %v15766_v22 = vld [vmem:[%s17372_s14 + $0x200] sm:$0xff]   ;;  %v15784_v43 = vld [vmem:[%s17372_s14 + $0x268] sm:$0xff]  }
  0xda   : > { %13960 = vmatpush3.bf16.msra.mxu0 %v15721_v23  ;;  %v15763_v18 = vld [vmem:[%s17372_s14 + $0x1b8] sm:$0xff]   ;;  %v15767_v23 = vld [vmem:[%s17372_s14 + $0x280] sm:$0xff]   ;;  %v15785_v44 = vld [vmem:[%s17372_s14 + $0x2e8] sm:$0xff]  }
  0xdb   : > { %13982 = vmatpush3.bf16.msra.mxu1 %v15722_v24  ;;  %13961 = vmatprep.subr.bf16.mxu0 %v15723_v25  ;;  %v2543_v24 = vcombine.high %v2527_v19, %v2527_v19  ;;  %v15768_v25 = vld [vmem:[%s17372_s14 + $0x248] sm:$0xff]   ;;  %v15777_v35 = vld [vmem:[%s17372_s14 + $0x2d8] sm:$0xff]   ;;  %v15780_v38 = vld [vmem:[%s17372_s14 + $0x260] sm:$0xff]  }
  0xdc   : > { %13983 = vmatprep.subr.bf16.mxu1 %v15724_v26  ;;  %v15769_v26 = vld [vmem:[%s17372_s14 + $0x2c8] sm:$0xff]   ;;  %v15779_v37 = vld [vmem:[%s17372_s14 + $0x298] sm:$0xff]   ;;  %v15782_v40 = vld [vmem:[%s17372_s14 + $0x220] sm:$0xff]  }
  0xdd   : > { %v15783_v41 = vld [vmem:[%s17372_s14 + $0x2a0] sm:$0xff]   ;;  %v15786_v45 = vld [vmem:[%s17372_s14 + $0x228] sm:$0xff]   ;;  %v15788_v47 = vld [vmem:[%s17372_s14 + $0x270] sm:$0xff]  }
  0xde   : > { %13962 = vmatpush3.bf16.msra.mxu0 %v15725_v27  ;;  %v15770_v27 = vld [vmem:[%s17372_s14 + $0x208] sm:$0xff]   ;;  %v15789_v49 = vld [vmem:[%s17372_s14 + $0x2f0] sm:$0xff]  }
  0xdf   : > { %13984 = vmatpush3.bf16.msra.mxu1 %v15726_v28  ;;  %13963 = vmatprep.subr.bf16.mxu0 %v15727_v30  ;;  %v15771_v28 = vld [vmem:[%s17372_s14 + $0x288] sm:$0xff]   ;;  %v15773_v30 = vld [vmem:[%s17372_s14 + $0x2d0] sm:$0xff]  }
  0xe0   : > { %13985 = vmatprep.subr.bf16.mxu1 %v15728_v31  ;;  %v15774_v31 = vld [vmem:[%s17372_s14 + $0x210] sm:$0xff]  }
  0xe2   : > { %13964 = vmatpush3.bf16.msra.mxu0 %v15729_v32  ;;  %v15775_v32 = vld [vmem:[%s17372_s14 + $0x290] sm:$0xff]  }
  0xe3   : > { %13986 = vmatpush3.bf16.msra.mxu1 %v15730_v33  ;;  %13993 = vmatprep.subr.bf16.mxu0 %v15732_v36  ;;  %v15776_v33 = vld [vmem:[%s17372_s14 + $0x258] sm:$0xff]  }
  0xe4   : > { %14015 = vmatprep.subr.bf16.mxu1 %v15733_v39  ;;  %v15778_v36 = vld [vmem:[%s17372_s14 + $0x218] sm:$0xff]   ;;  %v15781_v39 = vld [vmem:[%s17372_s14 + $0x2e0] sm:$0xff]  }
  0xe5   : > { %9586 = vmatmul.mubr.bf16.vlgmr.msra.gmra.mrb[0].mxu0 %v2520_v46  ;;  %v15787_v46 = vld [vmem:[%s17372_s14 + $0x2a8] sm:$0xff]  }
  0xe6   : > { %13994 = vmatpush3.bf16.msra.mxu0 %v15734_v48  ;;  %9626 = vmatmul.mubr.bf16.vlgmr.msra.gmra.mrb[0].mxu1 %v2542_v52  ;;  %v417_v48 = vld [vmem:[%s17442_s18 + $0x8] sm:$0xff]  ;;  %v15790_v52 = vld [vmem:[%s17372_s14 + $0x230] sm:$0xff]  }
  0xe7   : > { %13995 = vmatprep.subr.bf16.mxu0 %v15736_v53  ;;  %14016 = vmatpush3.bf16.msra.mxu1 %v15735_v50  ;;  %v2553_v50 = vrot.slane %v417_v48, %v17448_v42  ;;  %v15791_v53 = vld [vmem:[%s17372_s14 + $0x2b0] sm:$0xff]  }
  0xe8   : > { %9665 = vmatprep.mubr.bf16.mxu0 %v2541_v51  ;;  %14017 = vmatprep.subr.bf16.mxu1 %v15737_v55  ;;  %v2546_v51 = vcombine.high %v417_v48, %v417_v48  ;;  %v15838_v48 = vld [vmem:[%s17372_s14 + $0x4d0] sm:$0xff]  }
  0xe9   : > { %9705 = vmatprep.mubr.bf16.mxu1 %v2545_v57  ;;  %v2561_v54 = vcombine.high %v2553_v50, %v2553_v50  ;;  %v15793_v57 = vld [vmem:[%s17372_s14 + $0x2f8] sm:$0xff]  }
  0xea   : > { %13996 = vmatpush3.bf16.msra.mxu0 %v15738_v56  ;;  %v17522_v55 = vrot.slane %v2546_v51, %v17448_v42  ;;  %v15792_v56 = vld [vmem:[%s17372_s14 + $0x278] sm:$0xff]  }
  0xeb   : > { %13997 = vmatprep.subr.bf16.mxu0 %v15740_v59  ;;  %14018 = vmatpush3.bf16.msra.mxu1 %v15739_v58  ;;  %v2583_v58 = vrot.slane %v2561_v54, %v17448_v42  ;;  %v15841_v51 = vld [vmem:[%s17372_s14 + $0x458] sm:$0xff]  }
  0xec   : > { %14019 = vmatprep.subr.bf16.mxu1 %v15741_v60  ;;  %v2562_v59 = vcombine.high %v17522_v55, %v17522_v55  ;;  %v15794_v60 = vld [vmem:[%s17372_s14 + $0x238] sm:$0xff]  }
  0xed   : > { %v15844_v54 = vld [vmem:[%s17372_s14 + $0x498] sm:$0xff]  }
  0xee   : > { %13998 = vmatpush3.bf16.msra.mxu0 %v15742_v61  ;;  %v15795_v61 = vld [vmem:[%s17372_s14 + $0x2b8] sm:$0xff]  }
  0xef   : > { %13999 = vmatprep.subr.bf16.mxu0 %v15744_v63  ;;  %14020 = vmatpush3.bf16.msra.mxu1 %v15743_v62  ;;  %v2593_v62 = vcombine.high %v2583_v58, %v2583_v58  ;;  %v2569_v63 = vrot.slane %v2553_v50, %v17448_v42  ;;  %v15840_v50 = vld [vmem:[%s17372_s14 + $0x490] sm:$0xff]  }
  0xf0   : > { %14021 = vmatprep.subr.bf16.mxu1 %v15745_v0  ;;  %v15796_v0 = vld [vmem:[%s17372_s14 + $0x340] sm:$0xff]  }
  0xf2   : > { %14000 = vmatpush3.bf16.msra.mxu0 %v15746_v1  ;;  %v15797_v1 = vld [vmem:[%s17372_s14 + $0x3c0] sm:$0xff]  }
  0xf3   : > { %14001 = vmatprep.subr.bf16.mxu0 %v15748_v3  ;;  %14022 = vmatpush3.bf16.msra.mxu1 %v15747_v2  ;;  %v2590_v2 = vrot.slane %v2562_v59, %v17448_v42  ;;  %v15798_v3 = vld [vmem:[%s17372_s14 + $0x300] sm:$0xff]   ;;  %v15849_v59 = vld [vmem:[%s17372_s14 + $0x468] sm:$0xff]  }
  0xf4   : > { %14023 = vmatprep.subr.bf16.mxu1 %v15749_v4  ;;  %v15799_v4 = vld [vmem:[%s17372_s14 + $0x380] sm:$0xff]  }
  0xf6   : > { %14002 = vmatpush3.bf16.msra.mxu0 %v15750_v5  ;;  %v2591_v5 = vcombine.high %v2569_v63, %v2569_v63 }
  0xf7   : > { %14003 = vmatprep.subr.bf16.mxu0 %v15752_v7  ;;  %14024 = vmatpush3.bf16.msra.mxu1 %v15751_v6  ;;  %v15800_v6 = vld [vmem:[%s17372_s14 + $0x348] sm:$0xff]  }
  0xf8   : > { %14025 = vmatprep.subr.bf16.mxu1 %v15753_v8  ;;  %v15801_v7 = vld [vmem:[%s17372_s14 + $0x3c8] sm:$0xff]   ;;  %v2594_v8 = vcombine.high %v2590_v2, %v2590_v2 }
  0xfa   : > { %14004 = vmatpush3.bf16.msra.mxu0 %v15754_v9  ;;  %v15802_v9 = vld [vmem:[%s17372_s14 + $0x308] sm:$0xff]  }
  0xfb   : > { %14005 = vmatprep.subr.bf16.mxu0 %v15756_v11  ;;  %14026 = vmatpush3.bf16.msra.mxu1 %v15755_v10  ;;  %v15803_v10 = vld [vmem:[%s17372_s14 + $0x388] sm:$0xff]   ;;  %v15804_v11 = vld [vmem:[%s17372_s14 + $0x350] sm:$0xff]  }
  0xfc   : > { %14027 = vmatprep.subr.bf16.mxu1 %v15757_v12  ;;  %v15805_v12 = vld [vmem:[%s17372_s14 + $0x3d0] sm:$0xff]  }
  0xfe   : > { %14006 = vmatpush3.bf16.msra.mxu0 %v15758_v13  ;;  %v15806_v13 = vld [vmem:[%s17372_s14 + $0x310] sm:$0xff]  }
  0xff   : > { %14007 = vmatprep.subr.bf16.mxu0 %v15760_v15  ;;  %14028 = vmatpush3.bf16.msra.mxu1 %v15759_v14  ;;  %v15807_v14 = vld [vmem:[%s17372_s14 + $0x390] sm:$0xff]   ;;  %v15808_v15 = vld [vmem:[%s17372_s14 + $0x358] sm:$0xff]  }
 0x100   : > { %14029 = vmatprep.subr.bf16.mxu1 %v15761_v16  ;;  %v15809_v16 = vld [vmem:[%s17372_s14 + $0x3d8] sm:$0xff]  }
 0x102   : > { %14008 = vmatpush3.bf16.msra.mxu0 %v15762_v17  ;;  %v15810_v17 = vld [vmem:[%s17372_s14 + $0x318] sm:$0xff]  }
 0x103   : > { %14037 = vmatprep.subr.bf16.mxu0 %v15764_v20  ;;  %14030 = vmatpush3.bf16.msra.mxu1 %v15763_v18  ;;  %v15811_v18 = vld [vmem:[%s17372_s14 + $0x398] sm:$0xff]   ;;  %v15813_v20 = vld [vmem:[%s17372_s14 + $0x3e0] sm:$0xff]  }
 0x104   : > { %14059 = vmatprep.subr.bf16.mxu1 %v15765_v21  ;;  %v15814_v21 = vld [vmem:[%s17372_s14 + $0x320] sm:$0xff]  }
 0x105   : > { %9666 = vmatmul.mubr.bf16.vlgmr.msra.gmra.mrb[4].mxu0 %v2527_v19  ;;  %v15812_v19 = vld [vmem:[%s17372_s14 + $0x360] sm:$0xff]  }
 0x106   : > { %14038 = vmatpush3.bf16.msra.mxu0 %v15766_v22  ;;  %9706 = vmatmul.mubr.bf16.vlgmr.msra.gmra.mrb[4].mxu1 %v2543_v24  ;;  %v15815_v22 = vld [vmem:[%s17372_s14 + $0x3a0] sm:$0xff]   ;;  %v15817_v24 = vld [vmem:[%s17372_s14 + $0x3e8] sm:$0xff]  }
 0x107   : > { %14039 = vmatprep.subr.bf16.mxu0 %v15768_v25  ;;  %14060 = vmatpush3.bf16.msra.mxu1 %v15767_v23  ;;  %v15816_v23 = vld [vmem:[%s17372_s14 + $0x368] sm:$0xff]  }
 0x108   : > { %14061 = vmatprep.subr.bf16.mxu1 %v15769_v26  ;;  %9745 = vmatprep.mubr.bf16.mxu0 %v2583_v58  ;;  %v15818_v25 = vld [vmem:[%s17372_s14 + $0x328] sm:$0xff]   ;;  %v15848_v58 = vld [vmem:[%s17372_s14 + $0x4a0] sm:$0xff]  }
 0x109   : > { %9785 = vmatprep.mubr.bf16.mxu1 %v2593_v62  ;;  %v15819_v26 = vld [vmem:[%s17372_s14 + $0x3a8] sm:$0xff]  }
 0x10a   : > { %14040 = vmatpush3.bf16.msra.mxu0 %v15770_v27  ;;  %v15820_v27 = vld [vmem:[%s17372_s14 + $0x370] sm:$0xff]   ;;  %v15852_v62 = vld [vmem:[%s17372_s14 + $0x4a8] sm:$0xff]  }
 0x10b   : > { %14041 = vmatprep.subr.bf16.mxu0 %v15772_v29  ;;  %14062 = vmatpush3.bf16.msra.mxu1 %v15771_v28  ;;  %v15821_v28 = vld [vmem:[%s17372_s14 + $0x3f0] sm:$0xff]  }
 0x10c   : > { %14063 = vmatprep.subr.bf16.mxu1 %v15773_v30  ;;  %v15822_v29 = vld [vmem:[%s17372_s14 + $0x330] sm:$0xff]  }
 0x10d   : > { %v15823_v30 = vld [vmem:[%s17372_s14 + $0x3b0] sm:$0xff]  }
 0x10e   : > { %14042 = vmatpush3.bf16.msra.mxu0 %v15774_v31  ;;  %v15824_v31 = vld [vmem:[%s17372_s14 + $0x378] sm:$0xff]  }
 0x10f   : > { %14043 = vmatprep.subr.bf16.mxu0 %v15776_v33  ;;  %14064 = vmatpush3.bf16.msra.mxu1 %v15775_v32  ;;  %v15825_v32 = vld [vmem:[%s17372_s14 + $0x3f8] sm:$0xff]  }
 0x110   : > { %14065 = vmatprep.subr.bf16.mxu1 %v15777_v35  ;;  %v15826_v33 = vld [vmem:[%s17372_s14 + $0x338] sm:$0xff]  }
 0x111   : > { %v15827_v35 = vld [vmem:[%s17372_s14 + $0x3b8] sm:$0xff]  }
 0x112   : > { %14044 = vmatpush3.bf16.msra.mxu0 %v15778_v36  ;;  %v2576_v36 = vrot.slane %v17522_v55, %v17448_v42  ;;  %v15845_v55 = vld [vmem:[%s17372_s14 + $0x460] sm:$0xff]  }
 0x113   : > { %14045 = vmatprep.subr.bf16.mxu0 %v15780_v38  ;;  %14066 = vmatpush3.bf16.msra.mxu1 %v15779_v37  ;;  %v15829_v37 = vld [vmem:[%s17372_s14 + $0x440] sm:$0xff]  }
 0x114   : > { %14067 = vmatprep.subr.bf16.mxu1 %v15781_v39  ;;  %v15830_v38 = vld [vmem:[%s17372_s14 + $0x4c0] sm:$0xff]  }
 0x115   : > { %v15831_v39 = vld [vmem:[%s17372_s14 + $0x400] sm:$0xff]  }
 0x116   : > { %14046 = vmatpush3.bf16.msra.mxu0 %v15782_v40  ;;  %v15832_v40 = vld [vmem:[%s17372_s14 + $0x480] sm:$0xff]  }
 0x117   : > { %14047 = vmatprep.subr.bf16.mxu0 %v15784_v43  ;;  %14068 = vmatpush3.bf16.msra.mxu1 %v15783_v41  ;;  %v2592_v41 = vcombine.high %v2576_v36, %v2576_v36  ;;  %v15833_v43 = vld [vmem:[%s17372_s14 + $0x448] sm:$0xff]  }
 0x118   : > { %14069 = vmatprep.subr.bf16.mxu1 %v15785_v44  ;;  %v15834_v44 = vld [vmem:[%s17372_s14 + $0x4c8] sm:$0xff]  }
 0x11a   : > { %14048 = vmatpush3.bf16.msra.mxu0 %v15786_v45  ;;  %v15835_v45 = vld [vmem:[%s17372_s14 + $0x408] sm:$0xff]  }
 0x11b   : > { %14049 = vmatprep.subr.bf16.mxu0 %v15788_v47  ;;  %14070 = vmatpush3.bf16.msra.mxu1 %v15787_v46  ;;  %v15836_v46 = vld [vmem:[%s17372_s14 + $0x488] sm:$0xff]   ;;  %v15837_v47 = vld [vmem:[%s17372_s14 + $0x450] sm:$0xff]  }
 0x11c   : > { %14071 = vmatprep.subr.bf16.mxu1 %v15789_v49  ;;  %v15839_v49 = vld [vmem:[%s17372_s14 + $0x410] sm:$0xff]  }
 0x11e   : > { %14050 = vmatpush3.bf16.msra.mxu0 %v15790_v52  ;;  %v15842_v52 = vld [vmem:[%s17372_s14 + $0x4d8] sm:$0xff]  }
 0x11f   : > { %14051 = vmatprep.subr.bf16.mxu0 %v15792_v56  ;;  %14072 = vmatpush3.bf16.msra.mxu1 %v15791_v53  ;;  %v15843_v53 = vld [vmem:[%s17372_s14 + $0x418] sm:$0xff]   ;;  %v15846_v56 = vld [vmem:[%s17372_s14 + $0x4e0] sm:$0xff]  }
 0x120   : > { %14073 = vmatprep.subr.bf16.mxu1 %v15793_v57  ;;  %v15847_v57 = vld [vmem:[%s17372_s14 + $0x420] sm:$0xff]  }
 0x122   : > { %14052 = vmatpush3.bf16.msra.mxu0 %v15794_v60  ;;  %v15850_v60 = vld [vmem:[%s17372_s14 + $0x4e8] sm:$0xff]  }
 0x123   : > { %14081 = vmatprep.subr.bf16.mxu0 %v15796_v0  ;;  %14074 = vmatpush3.bf16.msra.mxu1 %v15795_v61  ;;  %v15851_v61 = vld [vmem:[%s17372_s14 + $0x428] sm:$0xff]  }
 0x124   : > { %14103 = vmatprep.subr.bf16.mxu1 %v15797_v1  ;;  %v418_v0 = vld [vmem:[%s17442_s18 + $0x10] sm:$0xff] }
 0x125   : > { %9746 = vmatmul.mubr.bf16.vlgmr.msra.gmra.mrb[8].mxu0 %v2569_v63  ;;  %v15853_v63 = vld [vmem:[%s17372_s14 + $0x470] sm:$0xff]  }
 0x126   : > { %14082 = vmatpush3.bf16.msra.mxu0 %v15798_v3  ;;  %9825 = vmatprep.mubr.bf16.mxu0 %v2590_v2  ;;  %v15854_v1 = vld [vmem:[%s17372_s14 + $0x4f0] sm:$0xff]   ;;  %v2602_v2 = vrot.slane %v418_v0, %v17448_v42  ;;  %v2595_v3 = vcombine.high %v418_v0, %v418_v0 }
 0x127   : > { %9786 = vmatmul.mubr.bf16.vlgmr.msra.gmra.mrb[8].mxu1 %v2591_v5  ;;  %14083 = vmatprep.subr.bf16.mxu0 %v15800_v6  ;;  %v15856_v5 = vld [vmem:[%s17372_s14 + $0x4b0] sm:$0xff]  }
 0x128   : > { %14104 = vmatpush3.bf16.msra.mxu1 %v15799_v4  ;;  %9865 = vmatprep.mubr.bf16.mxu1 %v2594_v8  ;;  %v15855_v4 = vld [vmem:[%s17372_s14 + $0x430] sm:$0xff]   ;;  %v2610_v6 = vcombine.high %v2602_v2, %v2602_v2  ;;  %v15857_v8 = vld [vmem:[%s17372_s14 + $0x478] sm:$0xff]  }
 0x129   : > { %14105 = vmatprep.subr.bf16.mxu1 %v15801_v7  ;;  %v17598_v7 = vrot.slane %v2595_v3, %v17448_v42  ;;  %v15903_v0 = vld [vmem:[%s17372_s14 + $0x6d0] sm:$0xff]   ;;  %v15906_v3 = vld [vmem:[%s17372_s14 + $0x658] sm:$0xff]  }
 0x12a   : > { %14084 = vmatpush3.bf16.msra.mxu0 %v15802_v9  ;;  %v15858_v9 = vld [vmem:[%s17372_s14 + $0x4f8] sm:$0xff]  }
 0x12b   : > { %14085 = vmatprep.subr.bf16.mxu0 %v15804_v11  ;;  %v2611_v11 = vcombine.high %v17598_v7, %v17598_v7 }
 0x12c   : > { %14106 = vmatpush3.bf16.msra.mxu1 %v15803_v10  ;;  %v2632_v10 = vrot.slane %v2610_v6, %v17448_v42  ;;  %v15909_v6 = vld [vmem:[%s17372_s14 + $0x698] sm:$0xff]  }
 0x12d   : > { %14107 = vmatprep.subr.bf16.mxu1 %v15805_v12  ;;  %v15859_v12 = vld [vmem:[%s17372_s14 + $0x438] sm:$0xff]  }
 0x12e   : > { %14086 = vmatpush3.bf16.msra.mxu0 %v15806_v13  ;;  %v15860_v13 = vld [vmem:[%s17372_s14 + $0x4b8] sm:$0xff]  }
 0x12f   : > { %14087 = vmatprep.subr.bf16.mxu0 %v15808_v15  ;;  %v2618_v15 = vrot.slane %v2602_v2, %v17448_v42  ;;  %v15905_v2 = vld [vmem:[%s17372_s14 + $0x690] sm:$0xff]  }
 0x130   : > { %14108 = vmatpush3.bf16.msra.mxu1 %v15807_v14  ;;  %v2642_v14 = vcombine.high %v2632_v10, %v2632_v10 }
 0x131   : > { %14109 = vmatprep.subr.bf16.mxu1 %v15809_v16  ;;  %v15861_v16 = vld [vmem:[%s17372_s14 + $0x540] sm:$0xff]  }
 0x132   : > { %14088 = vmatpush3.bf16.msra.mxu0 %v15810_v17  ;;  %v15862_v17 = vld [vmem:[%s17372_s14 + $0x5c0] sm:$0xff]  }
 0x133   : > { %14089 = vmatprep.subr.bf16.mxu0 %v15812_v19  ;;  %v15863_v19 = vld [vmem:[%s17372_s14 + $0x500] sm:$0xff]  }
 0x134   : > { %14110 = vmatpush3.bf16.msra.mxu1 %v15811_v18  ;;  %v2639_v18 = vrot.slane %v2611_v11, %v17448_v42  ;;  %v15914_v11 = vld [vmem:[%s17372_s14 + $0x668] sm:$0xff]  }
 0x135   : > { %14111 = vmatprep.subr.bf16.mxu1 %v15813_v20  ;;  %v15864_v20 = vld [vmem:[%s17372_s14 + $0x580] sm:$0xff]  }
 0x136   : > { %14090 = vmatpush3.bf16.msra.mxu0 %v15814_v21  ;;  %v2640_v21 = vcombine.high %v2618_v15, %v2618_v15 }
 0x137   : > { %14091 = vmatprep.subr.bf16.mxu0 %v15816_v23  ;;  %v15866_v23 = vld [vmem:[%s17372_s14 + $0x5c8] sm:$0xff]  }
 0x138   : > { %14112 = vmatpush3.bf16.msra.mxu1 %v15815_v22  ;;  %v15865_v22 = vld [vmem:[%s17372_s14 + $0x548] sm:$0xff]  }
 0x139   : > { %14113 = vmatprep.subr.bf16.mxu1 %v15817_v24  ;;  %v2643_v24 = vcombine.high %v2639_v18, %v2639_v18 }
 0x13a   : > { %14092 = vmatpush3.bf16.msra.mxu0 %v15818_v25  ;;  %v15867_v25 = vld [vmem:[%s17372_s14 + $0x508] sm:$0xff]  }
 0x13b   : > { %14093 = vmatprep.subr.bf16.mxu0 %v15820_v27  ;;  %v15869_v27 = vld [vmem:[%s17372_s14 + $0x550] sm:$0xff]  }
 0x13c   : > { %14114 = vmatpush3.bf16.msra.mxu1 %v15819_v26  ;;  %v15868_v26 = vld [vmem:[%s17372_s14 + $0x588] sm:$0xff]  }
 0x13d   : > { %14115 = vmatprep.subr.bf16.mxu1 %v15821_v28  ;;  %v15870_v28 = vld [vmem:[%s17372_s14 + $0x5d0] sm:$0xff]  }
 0x13e   : > { %14094 = vmatpush3.bf16.msra.mxu0 %v15822_v29  ;;  %v15871_v29 = vld [vmem:[%s17372_s14 + $0x510] sm:$0xff]  }
 0x13f   : > { %14095 = vmatprep.subr.bf16.mxu0 %v15824_v31  ;;  %v15873_v31 = vld [vmem:[%s17372_s14 + $0x558] sm:$0xff]  }
 0x140   : > { %14116 = vmatpush3.bf16.msra.mxu1 %v15823_v30  ;;  %v15872_v30 = vld [vmem:[%s17372_s14 + $0x590] sm:$0xff]  }
 0x141   : > { %14117 = vmatprep.subr.bf16.mxu1 %v15825_v32  ;;  %v15874_v32 = vld [vmem:[%s17372_s14 + $0x5d8] sm:$0xff]  }
 0x142   : > { %14096 = vmatpush3.bf16.msra.mxu0 %v15826_v33  ;;  %v15875_v33 = vld [vmem:[%s17372_s14 + $0x518] sm:$0xff]  }
 0x143   : > { %14125 = vmatprep.subr.bf16.mxu0 %v15829_v37  ;;  %v15878_v37 = vld [vmem:[%s17372_s14 + $0x5e0] sm:$0xff]  }
 0x144   : > { %14118 = vmatpush3.bf16.msra.mxu1 %v15827_v35  ;;  %v15876_v35 = vld [vmem:[%s17372_s14 + $0x598] sm:$0xff]  }
 0x145   : > { %9826 = vmatmul.mubr.bf16.vlgmr.msra.gmra.mrb[12].mxu0 %v2576_v36  ;;  %14147 = vmatprep.subr.bf16.mxu1 %v15830_v38  ;;  %v15877_v36 = vld [vmem:[%s17372_s14 + $0x560] sm:$0xff]  }
 0x146   : > { %14126 = vmatpush3.bf16.msra.mxu0 %v15831_v39  ;;  %9905 = vmatprep.mubr.bf16.mxu0 %v2632_v10  ;;  %v15879_v38 = vld [vmem:[%s17372_s14 + $0x520] sm:$0xff]  }
 0x147   : > { %9866 = vmatmul.mubr.bf16.vlgmr.msra.gmra.mrb[12].mxu1 %v2592_v41  ;;  %14127 = vmatprep.subr.bf16.mxu0 %v15833_v43  ;;  %v15880_v39 = vld [vmem:[%s17372_s14 + $0x5a0] sm:$0xff]   ;;  %v15882_v41 = vld [vmem:[%s17372_s14 + $0x5e8] sm:$0xff]  }
 0x148   : > { %14148 = vmatpush3.bf16.msra.mxu1 %v15832_v40  ;;  %9945 = vmatprep.mubr.bf16.mxu1 %v2642_v14  ;;  %v15881_v40 = vld [vmem:[%s17372_s14 + $0x568] sm:$0xff]   ;;  %v15913_v10 = vld [vmem:[%s17372_s14 + $0x6a0] sm:$0xff]  }
 0x149   : > { %14149 = vmatprep.subr.bf16.mxu1 %v15834_v44  ;;  %v15883_v43 = vld [vmem:[%s17372_s14 + $0x528] sm:$0xff]  }
 0x14a   : > { %14128 = vmatpush3.bf16.msra.mxu0 %v15835_v45  ;;  %v15884_v44 = vld [vmem:[%s17372_s14 + $0x5a8] sm:$0xff]   ;;  %v15885_v45 = vld [vmem:[%s17372_s14 + $0x570] sm:$0xff]  }
 0x14b   : > { %14129 = vmatprep.subr.bf16.mxu0 %v15837_v47  ;;  %v15887_v47 = vld [vmem:[%s17372_s14 + $0x530] sm:$0xff]   ;;  %v15917_v14 = vld [vmem:[%s17372_s14 + $0x6a8] sm:$0xff]  }
 0x14c   : > { %14150 = vmatpush3.bf16.msra.mxu1 %v15836_v46  ;;  %v15886_v46 = vld [vmem:[%s17372_s14 + $0x5f0] sm:$0xff]  }
 0x14d   : > { %14151 = vmatprep.subr.bf16.mxu1 %v15838_v48  ;;  %v15888_v48 = vld [vmem:[%s17372_s14 + $0x5b0] sm:$0xff]  }
 0x14e   : > { %14130 = vmatpush3.bf16.msra.mxu0 %v15839_v49  ;;  %v15889_v49 = vld [vmem:[%s17372_s14 + $0x578] sm:$0xff]  }
 0x14f   : > { %14131 = vmatprep.subr.bf16.mxu0 %v15841_v51  ;;  %v15891_v51 = vld [vmem:[%s17372_s14 + $0x538] sm:$0xff]  }
 0x150   : > { %14152 = vmatpush3.bf16.msra.mxu1 %v15840_v50  ;;  %v15890_v50 = vld [vmem:[%s17372_s14 + $0x5f8] sm:$0xff]  }
 0x151   : > { %14153 = vmatprep.subr.bf16.mxu1 %v15842_v52  ;;  %v15892_v52 = vld [vmem:[%s17372_s14 + $0x5b8] sm:$0xff]  }
 0x152   : > { %14132 = vmatpush3.bf16.msra.mxu0 %v15843_v53  ;;  %v2625_v53 = vrot.slane %v17598_v7, %v17448_v42  ;;  %v15910_v7 = vld [vmem:[%s17372_s14 + $0x660] sm:$0xff]  }
 0x153   : > { %14133 = vmatprep.subr.bf16.mxu0 %v15845_v55  ;;  %v15895_v55 = vld [vmem:[%s17372_s14 + $0x6c0] sm:$0xff]  }
 0x154   : > { %14154 = vmatpush3.bf16.msra.mxu1 %v15844_v54  ;;  %v15894_v54 = vld [vmem:[%s17372_s14 + $0x640] sm:$0xff]  }
 0x155   : > { %14155 = vmatprep.subr.bf16.mxu1 %v15846_v56  ;;  %v15896_v56 = vld [vmem:[%s17372_s14 + $0x600] sm:$0xff]  }
 0x156   : > { %14134 = vmatpush3.bf16.msra.mxu0 %v15847_v57  ;;  %v15897_v57 = vld [vmem:[%s17372_s14 + $0x680] sm:$0xff]  }
 0x157   : > { %14135 = vmatprep.subr.bf16.mxu0 %v15849_v59  ;;  %v15898_v59 = vld [vmem:[%s17372_s14 + $0x648] sm:$0xff]  }
 0x158   : > { %14156 = vmatpush3.bf16.msra.mxu1 %v15848_v58  ;;  %v2641_v58 = vcombine.high %v2625_v53, %v2625_v53 }
 0x159   : > { %14157 = vmatprep.subr.bf16.mxu1 %v15850_v60  ;;  %v15899_v60 = vld [vmem:[%s17372_s14 + $0x6c8] sm:$0xff]  }
 0x15a   : > { %14136 = vmatpush3.bf16.msra.mxu0 %v15851_v61  ;;  %v15900_v61 = vld [vmem:[%s17372_s14 + $0x608] sm:$0xff]  }
 0x15b   : > { %14137 = vmatprep.subr.bf16.mxu0 %v15853_v63  ;;  %v15902_v63 = vld [vmem:[%s17372_s14 + $0x650] sm:$0xff]  }
 0x15c   : > { %14158 = vmatpush3.bf16.msra.mxu1 %v15852_v62  ;;  %v15901_v62 = vld [vmem:[%s17372_s14 + $0x688] sm:$0xff]  }
 0x15d   : > { %14159 = vmatprep.subr.bf16.mxu1 %v15854_v1  ;;  %v15904_v1 = vld [vmem:[%s17372_s14 + $0x610] sm:$0xff]  }
 0x15e   : > { %14138 = vmatpush3.bf16.msra.mxu0 %v15855_v4  ;;  %v15907_v4 = vld [vmem:[%s17372_s14 + $0x6d8] sm:$0xff]  }
 0x15f   : > { %14139 = vmatprep.subr.bf16.mxu0 %v15857_v8  ;;  %v15911_v8 = vld [vmem:[%s17372_s14 + $0x6e0] sm:$0xff]  }
 0x160   : > { %14160 = vmatpush3.bf16.msra.mxu1 %v15856_v5  ;;  %v15908_v5 = vld [vmem:[%s17372_s14 + $0x618] sm:$0xff]  }
 0x161   : > { %14161 = vmatprep.subr.bf16.mxu1 %v15858_v9  ;;  %v15912_v9 = vld [vmem:[%s17372_s14 + $0x620] sm:$0xff]  }
 0x162   : > { %14140 = vmatpush3.bf16.msra.mxu0 %v15859_v12  ;;  %v15915_v12 = vld [vmem:[%s17372_s14 + $0x6e8] sm:$0xff]  }
 0x163   : > { %14169 = vmatprep.subr.bf16.mxu0 %v15861_v16  ;;  %v15919_v16 = vld [vmem:[%s17372_s14 + $0x6f0] sm:$0xff]  }
 0x164   : > { %14162 = vmatpush3.bf16.msra.mxu1 %v15860_v13  ;;  %v15916_v13 = vld [vmem:[%s17372_s14 + $0x628] sm:$0xff]  }
 0x165   : > { %9906 = vmatmul.mubr.bf16.vlgmr.msra.gmra.mrb[16].mxu0 %v2618_v15  ;;  %14191 = vmatprep.subr.bf16.mxu1 %v15862_v17  ;;  %v15918_v15 = vld [vmem:[%s17372_s14 + $0x670] sm:$0xff]  }
 0x166   : > { %14170 = vmatpush3.bf16.msra.mxu0 %v15863_v19  ;;  %9985 = vmatprep.mubr.bf16.mxu0 %v2639_v18  ;;  %v419_v17 = vld [vmem:[%s17442_s18 + $0x18] sm:$0xff] }
 0x167   : > { %9946 = vmatmul.mubr.bf16.vlgmr.msra.gmra.mrb[16].mxu1 %v2640_v21  ;;  %14171 = vmatprep.subr.bf16.mxu0 %v15865_v22  ;;  %v15920_v18 = vld [vmem:[%s17372_s14 + $0x630] sm:$0xff]   ;;  %v2651_v19 = vrot.slane %v419_v17, %v17448_v42  ;;  %v15922_v22 = vld [vmem:[%s17372_s14 + $0x678] sm:$0xff]  }
 0x168   : > { %14192 = vmatpush3.bf16.msra.mxu1 %v15864_v20  ;;  %10025 = vmatprep.mubr.bf16.mxu1 %v2643_v24  ;;  %v2644_v20 = vcombine.high %v419_v17, %v419_v17  ;;  %v15921_v21 = vld [vmem:[%s17372_s14 + $0x6b0] sm:$0xff]   ;;  %v15959_v17 = vld [vmem:[%s17372_s14 + $0x840] sm:$0xff]  }
 0x169   : > { %14193 = vmatprep.subr.bf16.mxu1 %v15866_v23  ;;  %v2659_v23 = vcombine.high %v2651_v19, %v2651_v19 }
 0x16a   : > { %14172 = vmatpush3.bf16.msra.mxu0 %v15867_v25  ;;  %v17675_v24 = vrot.slane %v2644_v20, %v17448_v42  ;;  %v15923_v25 = vld [vmem:[%s17372_s14 + $0x6f8] sm:$0xff]   ;;  %v15962_v20 = vld [vmem:[%s17372_s14 + $0x880] sm:$0xff]  }
 0x16b   : > { %14173 = vmatprep.subr.bf16.mxu0 %v15869_v27  ;;  %v2681_v27 = vrot.slane %v2659_v23, %v17448_v42  ;;  %v15964_v23 = vld [vmem:[%s17372_s14 + $0x8c8] sm:$0xff]  }
 0x16c   : > { %14194 = vmatpush3.bf16.msra.mxu1 %v15868_v26  ;;  %v15924_v26 = vld [vmem:[%s17372_s14 + $0x638] sm:$0xff]  }
 0x16d   : > { %14195 = vmatprep.subr.bf16.mxu1 %v15870_v28  ;;  %v2660_v28 = vcombine.high %v17675_v24, %v17675_v24 }
 0x16e   : > { %14174 = vmatpush3.bf16.msra.mxu0 %v15871_v29  ;;  %v15925_v29 = vld [vmem:[%s17372_s14 + $0x6b8] sm:$0xff]  }
 0x16f   : > { %14175 = vmatprep.subr.bf16.mxu0 %v15873_v31  ;;  %v2667_v31 = vrot.slane %v2651_v19, %v17448_v42  ;;  %v15961_v19 = vld [vmem:[%s17372_s14 + $0x800] sm:$0xff]  }
 0x170   : > { %14196 = vmatpush3.bf16.msra.mxu1 %v15872_v30  ;;  %v2691_v30 = vcombine.high %v2681_v27, %v2681_v27 }
 0x171   : > { %14197 = vmatprep.subr.bf16.mxu1 %v15874_v32  ;;  %v15926_v32 = vld [vmem:[%s17372_s14 + $0x740] sm:$0xff]  }
 0x172   : > { %14176 = vmatpush3.bf16.msra.mxu0 %v15875_v33  ;;  %v15927_v33 = vld [vmem:[%s17372_s14 + $0x7c0] sm:$0xff]  }
 0x173   : > { %14177 = vmatprep.subr.bf16.mxu0 %v15877_v36  ;;  %v15928_v36 = vld [vmem:[%s17372_s14 + $0x700] sm:$0xff]  }
 0x174   : > { %14198 = vmatpush3.bf16.msra.mxu1 %v15876_v35  ;;  %v2688_v35 = vrot.slane %v2660_v28, %v17448_v42  ;;  %v15969_v28 = vld [vmem:[%s17372_s14 + $0x810] sm:$0xff]  }
 0x175   : > { %14199 = vmatprep.subr.bf16.mxu1 %v15878_v37  ;;  %v15929_v37 = vld [vmem:[%s17372_s14 + $0x780] sm:$0xff]  }
 0x176   : > { %14178 = vmatpush3.bf16.msra.mxu0 %v15879_v38  ;;  %v2689_v38 = vcombine.high %v2667_v31, %v2667_v31 }
 0x177   : > { %14179 = vmatprep.subr.bf16.mxu0 %v15881_v40  ;;  %v15931_v40 = vld [vmem:[%s17372_s14 + $0x7c8] sm:$0xff]  }
 0x178   : > { %14200 = vmatpush3.bf16.msra.mxu1 %v15880_v39  ;;  %v15930_v39 = vld [vmem:[%s17372_s14 + $0x748] sm:$0xff]  }
 0x179   : > { %14201 = vmatprep.subr.bf16.mxu1 %v15882_v41  ;;  %v2692_v41 = vcombine.high %v2688_v35, %v2688_v35 }
 0x17a   : > { %14180 = vmatpush3.bf16.msra.mxu0 %v15883_v43  ;;  %v15932_v43 = vld [vmem:[%s17372_s14 + $0x708] sm:$0xff]  }
 0x17b   : > { %14181 = vmatprep.subr.bf16.mxu0 %v15885_v45  ;;  %v15934_v45 = vld [vmem:[%s17372_s14 + $0x750] sm:$0xff]  }
 0x17c   : > { %14202 = vmatpush3.bf16.msra.mxu1 %v15884_v44  ;;  %v15933_v44 = vld [vmem:[%s17372_s14 + $0x788] sm:$0xff]  }
 0x17d   : > { %14203 = vmatprep.subr.bf16.mxu1 %v15886_v46  ;;  %v15935_v46 = vld [vmem:[%s17372_s14 + $0x7d0] sm:$0xff]  }
 0x17e   : > { %14182 = vmatpush3.bf16.msra.mxu0 %v15887_v47  ;;  %v15936_v47 = vld [vmem:[%s17372_s14 + $0x710] sm:$0xff]  }
 0x17f   : > { %14183 = vmatprep.subr.bf16.mxu0 %v15889_v49  ;;  %v15938_v49 = vld [vmem:[%s17372_s14 + $0x758] sm:$0xff]  }
 0x180   : > { %14204 = vmatpush3.bf16.msra.mxu1 %v15888_v48  ;;  %v15937_v48 = vld [vmem:[%s17372_s14 + $0x790] sm:$0xff]  }
 0x181   : > { %14205 = vmatprep.subr.bf16.mxu1 %v15890_v50  ;;  %v15939_v50 = vld [vmem:[%s17372_s14 + $0x7d8] sm:$0xff]  }
 0x182   : > { %14184 = vmatpush3.bf16.msra.mxu0 %v15891_v51  ;;  %v15940_v51 = vld [vmem:[%s17372_s14 + $0x718] sm:$0xff]  }
 0x183   : > { %14213 = vmatprep.subr.bf16.mxu0 %v15894_v54  ;;  %v15943_v54 = vld [vmem:[%s17372_s14 + $0x7e0] sm:$0xff]  }
 0x184   : > { %14206 = vmatpush3.bf16.msra.mxu1 %v15892_v52  ;;  %v15941_v52 = vld [vmem:[%s17372_s14 + $0x798] sm:$0xff]  }
 0x185   : > { %9986 = vmatmul.mubr.bf16.vlgmr.msra.gmra.mrb[20].mxu0 %v2625_v53  ;;  %14235 = vmatprep.subr.bf16.mxu1 %v15895_v55  ;;  %v15942_v53 = vld [vmem:[%s17372_s14 + $0x760] sm:$0xff]  }
 0x186   : > { %14214 = vmatpush3.bf16.msra.mxu0 %v15896_v56  ;;  %10065 = vmatprep.mubr.bf16.mxu0 %v2681_v27  ;;  %v15944_v55 = vld [vmem:[%s17372_s14 + $0x720] sm:$0xff]   ;;  %v15968_v27 = vld [vmem:[%s17372_s14 + $0x8d0] sm:$0xff]  }
 0x187   : > { %10026 = vmatmul.mubr.bf16.vlgmr.msra.gmra.mrb[20].mxu1 %v2641_v58  ;;  %14215 = vmatprep.subr.bf16.mxu0 %v15898_v59  ;;  %v15945_v56 = vld [vmem:[%s17372_s14 + $0x7a0] sm:$0xff]   ;;  %v15947_v58 = vld [vmem:[%s17372_s14 + $0x7e8] sm:$0xff]  }
 0x188   : > { %14236 = vmatpush3.bf16.msra.mxu1 %v15897_v57  ;;  %10105 = vmatprep.mubr.bf16.mxu1 %v2691_v30  ;;  %v15946_v57 = vld [vmem:[%s17372_s14 + $0x768] sm:$0xff]   ;;  %v15971_v30 = vld [vmem:[%s17372_s14 + $0x858] sm:$0xff]  }
 0x189   : > { %14237 = vmatprep.subr.bf16.mxu1 %v15899_v60  ;;  %v15948_v59 = vld [vmem:[%s17372_s14 + $0x728] sm:$0xff]  }
 0x18a   : > { %14216 = vmatpush3.bf16.msra.mxu0 %v15900_v61  ;;  %v15949_v60 = vld [vmem:[%s17372_s14 + $0x7a8] sm:$0xff]   ;;  %v15950_v61 = vld [vmem:[%s17372_s14 + $0x770] sm:$0xff]  }
 0x18b   : > { %14217 = vmatprep.subr.bf16.mxu0 %v15902_v63  ;;  %v15951_v63 = vld [vmem:[%s17372_s14 + $0x7f0] sm:$0xff]  }
 0x18c   : > { %14238 = vmatpush3.bf16.msra.mxu1 %v15901_v62 }
 0x18d   : > { %14239 = vmatprep.subr.bf16.mxu1 %v15903_v0 }
 0x18e   : > { %14218 = vmatpush3.bf16.msra.mxu0 %v15904_v1  ;;  %v15952_v1 = vld [vmem:[%s17372_s14 + $0x730] sm:$0xff]  }
 0x18f   : > { %14219 = vmatprep.subr.bf16.mxu0 %v15906_v3 }
 0x190   : > { %14240 = vmatpush3.bf16.msra.mxu1 %v15905_v2 }
 0x191   : > { %14241 = vmatprep.subr.bf16.mxu1 %v15907_v4 }
 0x192   : > { %14220 = vmatpush3.bf16.msra.mxu0 %v15908_v5  ;;  %v15953_v5 = vld [vmem:[%s17372_s14 + $0x7b0] sm:$0xff]  }
 0x193   : > { %14221 = vmatprep.subr.bf16.mxu0 %v15910_v7 }
 0x194   : > { %14242 = vmatpush3.bf16.msra.mxu1 %v15909_v6  ;;  %v15954_v6 = vld [vmem:[%s17372_s14 + $0x778] sm:$0xff]  }
 0x195   : > { %14243 = vmatprep.subr.bf16.mxu1 %v15911_v8 }
 0x196   : > { %14222 = vmatpush3.bf16.msra.mxu0 %v15912_v9 }
 0x197   : > { %14223 = vmatprep.subr.bf16.mxu0 %v15914_v11  ;;  %v15955_v11 = vld [vmem:[%s17372_s14 + $0x7f8] sm:$0xff]  }
 0x198   : > { %14244 = vmatpush3.bf16.msra.mxu1 %v15913_v10 }
 0x199   : > { %14245 = vmatprep.subr.bf16.mxu1 %v15915_v12 }
 0x19a   : > { %14224 = vmatpush3.bf16.msra.mxu0 %v15916_v13  ;;  %v15956_v13 = vld [vmem:[%s17372_s14 + $0x738] sm:$0xff]  }
 0x19b   : > { %14225 = vmatprep.subr.bf16.mxu0 %v15918_v15  ;;  %v15957_v15 = vld [vmem:[%s17372_s14 + $0x7b8] sm:$0xff]  }
 0x19c   : > { %14246 = vmatpush3.bf16.msra.mxu1 %v15917_v14 }
 0x19d   : > { %14247 = vmatprep.subr.bf16.mxu1 %v15919_v16  ;;  %v2674_v16 = vrot.slane %v17675_v24, %v17448_v42  ;;  %v15965_v24 = vld [vmem:[%s17372_s14 + $0x808] sm:$0xff]  }
 0x19e   : > { %14226 = vmatpush3.bf16.msra.mxu0 %v15920_v18  ;;  %v15960_v18 = vld [vmem:[%s17372_s14 + $0x8c0] sm:$0xff]  }
 0x19f   : > { %14227 = vmatprep.subr.bf16.mxu0 %v15922_v22  ;;  %v15963_v22 = vld [vmem:[%s17372_s14 + $0x848] sm:$0xff]  }
 0x1a0   : > { %14248 = vmatpush3.bf16.msra.mxu1 %v15921_v21  ;;  %v2690_v21 = vcombine.high %v2674_v16, %v2674_v16 }
 0x1a1   : > { %14249 = vmatprep.subr.bf16.mxu1 %v15923_v25  ;;  %v15966_v25 = vld [vmem:[%s17372_s14 + $0x888] sm:$0xff]  }
 0x1a2   : > { %14228 = vmatpush3.bf16.msra.mxu0 %v15924_v26  ;;  %v15967_v26 = vld [vmem:[%s17372_s14 + $0x850] sm:$0xff]  }
 0x1a3   : > { %14257 = vmatprep.subr.bf16.mxu0 %v15926_v32  ;;  %v15973_v32 = vld [vmem:[%s17372_s14 + $0x818] sm:$0xff]  }
 0x1a4   : > { %14250 = vmatpush3.bf16.msra.mxu1 %v15925_v29  ;;  %v15970_v29 = vld [vmem:[%s17372_s14 + $0x890] sm:$0xff]  }
 0x1a5   : > { %10066 = vmatmul.mubr.bf16.vlgmr.msra.gmra.mrb[24].mxu0 %v2667_v31  ;;  %14279 = vmatprep.subr.bf16.mxu1 %v15927_v33  ;;  %v15972_v31 = vld [vmem:[%s17372_s14 + $0x8d8] sm:$0xff]  }
 0x1a6   : > { %14258 = vmatpush3.bf16.msra.mxu0 %v15928_v36  ;;  %10145 = vmatprep.mubr.bf16.mxu0 %v2688_v35  ;;  %v15974_v33 = vld [vmem:[%s17372_s14 + $0x898] sm:$0xff]   ;;  %v15975_v35 = vld [vmem:[%s17372_s14 + $0x860] sm:$0xff]  }
 0x1a7   : > { %10106 = vmatmul.mubr.bf16.vlgmr.msra.gmra.mrb[24].mxu1 %v2689_v38  ;;  %14259 = vmatprep.subr.bf16.mxu0 %v15930_v39  ;;  %v15976_v36 = vld [vmem:[%s17372_s14 + $0x8e0] sm:$0xff]   ;;  %v15979_v39 = vld [vmem:[%s17372_s14 + $0x868] sm:$0xff]  }
 0x1a8   : > { %14280 = vmatpush3.bf16.msra.mxu1 %v15929_v37  ;;  %10185 = vmatprep.mubr.bf16.mxu1 %v2692_v41  ;;  %v15977_v37 = vld [vmem:[%s17372_s14 + $0x820] sm:$0xff]   ;;  %v15981_v41 = vld [vmem:[%s17372_s14 + $0x828] sm:$0xff]  }
 0x1a9   : > { %14281 = vmatprep.subr.bf16.mxu1 %v15931_v40  ;;  %v15978_v38 = vld [vmem:[%s17372_s14 + $0x8a0] sm:$0xff]   ;;  %v15980_v40 = vld [vmem:[%s17372_s14 + $0x8e8] sm:$0xff]  }
 0x1aa   : > { %14260 = vmatpush3.bf16.msra.mxu0 %v15932_v43  ;;  %v15982_v43 = vld [vmem:[%s17372_s14 + $0x8a8] sm:$0xff]  }
 0x1ab   : > { %14261 = vmatprep.subr.bf16.mxu0 %v15934_v45 }
 0x1ac   : > { %14282 = vmatpush3.bf16.msra.mxu1 %v15933_v44  ;;  %v15983_v44 = vld [vmem:[%s17372_s14 + $0x870] sm:$0xff]  }
 0x1ad   : > { %14283 = vmatprep.subr.bf16.mxu1 %v15935_v46  ;;  %v15984_v46 = vld [vmem:[%s17372_s14 + $0x8f0] sm:$0xff]  }
 0x1ae   : > { %14262 = vmatpush3.bf16.msra.mxu0 %v15936_v47  ;;  %v420_v47 = vld [vmem:[%s17442_s18 + $0x20] sm:$0xff] }
 0x1af   : > { %14263 = vmatprep.subr.bf16.mxu0 %v15938_v49  ;;  %v15985_v49 = vld [vmem:[%s17372_s14 + $0x830] sm:$0xff]  }
 0x1b0   : > { %14284 = vmatpush3.bf16.msra.mxu1 %v15937_v48 }
 0x1b1   : > { %14285 = vmatprep.subr.bf16.mxu1 %v15939_v50  ;;  %v2700_v50 = vrot.slane %v420_v47, %v17448_v42 }
 0x1b2   : > { %14264 = vmatpush3.bf16.msra.mxu0 %v15940_v51  ;;  %v2693_v51 = vcombine.high %v420_v47, %v420_v47  ;;  %v16019_v47 = vld [vmem:[%s17372_s14 + $0x978] sm:$0xff]  }
 0x1b3   : > { %14265 = vmatprep.subr.bf16.mxu0 %v15942_v53 }
 0x1b4   : > { %14286 = vmatpush3.bf16.msra.mxu1 %v15941_v52 }
 0x1b5   : > { %14287 = vmatprep.subr.bf16.mxu1 %v15943_v54 }
 0x1b6   : > { %14266 = vmatpush3.bf16.msra.mxu0 %v15944_v55 }
 0x1b7   : > { %14267 = vmatprep.subr.bf16.mxu0 %v15946_v57  ;;  %v15986_v57 = vld [vmem:[%s17372_s14 + $0x8b0] sm:$0xff]  }
 0x1b8   : > { %14288 = vmatpush3.bf16.msra.mxu1 %v15945_v56  ;;  %v13965_v62 = vpop.f32.mrb[0].mxu0 }
 0x1b9   : > { %v13966_v0 = vpop.f32.mrb[1].mxu0  ;;  %14289 = vmatprep.subr.bf16.mxu1 %v15947_v58  ;;  %v13987_v2 = vpop.f32.mrb[0].mxu1  ;;  %v15987_v58 = vld [vmem:[%s17372_s14 + $0x878] sm:$0xff]  }
 0x1ba   : > { %v13967_v3 = vadd.f32 %v13966_v0, %v13965_v62  ;;  %v13968_v4 = vpop.f32.mrb[2].mxu0  ;;  %14268 = vmatpush3.bf16.msra.mxu0 %v15948_v59  ;;  %v13988_v7 = vpop.f32.mrb[1].mxu1  ;;  %v2708_v59 = vcombine.high %v2700_v50, %v2700_v50  ;;  %v15988_v0 = vld [vmem:[%s17372_s14 + $0x8f8] sm:$0xff]  }
 0x1bb   : > { %v13969_v8 = vpop.f32.mrb[3].mxu0  ;;  %14269 = vmatprep.subr.bf16.mxu0 %v15950_v61  ;;  %v13989_v9 = vadd.f32 %v13988_v7, %v13987_v2  ;;  %v13990_v10 = vpop.f32.mrb[2].mxu1  ;;  %v15989_v2 = vld [vmem:[%s17372_s14 + $0x838] sm:$0xff]  }
 0x1bc   : > { %14290 = vmatpush3.bf16.msra.mxu1 %v15949_v60  ;;  %v13991_v12 = vpop.f32.mrb[3].mxu1  ;;  %v17753_v60 = vrot.slane %v2693_v51, %v17448_v42  ;;  %v2716_v8 = vrot.slane %v2700_v50, %v17448_v42  ;;  %v15992_v10 = vld [vmem:[%s17372_s14 + $0x9c0] sm:$0xff]  }
 0x1bd   : > { %14291 = vmatprep.subr.bf16.mxu1 %v15951_v63  ;;  %v17716_v14 = vadd.f32 %v13989_v9, %v13967_v3  ;;  %v2730_v3 = vrot.slane %v2708_v59, %v17448_v42  ;;  %v15991_v9 = vld [vmem:[%s17372_s14 + $0x940] sm:$0xff]  }
 0x1be   : > { %14270 = vmatpush3.bf16.msra.mxu0 %v15952_v1  ;;  %v2709_v4 = vcombine.high %v17753_v60, %v17753_v60  ;;  %v15993_v12 = vld [vmem:[%s17372_s14 + $0x900] sm:$0xff]  }
 0x1bf   : > { %14271 = vmatprep.subr.bf16.mxu0 %v15954_v6  ;;  %v15990_v6 = vld [vmem:[%s17372_s14 + $0x8b8] sm:$0xff]   ;;  %v2740_v7 = vcombine.high %v2730_v3, %v2730_v3  ;;  %v16024_v59 = vld [vmem:[%s17372_s14 + $0xa40] sm:$0xff]  }
 0x1c0   : > { %14292 = vmatpush3.bf16.msra.mxu1 %v15953_v5 }
 0x1c1   : > { %14293 = vmatprep.subr.bf16.mxu1 %v15955_v11  ;;  %v2737_v11 = vrot.slane %v2709_v4, %v17448_v42  ;;  %v16032_v4 = vld [vmem:[%s17372_s14 + $0xa50] sm:$0xff]  }
 0x1c2   : > { %14272 = vmatpush3.bf16.msra.mxu0 %v15956_v13  ;;  %v15994_v13 = vld [vmem:[%s17372_s14 + $0x980] sm:$0xff]  }
 0x1c3   : > { %14301 = vmatprep.subr.bf16.mxu0 %v15959_v17  ;;  %v2741_v17 = vcombine.high %v2737_v11, %v2737_v11 }
 0x1c4   : > { %14294 = vmatpush3.bf16.msra.mxu1 %v15957_v15  ;;  %v15995_v15 = vld [vmem:[%s17372_s14 + $0x948] sm:$0xff]  }
 0x1c5   : > { %10146 = vmatmul.mubr.bf16.vlgmr.msra.gmra.mrb[28].mxu0 %v2674_v16  ;;  %14323 = vmatprep.subr.bf16.mxu1 %v15960_v18  ;;  %v15996_v16 = vld [vmem:[%s17372_s14 + $0x9c8] sm:$0xff]  }
 0x1c6   : > { %14302 = vmatpush3.bf16.msra.mxu0 %v15961_v19  ;;  %10225 = vmatprep.mubr.bf16.mxu0 %v2730_v3  ;;  %v15997_v18 = vld [vmem:[%s17372_s14 + $0x908] sm:$0xff]  }
 0x1c7   : > { %10186 = vmatmul.mubr.bf16.vlgmr.msra.gmra.mrb[28].mxu1 %v2690_v21  ;;  %14303 = vmatprep.subr.bf16.mxu0 %v15963_v22  ;;  %v15998_v19 = vld [vmem:[%s17372_s14 + $0x988] sm:$0xff]   ;;  %v16000_v21 = vld [vmem:[%s17372_s14 + $0x9d0] sm:$0xff]  }
 0x1c8   : > { %14324 = vmatpush3.bf16.msra.mxu1 %v15962_v20  ;;  %10265 = vmatprep.mubr.bf16.mxu1 %v2740_v7  ;;  %v15999_v20 = vld [vmem:[%s17372_s14 + $0x950] sm:$0xff]   ;;  %v16031_v3 = vld [vmem:[%s17372_s14 + $0xa88] sm:$0xff]  }
 0x1c9   : > { %14325 = vmatprep.subr.bf16.mxu1 %v15964_v23  ;;  %v16001_v22 = vld [vmem:[%s17372_s14 + $0x910] sm:$0xff]  }
 0x1ca   : > { %14304 = vmatpush3.bf16.msra.mxu0 %v15965_v24  ;;  %v16002_v23 = vld [vmem:[%s17372_s14 + $0x990] sm:$0xff]   ;;  %v16003_v24 = vld [vmem:[%s17372_s14 + $0x958] sm:$0xff]  }
 0x1cb   : > { %14305 = vmatprep.subr.bf16.mxu0 %v15967_v26  ;;  %v16005_v26 = vld [vmem:[%s17372_s14 + $0x918] sm:$0xff]   ;;  %v16035_v7 = vld [vmem:[%s17372_s14 + $0xa90] sm:$0xff]  }
 0x1cc   : > { %14326 = vmatpush3.bf16.msra.mxu1 %v15966_v25  ;;  %v16004_v25 = vld [vmem:[%s17372_s14 + $0x9d8] sm:$0xff]  }
 0x1cd   : > { %14327 = vmatprep.subr.bf16.mxu1 %v15968_v27  ;;  %v16006_v27 = vld [vmem:[%s17372_s14 + $0x998] sm:$0xff]  }
 0x1ce   : > { %14306 = vmatpush3.bf16.msra.mxu0 %v15969_v28  ;;  %v16007_v28 = vld [vmem:[%s17372_s14 + $0x960] sm:$0xff]  }
 0x1cf   : > { %14307 = vmatprep.subr.bf16.mxu0 %v15971_v30  ;;  %v16009_v30 = vld [vmem:[%s17372_s14 + $0x920] sm:$0xff]  }
 0x1d0   : > { %14328 = vmatpush3.bf16.msra.mxu1 %v15970_v29  ;;  %v16008_v29 = vld [vmem:[%s17372_s14 + $0x9e0] sm:$0xff]  }
 0x1d1   : > { %14329 = vmatprep.subr.bf16.mxu1 %v15972_v31  ;;  %v16010_v31 = vld [vmem:[%s17372_s14 + $0x9a0] sm:$0xff]  }
 0x1d2   : > { %14308 = vmatpush3.bf16.msra.mxu0 %v15973_v32  ;;  %v16011_v32 = vld [vmem:[%s17372_s14 + $0x968] sm:$0xff]  }
 0x1d3   : > { %14309 = vmatprep.subr.bf16.mxu0 %v15975_v35  ;;  %v16013_v35 = vld [vmem:[%s17372_s14 + $0x928] sm:$0xff]  }
 0x1d4   : > { %14330 = vmatpush3.bf16.msra.mxu1 %v15974_v33  ;;  %v16012_v33 = vld [vmem:[%s17372_s14 + $0x9e8] sm:$0xff]  }
 0x1d5   : > { %14331 = vmatprep.subr.bf16.mxu1 %v15976_v36  ;;  %v16014_v36 = vld [vmem:[%s17372_s14 + $0x9a8] sm:$0xff]  }
 0x1d6   : > { %14310 = vmatpush3.bf16.msra.mxu0 %v15977_v37  ;;  %v16015_v37 = vld [vmem:[%s17372_s14 + $0x970] sm:$0xff]  }
 0x1d7   : > { %14311 = vmatprep.subr.bf16.mxu0 %v15979_v39  ;;  %v16016_v39 = vld [vmem:[%s17372_s14 + $0x9f0] sm:$0xff]  }
 0x1d8   : > { %14332 = vmatpush3.bf16.msra.mxu1 %v15978_v38  ;;  %v14009_v45 = vpop.f32.mrb[4].mxu0 }
 0x1d9   : > { %v14010_v48 = vpop.f32.mrb[5].mxu0  ;;  %14333 = vmatprep.subr.bf16.mxu1 %v15980_v40  ;;  %v14031_v52 = vpop.f32.mrb[4].mxu1 }
 0x1da   : > { %v14011_v53 = vadd.f32 %v14010_v48, %v14009_v45  ;;  %v14012_v54 = vpop.f32.mrb[6].mxu0  ;;  %14312 = vmatpush3.bf16.msra.mxu0 %v15981_v41  ;;  %v14032_v55 = vpop.f32.mrb[5].mxu1  ;;  %v16017_v41 = vld [vmem:[%s17372_s14 + $0x930] sm:$0xff]  }
 0x1db   : > { %v14013_v56 = vpop.f32.mrb[7].mxu0  ;;  %14313 = vmatprep.subr.bf16.mxu0 %v15983_v44  ;;  %v14033_v62 = vadd.f32 %v14032_v55, %v14031_v52  ;;  %v14034_v63 = vpop.f32.mrb[6].mxu1  ;;  %v16021_v55 = vld [vmem:[%s17372_s14 + $0x938] sm:$0xff]  }
 0x1dc   : > { %v9668_v61 = vadd.f32 %v14011_v53, %v17716_v14  ;;  %14334 = vmatpush3.bf16.msra.mxu1 %v15982_v43  ;;  %v14035_v1 = vpop.f32.mrb[7].mxu1  ;;  %v2738_v14 = vcombine.high %v2716_v8, %v2716_v8  ;;  %v16020_v53 = vld [vmem:[%s17372_s14 + $0x9f8] sm:$0xff]   ;;  %v16027_v63 = vld [vmem:[%s17372_s14 + $0xa80] sm:$0xff]  }
 0x1dd   : > { %14335 = vmatprep.subr.bf16.mxu1 %v15984_v46  ;;  %v16018_v46 = vld [vmem:[%s17372_s14 + $0x9b0] sm:$0xff]   ;;  %v16028_v1 = vld [vmem:[%s17372_s14 + $0xa48] sm:$0xff]  }
 0x1de   : > { %v17761_v5 = vadd.f32 %v14033_v62, %v9668_v61  ;;  %14314 = vmatpush3.bf16.msra.mxu0 %v15985_v49  ;;  %v16025_v61 = vld [vmem:[%s17372_s14 + $0xac0] sm:$0xff]  }
 0x1df   : > { %14315 = vmatprep.subr.bf16.mxu0 %v15987_v58  ;;  %v2723_v58 = vrot.slane %v17753_v60, %v17448_v42  ;;  %v16026_v62 = vld [vmem:[%s17372_s14 + $0xa00] sm:$0xff]   ;;  %v16030_v60 = vld [vmem:[%s17372_s14 + $0xa08] sm:$0xff]  }
 0x1e0   : > { %14336 = vmatpush3.bf16.msra.mxu1 %v15986_v57  ;;  %v16022_v57 = vld [vmem:[%s17372_s14 + $0x9b8] sm:$0xff]  }
 0x1e1   : > { %14337 = vmatprep.subr.bf16.mxu1 %v15988_v0  ;;  %v2739_v0 = vcombine.high %v2723_v58, %v2723_v58 }
 0x1e2   : > { %14316 = vmatpush3.bf16.msra.mxu0 %v15989_v2  ;;  %v16029_v2 = vld [vmem:[%s17372_s14 + $0xac8] sm:$0xff]  }
 0x1e3   : > { %14345 = vmatprep.subr.bf16.mxu0 %v15991_v9  ;;  %v16037_v9 = vld [vmem:[%s17372_s14 + $0xad8] sm:$0xff]  }
 0x1e4   : > { %14338 = vmatpush3.bf16.msra.mxu1 %v15990_v6  ;;  %v16034_v6 = vld [vmem:[%s17372_s14 + $0xa10] sm:$0xff]  }
 0x1e5   : > { %10226 = vmatmul.mubr.bf16.vlgmr.msra.gmra.mrb[32].mxu0 %v2716_v8  ;;  %14367 = vmatprep.subr.bf16.mxu1 %v15992_v10  ;;  %v16036_v8 = vld [vmem:[%s17372_s14 + $0xa58] sm:$0xff]  }
 0x1e6   : > { %14346 = vmatpush3.bf16.msra.mxu0 %v15993_v12  ;;  %10305 = vmatprep.mubr.bf16.mxu0 %v2737_v11  ;;  %v16038_v10 = vld [vmem:[%s17372_s14 + $0xa18] sm:$0xff]   ;;  %v16040_v12 = vld [vmem:[%s17372_s14 + $0xa60] sm:$0xff]  }
 0x1e7   : > { %10266 = vmatmul.mubr.bf16.vlgmr.msra.gmra.mrb[32].mxu1 %v2738_v14  ;;  %14347 = vmatprep.subr.bf16.mxu0 %v15995_v15  ;;  %v16039_v11 = vld [vmem:[%s17372_s14 + $0xa98] sm:$0xff]   ;;  %v16042_v14 = vld [vmem:[%s17372_s14 + $0xa20] sm:$0xff]  }
 0x1e8   : > { %14368 = vmatpush3.bf16.msra.mxu1 %v15994_v13  ;;  %10345 = vmatprep.mubr.bf16.mxu1 %v2741_v17  ;;  %v16041_v13 = vld [vmem:[%s17372_s14 + $0xae0] sm:$0xff]   ;;  %v16045_v17 = vld [vmem:[%s17372_s14 + $0xae8] sm:$0xff]  }
 0x1e9   : > { %14369 = vmatprep.subr.bf16.mxu1 %v15996_v16  ;;  %v16043_v15 = vld [vmem:[%s17372_s14 + $0xaa0] sm:$0xff]   ;;  %v16044_v16 = vld [vmem:[%s17372_s14 + $0xa68] sm:$0xff]  }
 0x1ea   : > { %14348 = vmatpush3.bf16.msra.mxu0 %v15997_v18  ;;  %v16046_v18 = vld [vmem:[%s17372_s14 + $0xa28] sm:$0xff]  }
 0x1eb   : > { %14349 = vmatprep.subr.bf16.mxu0 %v15999_v20  ;;  %v16048_v20 = vld [vmem:[%s17372_s14 + $0xa70] sm:$0xff]  }
 0x1ec   : > { %14370 = vmatpush3.bf16.msra.mxu1 %v15998_v19  ;;  %v16047_v19 = vld [vmem:[%s17372_s14 + $0xaa8] sm:$0xff]  }
 0x1ed   : > { %14371 = vmatprep.subr.bf16.mxu1 %v16000_v21 }
 0x1ee   : > { %14350 = vmatpush3.bf16.msra.mxu0 %v16001_v22  ;;  %v16049_v22 = vld [vmem:[%s17372_s14 + $0xaf0] sm:$0xff]  }
 0x1ef   : > { %14351 = vmatprep.subr.bf16.mxu0 %v16003_v24  ;;  %v16050_v24 = vld [vmem:[%s17372_s14 + $0xa30] sm:$0xff]  }
 0x1f0   : > { %14372 = vmatpush3.bf16.msra.mxu1 %v16002_v23 }
 0x1f1   : > { %14373 = vmatprep.subr.bf16.mxu1 %v16004_v25  ;;  %v421_v25 = vld [vmem:[%s17442_s18 + $0x28] sm:$0xff] }
 0x1f2   : > { %14352 = vmatpush3.bf16.msra.mxu0 %v16005_v26 }
 0x1f3   : > { %14353 = vmatprep.subr.bf16.mxu0 %v16007_v28 }
 0x1f4   : > { %14374 = vmatpush3.bf16.msra.mxu1 %v16006_v27 }
 0x1f5   : > { %14375 = vmatprep.subr.bf16.mxu1 %v16008_v29  ;;  %v2749_v29 = vrot.slane %v421_v25, %v17448_v42 }
 0x1f6   : > { %14354 = vmatpush3.bf16.msra.mxu0 %v16009_v30  ;;  %v2742_v30 = vcombine.high %v421_v25, %v421_v25 }
 0x1f7   : > { %14355 = vmatprep.subr.bf16.mxu0 %v16011_v32 }
 0x1f8   : > { %14376 = vmatpush3.bf16.msra.mxu1 %v16010_v31  ;;  %v14053_v38 = vpop.f32.mrb[8].mxu0 }
 0x1f9   : > { %v14054_v40 = vpop.f32.mrb[9].mxu0  ;;  %14377 = vmatprep.subr.bf16.mxu1 %v16012_v33  ;;  %v16051_v33 = vld [vmem:[%s17372_s14 + $0xab0] sm:$0xff]  }
 0x1fa   : > { %v14075_v43 = vpop.f32.mrb[8].mxu1  ;;  %v14055_v44 = vadd.f32 %v14054_v40, %v14053_v38  ;;  %v14056_v45 = vpop.f32.mrb[10].mxu0  ;;  %14356 = vmatpush3.bf16.msra.mxu0 %v16013_v35  ;;  %v16052_v35 = vld [vmem:[%s17372_s14 + $0xa78] sm:$0xff]   ;;  %v2757_v40 = vcombine.high %v2749_v29, %v2749_v29 }
 0x1fb   : > { %v14076_v48 = vpop.f32.mrb[9].mxu1  ;;  %v14057_v49 = vpop.f32.mrb[11].mxu0  ;;  %14357 = vmatprep.subr.bf16.mxu0 %v16015_v37 }
 0x1fc   : > { %v9748_v50 = vadd.f32 %v14055_v44, %v17761_v5  ;;  %v14077_v51 = vadd.f32 %v14076_v48, %v14075_v43  ;;  %v14078_v52 = vpop.f32.mrb[10].mxu1  ;;  %14378 = vmatpush3.bf16.msra.mxu1 %v16014_v36  ;;  %v16033_v5 = vld [vmem:[%s17372_s14 + $0xad0] sm:$0xff]   ;;  %v16054_v43 = vld [vmem:[%s17372_s14 + $0xa38] sm:$0xff]   ;;  %v17838_v44 = vrot.slane %v2742_v30, %v17448_v42  ;;  %v2765_v48 = vrot.slane %v2749_v29, %v17448_v42  ;;  %v16056_v49 = vld [vmem:[%s17372_s14 + $0xb40] sm:$0xff]  }
 0x1fd   : > { %v14079_v54 = vpop.f32.mrb[11].mxu1  ;;  %14379 = vmatprep.subr.bf16.mxu1 %v16016_v39  ;;  %v16053_v39 = vld [vmem:[%s17372_s14 + $0xaf8] sm:$0xff]   ;;  %v16057_v52 = vld [vmem:[%s17372_s14 + $0xbc0] sm:$0xff]  }
 0x1fe   : > { %v17798_v56 = vadd.f32 %v14077_v51, %v9748_v50  ;;  %14358 = vmatpush3.bf16.msra.mxu0 %v16017_v41  ;;  %v2758_v50 = vcombine.high %v17838_v44, %v17838_v44  ;;  %v16085_v29 = vld [vmem:[%s17372_s14 + $0xbf8] sm:$0xff]  }
 0x1ff   : > { %14359 = vmatprep.subr.bf16.mxu0 %v16019_v47  ;;  %v2779_v47 = vrot.slane %v2757_v40, %v17448_v42 }
 0x200   : > { %14380 = vmatpush3.bf16.msra.mxu1 %v16018_v46  ;;  %v16055_v46 = vld [vmem:[%s17372_s14 + $0xab8] sm:$0xff]   ;;  %v2786_v54 = vrot.slane %v2758_v50, %v17448_v42 }
 0x201   : > { %14381 = vmatprep.subr.bf16.mxu1 %v16020_v53  ;;  %v2789_v51 = vcombine.high %v2779_v47, %v2779_v47  ;;  %v16058_v53 = vld [vmem:[%s17372_s14 + $0xb00] sm:$0xff]   ;;  %v16101_v50 = vld [vmem:[%s17372_s14 + $0xc58] sm:$0xff]  }
 0x202   : > { %14360 = vmatpush3.bf16.msra.mxu0 %v16021_v55  ;;  %v16059_v55 = vld [vmem:[%s17372_s14 + $0xb80] sm:$0xff]  }
 0x203   : > { %14389 = vmatprep.subr.bf16.mxu0 %v16024_v59  ;;  %v2790_v59 = vcombine.high %v2786_v54, %v2786_v54 }
 0x204   : > { %14382 = vmatpush3.bf16.msra.mxu1 %v16022_v57  ;;  %v16060_v57 = vld [vmem:[%s17372_s14 + $0xb48] sm:$0xff]  }
 0x205   : > { %10306 = vmatmul.mubr.bf16.vlgmr.msra.gmra.mrb[36].mxu0 %v2723_v58  ;;  %14411 = vmatprep.subr.bf16.mxu1 %v16025_v61  ;;  %v16061_v58 = vld [vmem:[%s17372_s14 + $0xbc8] sm:$0xff]  }
 0x206   : > { %14390 = vmatpush3.bf16.msra.mxu0 %v16026_v62  ;;  %10385 = vmatprep.mubr.bf16.mxu0 %v2779_v47  ;;  %v16062_v61 = vld [vmem:[%s17372_s14 + $0xb08] sm:$0xff]   ;;  %v16098_v47 = vld [vmem:[%s17372_s14 + $0xcd0] sm:$0xff]  }
 0x207   : > { %10346 = vmatmul.mubr.bf16.vlgmr.msra.gmra.mrb[36].mxu1 %v2739_v0  ;;  %14391 = vmatprep.subr.bf16.mxu0 %v16028_v1  ;;  %v16063_v62 = vld [vmem:[%s17372_s14 + $0xb88] sm:$0xff]   ;;  %v16065_v0 = vld [vmem:[%s17372_s14 + $0xbd0] sm:$0xff]  }
 0x208   : > { %14412 = vmatpush3.bf16.msra.mxu1 %v16027_v63  ;;  %10425 = vmatprep.mubr.bf16.mxu1 %v2789_v51  ;;  %v16064_v63 = vld [vmem:[%s17372_s14 + $0xb50] sm:$0xff]   ;;  %v16102_v51 = vld [vmem:[%s17372_s14 + $0xcd8] sm:$0xff]  }
 0x209   : > { %14413 = vmatprep.subr.bf16.mxu1 %v16029_v2  ;;  %v16066_v1 = vld [vmem:[%s17372_s14 + $0xb10] sm:$0xff]  }
 0x20a   : > { %14392 = vmatpush3.bf16.msra.mxu0 %v16030_v60  ;;  %v16067_v2 = vld [vmem:[%s17372_s14 + $0xb90] sm:$0xff]   ;;  %v16068_v60 = vld [vmem:[%s17372_s14 + $0xb58] sm:$0xff]  }
 0x20b   : > { %14393 = vmatprep.subr.bf16.mxu0 %v16032_v4  ;;  %v16070_v4 = vld [vmem:[%s17372_s14 + $0xb18] sm:$0xff]  }
 0x20c   : > { %14414 = vmatpush3.bf16.msra.mxu1 %v16031_v3  ;;  %v16069_v3 = vld [vmem:[%s17372_s14 + $0xbd8] sm:$0xff]  }
 0x20d   : > { %14415 = vmatprep.subr.bf16.mxu1 %v16033_v5  ;;  %v16071_v5 = vld [vmem:[%s17372_s14 + $0xb98] sm:$0xff]  }
 0x20e   : > { %14394 = vmatpush3.bf16.msra.mxu0 %v16034_v6  ;;  %v16072_v6 = vld [vmem:[%s17372_s14 + $0xb60] sm:$0xff]  }
 0x20f   : > { %14395 = vmatprep.subr.bf16.mxu0 %v16036_v8  ;;  %v16074_v8 = vld [vmem:[%s17372_s14 + $0xb20] sm:$0xff]  }
 0x210   : > { %14416 = vmatpush3.bf16.msra.mxu1 %v16035_v7  ;;  %v16073_v7 = vld [vmem:[%s17372_s14 + $0xbe0] sm:$0xff]  }
 0x211   : > { %14417 = vmatprep.subr.bf16.mxu1 %v16037_v9  ;;  %v16075_v9 = vld [vmem:[%s17372_s14 + $0xba0] sm:$0xff]  }
 0x212   : > { %14396 = vmatpush3.bf16.msra.mxu0 %v16038_v10  ;;  %v16076_v10 = vld [vmem:[%s17372_s14 + $0xb68] sm:$0xff]  }
 0x213   : > { %14397 = vmatprep.subr.bf16.mxu0 %v16040_v12  ;;  %v16078_v12 = vld [vmem:[%s17372_s14 + $0xb28] sm:$0xff]  }
 0x214   : > { %14418 = vmatpush3.bf16.msra.mxu1 %v16039_v11  ;;  %v16077_v11 = vld [vmem:[%s17372_s14 + $0xbe8] sm:$0xff]  }
 0x215   : > { %14419 = vmatprep.subr.bf16.mxu1 %v16041_v13  ;;  %v16079_v13 = vld [vmem:[%s17372_s14 + $0xba8] sm:$0xff]  }
 0x216   : > { %14398 = vmatpush3.bf16.msra.mxu0 %v16042_v14  ;;  %v16080_v14 = vld [vmem:[%s17372_s14 + $0xb70] sm:$0xff]  }
 0x217   : > { %14399 = vmatprep.subr.bf16.mxu0 %v16044_v16  ;;  %v16081_v16 = vld [vmem:[%s17372_s14 + $0xbf0] sm:$0xff]  }
 0x218   : > { %14420 = vmatpush3.bf16.msra.mxu1 %v16043_v15  ;;  %v14097_v21 = vpop.f32.mrb[12].mxu0 }
 0x219   : > { %v14098_v23 = vpop.f32.mrb[13].mxu0  ;;  %14421 = vmatprep.subr.bf16.mxu1 %v16045_v17 }
 0x21a   : > { %v14119_v26 = vpop.f32.mrb[12].mxu1  ;;  %v14099_v27 = vadd.f32 %v14098_v23, %v14097_v21  ;;  %v14100_v28 = vpop.f32.mrb[14].mxu0  ;;  %14400 = vmatpush3.bf16.msra.mxu0 %v16046_v18  ;;  %v16082_v18 = vld [vmem:[%s17372_s14 + $0xb30] sm:$0xff]   ;;  %v16084_v23 = vld [vmem:[%s17372_s14 + $0xb78] sm:$0xff]  }
 0x21b   : > { %v14120_v31 = vpop.f32.mrb[13].mxu1  ;;  %v14101_v32 = vpop.f32.mrb[15].mxu0  ;;  %14401 = vmatprep.subr.bf16.mxu0 %v16048_v20 }
 0x21c   : > { %v9828_v36 = vadd.f32 %v14099_v27, %v17798_v56  ;;  %v14121_v37 = vadd.f32 %v14120_v31, %v14119_v26  ;;  %v14122_v38 = vpop.f32.mrb[14].mxu1  ;;  %14422 = vmatpush3.bf16.msra.mxu1 %v16047_v19  ;;  %v2787_v56 = vcombine.high %v2765_v48, %v2765_v48  ;;  %v16086_v31 = vld [vmem:[%s17372_s14 + $0xb38] sm:$0xff]  }
 0x21d   : > { %v14123_v41 = vpop.f32.mrb[15].mxu1  ;;  %14423 = vmatprep.subr.bf16.mxu1 %v16049_v22  ;;  %v16083_v22 = vld [vmem:[%s17372_s14 + $0xbb0] sm:$0xff]   ;;  %v16091_v38 = vld [vmem:[%s17372_s14 + $0xc00] sm:$0xff]  }
 0x21e   : > { %v17840_v45 = vadd.f32 %v14121_v37, %v9828_v36  ;;  %14402 = vmatpush3.bf16.msra.mxu0 %v16050_v24  ;;  %v16089_v36 = vld [vmem:[%s17372_s14 + $0xc40] sm:$0xff]   ;;  %v16093_v41 = vld [vmem:[%s17372_s14 + $0xc48] sm:$0xff]  }
 0x21f   : > { %14403 = vmatprep.subr.bf16.mxu0 %v16052_v35  ;;  %v2772_v35 = vrot.slane %v17838_v44, %v17448_v42  ;;  %v16090_v37 = vld [vmem:[%s17372_s14 + $0xcc0] sm:$0xff]   ;;  %v16095_v44 = vld [vmem:[%s17372_s14 + $0xc08] sm:$0xff]  }
 0x220   : > { %14424 = vmatpush3.bf16.msra.mxu1 %v16051_v33  ;;  %v16087_v33 = vld [vmem:[%s17372_s14 + $0xbb8] sm:$0xff]  }
 0x221   : > { %14425 = vmatprep.subr.bf16.mxu1 %v16053_v39  ;;  %v16092_v39 = vld [vmem:[%s17372_s14 + $0xc80] sm:$0xff]   ;;  %v2788_v40 = vcombine.high %v2772_v35, %v2772_v35 }
 0x222   : > { %14404 = vmatpush3.bf16.msra.mxu0 %v16054_v43  ;;  %v16094_v43 = vld [vmem:[%s17372_s14 + $0xcc8] sm:$0xff]  }
 0x223   : > { %14433 = vmatprep.subr.bf16.mxu0 %v16056_v49  ;;  %v16100_v49 = vld [vmem:[%s17372_s14 + $0xc90] sm:$0xff]  }
 0x224   : > { %14426 = vmatpush3.bf16.msra.mxu1 %v16055_v46  ;;  %v16097_v46 = vld [vmem:[%s17372_s14 + $0xc50] sm:$0xff]  }
 0x225   : > { %10386 = vmatmul.mubr.bf16.vlgmr.msra.gmra.mrb[40].mxu0 %v2765_v48  ;;  %14455 = vmatprep.subr.bf16.mxu1 %v16057_v52  ;;  %v16099_v48 = vld [vmem:[%s17372_s14 + $0xc10] sm:$0xff]   ;;  %v16103_v52 = vld [vmem:[%s17372_s14 + $0xc18] sm:$0xff]  }
 0x226   : > { %14434 = vmatpush3.bf16.msra.mxu0 %v16058_v53  ;;  %10465 = vmatprep.mubr.bf16.mxu0 %v2786_v54  ;;  %v16104_v53 = vld [vmem:[%s17372_s14 + $0xc98] sm:$0xff]   ;;  %v16105_v54 = vld [vmem:[%s17372_s14 + $0xc60] sm:$0xff]  }
 0x227   : > { %10426 = vmatmul.mubr.bf16.vlgmr.msra.gmra.mrb[40].mxu1 %v2787_v56  ;;  %14435 = vmatprep.subr.bf16.mxu0 %v16060_v57  ;;  %v16107_v56 = vld [vmem:[%s17372_s14 + $0xc20] sm:$0xff]  }
 0x228   : > { %14456 = vmatpush3.bf16.msra.mxu1 %v16059_v55  ;;  %10505 = vmatprep.mubr.bf16.mxu1 %v2790_v59  ;;  %v16106_v55 = vld [vmem:[%s17372_s14 + $0xce0] sm:$0xff]   ;;  %v16110_v59 = vld [vmem:[%s17372_s14 + $0xce8] sm:$0xff]  }
 0x229   : > { %14457 = vmatprep.subr.bf16.mxu1 %v16061_v58  ;;  %v16108_v57 = vld [vmem:[%s17372_s14 + $0xca0] sm:$0xff]   ;;  %v16109_v58 = vld [vmem:[%s17372_s14 + $0xc68] sm:$0xff]  }
 0x22a   : > { %14436 = vmatpush3.bf16.msra.mxu0 %v16062_v61  ;;  %v16111_v61 = vld [vmem:[%s17372_s14 + $0xc28] sm:$0xff]  }
 0x22b   : > { %14437 = vmatprep.subr.bf16.mxu0 %v16064_v63  ;;  %v16113_v63 = vld [vmem:[%s17372_s14 + $0xc70] sm:$0xff]  }
 0x22c   : > { %14458 = vmatpush3.bf16.msra.mxu1 %v16063_v62  ;;  %v16112_v62 = vld [vmem:[%s17372_s14 + $0xca8] sm:$0xff]  }
 0x22d   : > { %14459 = vmatprep.subr.bf16.mxu1 %v16065_v0 }
 0x22e   : > { %14438 = vmatpush3.bf16.msra.mxu0 %v16066_v1  ;;  %v16114_v1 = vld [vmem:[%s17372_s14 + $0xcf0] sm:$0xff]  }
 0x22f   : > { %14439 = vmatprep.subr.bf16.mxu0 %v16068_v60  ;;  %v16115_v60 = vld [vmem:[%s17372_s14 + $0xc30] sm:$0xff]  }
 0x230   : > { %14460 = vmatpush3.bf16.msra.mxu1 %v16067_v2 }
 0x231   : > { %14461 = vmatprep.subr.bf16.mxu1 %v16069_v3 }
 0x232   : > { %14440 = vmatpush3.bf16.msra.mxu0 %v16070_v4 }
 0x233   : > { %14441 = vmatprep.subr.bf16.mxu0 %v16072_v6  ;;  %v16116_v6 = vld [vmem:[%s17372_s14 + $0xcb0] sm:$0xff]  }
 0x234   : > { %14462 = vmatpush3.bf16.msra.mxu1 %v16071_v5 }
 0x235   : > { %14463 = vmatprep.subr.bf16.mxu1 %v16073_v7  ;;  %v16117_v7 = vld [vmem:[%s17372_s14 + $0xc78] sm:$0xff]  }
 0x236   : > { %14442 = vmatpush3.bf16.msra.mxu0 %v16074_v8  ;;  %v422_v8 = vld [vmem:[%s17442_s18 + $0x30] sm:$0xff] }
 0x237   : > { %14443 = vmatprep.subr.bf16.mxu0 %v16076_v10 }
 0x238   : > { %14464 = vmatpush3.bf16.msra.mxu1 %v16075_v9  ;;  %v14141_v15 = vpop.f32.mrb[16].mxu0 }
 0x239   : > { %v14142_v17 = vpop.f32.mrb[17].mxu0  ;;  %14465 = vmatprep.subr.bf16.mxu1 %v16077_v11  ;;  %v2798_v11 = vrot.slane %v422_v8, %v17448_v42 }
 0x23a   : > { %v14163_v19 = vpop.f32.mrb[16].mxu1  ;;  %v14143_v20 = vadd.f32 %v14142_v17, %v14141_v15  ;;  %v14144_v21 = vpop.f32.mrb[18].mxu0  ;;  %14444 = vmatpush3.bf16.msra.mxu0 %v16078_v12  ;;  %v2791_v12 = vcombine.high %v422_v8, %v422_v8 }
 0x23b   : > { %v14164_v24 = vpop.f32.mrb[17].mxu1  ;;  %v14145_v25 = vpop.f32.mrb[19].mxu0  ;;  %14445 = vmatprep.subr.bf16.mxu0 %v16080_v14 }
 0x23c   : > { %v9908_v26 = vadd.f32 %v14143_v20, %v17840_v45  ;;  %v14165_v27 = vadd.f32 %v14164_v24, %v14163_v19  ;;  %v14166_v28 = vpop.f32.mrb[18].mxu1  ;;  %14466 = vmatpush3.bf16.msra.mxu1 %v16079_v13  ;;  %v16096_v45 = vld [vmem:[%s17372_s14 + $0xc88] sm:$0xff]   ;;  %v2806_v19 = vcombine.high %v2798_v11, %v2798_v11  ;;  %v17920_v20 = vrot.slane %v2791_v12, %v17448_v42  ;;  %v16121_v25 = vld [vmem:[%s17372_s14 + $0xd40] sm:$0xff]  }
 0x23d   : > { %v14167_v30 = vpop.f32.mrb[19].mxu1  ;;  %14467 = vmatprep.subr.bf16.mxu1 %v16081_v16  ;;  %v16118_v16 = vld [vmem:[%s17372_s14 + $0xcf8] sm:$0xff]   ;;  %v2814_v24 = vrot.slane %v2798_v11, %v17448_v42 }
 0x23e   : > { %v17880_v32 = vadd.f32 %v14165_v27, %v9908_v26  ;;  %14446 = vmatpush3.bf16.msra.mxu0 %v16082_v18  ;;  %v16119_v18 = vld [vmem:[%s17372_s14 + $0xc38] sm:$0xff]   ;;  %v2807_v26 = vcombine.high %v17920_v20, %v17920_v20  ;;  %v16122_v27 = vld [vmem:[%s17372_s14 + $0xdc0] sm:$0xff]   ;;  %v2821_v12 = vrot.slane %v17920_v20, %v17448_v42  ;;  %v16160_v20 = vld [vmem:[%s17372_s14 + $0xe08] sm:$0xff]  }
 0x23f   : > { %14447 = vmatprep.subr.bf16.mxu0 %v16084_v23  ;;  %v2828_v23 = vrot.slane %v2806_v19, %v17448_v42  ;;  %v16152_v11 = vld [vmem:[%s17372_s14 + $0xdb8] sm:$0xff]   ;;  %v16159_v19 = vld [vmem:[%s17372_s14 + $0xec8] sm:$0xff]  }
 0x240   : > { %14468 = vmatpush3.bf16.msra.mxu1 %v16083_v22  ;;  %v16120_v22 = vld [vmem:[%s17372_s14 + $0xcb8] sm:$0xff]   ;;  %v2835_v30 = vrot.slane %v2807_v26, %v17448_v42 }
 0x241   : > { %14469 = vmatprep.subr.bf16.mxu1 %v16085_v29  ;;  %v2838_v28 = vcombine.high %v2828_v23, %v2828_v23  ;;  %v16123_v29 = vld [vmem:[%s17372_s14 + $0xd00] sm:$0xff]   ;;  %v16166_v26 = vld [vmem:[%s17372_s14 + $0xe58] sm:$0xff]  }
 0x242   : > { %14448 = vmatpush3.bf16.msra.mxu0 %v16086_v31  ;;  %v16124_v31 = vld [vmem:[%s17372_s14 + $0xd80] sm:$0xff]  }
 0x243   : > { %14477 = vmatprep.subr.bf16.mxu0 %v16089_v36  ;;  %v2839_v36 = vcombine.high %v2835_v30, %v2835_v30 }
 0x244   : > { %14470 = vmatpush3.bf16.msra.mxu1 %v16087_v33  ;;  %v16125_v33 = vld [vmem:[%s17372_s14 + $0xd48] sm:$0xff]  }
 0x245   : > { %10466 = vmatmul.mubr.bf16.vlgmr.msra.gmra.mrb[44].mxu0 %v2772_v35  ;;  %14499 = vmatprep.subr.bf16.mxu1 %v16090_v37  ;;  %v16126_v35 = vld [vmem:[%s17372_s14 + $0xdc8] sm:$0xff]  }
 0x246   : > { %14478 = vmatpush3.bf16.msra.mxu0 %v16091_v38  ;;  %10545 = vmatprep.mubr.bf16.mxu0 %v2828_v23  ;;  %v16127_v37 = vld [vmem:[%s17372_s14 + $0xd08] sm:$0xff]   ;;  %v16163_v23 = vld [vmem:[%s17372_s14 + $0xed0] sm:$0xff]  }
 0x247   : > { %10506 = vmatmul.mubr.bf16.vlgmr.msra.gmra.mrb[44].mxu1 %v2788_v40  ;;  %14479 = vmatprep.subr.bf16.mxu0 %v16093_v41  ;;  %v16128_v38 = vld [vmem:[%s17372_s14 + $0xd88] sm:$0xff]   ;;  %v16130_v40 = vld [vmem:[%s17372_s14 + $0xdd0] sm:$0xff]  }
 0x248   : > { %14500 = vmatpush3.bf16.msra.mxu1 %v16092_v39  ;;  %10585 = vmatprep.mubr.bf16.mxu1 %v2838_v28  ;;  %v16129_v39 = vld [vmem:[%s17372_s14 + $0xd50] sm:$0xff]   ;;  %v16168_v28 = vld [vmem:[%s17372_s14 + $0xe18] sm:$0xff]  }
 0x249   : > { %14501 = vmatprep.subr.bf16.mxu1 %v16094_v43  ;;  %v16131_v41 = vld [vmem:[%s17372_s14 + $0xd10] sm:$0xff]  }
 0x24a   : > { %14480 = vmatpush3.bf16.msra.mxu0 %v16095_v44  ;;  %v16132_v43 = vld [vmem:[%s17372_s14 + $0xd90] sm:$0xff]   ;;  %v16133_v44 = vld [vmem:[%s17372_s14 + $0xd58] sm:$0xff]  }
 0x24b   : > { %14481 = vmatprep.subr.bf16.mxu0 %v16097_v46  ;;  %v16135_v46 = vld [vmem:[%s17372_s14 + $0xd18] sm:$0xff]  }
 0x24c   : > { %14502 = vmatpush3.bf16.msra.mxu1 %v16096_v45  ;;  %v16134_v45 = vld [vmem:[%s17372_s14 + $0xdd8] sm:$0xff]  }
 0x24d   : > { %14503 = vmatprep.subr.bf16.mxu1 %v16098_v47  ;;  %v16136_v47 = vld [vmem:[%s17372_s14 + $0xd98] sm:$0xff]  }
 0x24e   : > { %14482 = vmatpush3.bf16.msra.mxu0 %v16099_v48  ;;  %v16137_v48 = vld [vmem:[%s17372_s14 + $0xd60] sm:$0xff]  }
 0x24f   : > { %14483 = vmatprep.subr.bf16.mxu0 %v16101_v50  ;;  %v16139_v50 = vld [vmem:[%s17372_s14 + $0xd20] sm:$0xff]  }
 0x250   : > { %14504 = vmatpush3.bf16.msra.mxu1 %v16100_v49  ;;  %v16138_v49 = vld [vmem:[%s17372_s14 + $0xde0] sm:$0xff]  }
 0x251   : > { %14505 = vmatprep.subr.bf16.mxu1 %v16102_v51  ;;  %v16140_v51 = vld [vmem:[%s17372_s14 + $0xda0] sm:$0xff]  }
 0x252   : > { %14484 = vmatpush3.bf16.msra.mxu0 %v16103_v52  ;;  %v16141_v52 = vld [vmem:[%s17372_s14 + $0xd68] sm:$0xff]  }
 0x253   : > { %14485 = vmatprep.subr.bf16.mxu0 %v16105_v54  ;;  %v16143_v54 = vld [vmem:[%s17372_s14 + $0xd28] sm:$0xff]  }
 0x254   : > { %14506 = vmatpush3.bf16.msra.mxu1 %v16104_v53  ;;  %v16142_v53 = vld [vmem:[%s17372_s14 + $0xde8] sm:$0xff]  }
 0x255   : > { %14507 = vmatprep.subr.bf16.mxu1 %v16106_v55  ;;  %v16144_v55 = vld [vmem:[%s17372_s14 + $0xda8] sm:$0xff]  }
 0x256   : > { %14486 = vmatpush3.bf16.msra.mxu0 %v16107_v56  ;;  %v16145_v56 = vld [vmem:[%s17372_s14 + $0xd70] sm:$0xff]  }
 0x257   : > { %14487 = vmatprep.subr.bf16.mxu0 %v16109_v58  ;;  %v16146_v58 = vld [vmem:[%s17372_s14 + $0xdf0] sm:$0xff]  }
 0x258   : > { %14508 = vmatpush3.bf16.msra.mxu1 %v16108_v57  ;;  %v14185_v0 = vpop.f32.mrb[20].mxu0 }
 0x259   : > { %v14186_v2 = vpop.f32.mrb[21].mxu0  ;;  %14509 = vmatprep.subr.bf16.mxu1 %v16110_v59 }
 0x25a   : > { %v14207_v3 = vpop.f32.mrb[20].mxu1  ;;  %v14187_v4 = vadd.f32 %v14186_v2, %v14185_v0  ;;  %v14188_v5 = vpop.f32.mrb[22].mxu0  ;;  %14488 = vmatpush3.bf16.msra.mxu0 %v16111_v61  ;;  %v16147_v61 = vld [vmem:[%s17372_s14 + $0xd30] sm:$0xff]   ;;  %v16149_v2 = vld [vmem:[%s17372_s14 + $0xd78] sm:$0xff]  }
 0x25b   : > { %v14208_v9 = vpop.f32.mrb[21].mxu1  ;;  %v14189_v10 = vpop.f32.mrb[23].mxu0  ;;  %14489 = vmatprep.subr.bf16.mxu0 %v16113_v63 }
 0x25c   : > { %v9988_v13 = vadd.f32 %v14187_v4, %v17880_v32  ;;  %v14209_v14 = vadd.f32 %v14208_v9, %v14207_v3  ;;  %v14210_v15 = vpop.f32.mrb[22].mxu1  ;;  %14510 = vmatpush3.bf16.msra.mxu1 %v16112_v62  ;;  %v2836_v32 = vcombine.high %v2814_v24, %v2814_v24  ;;  %v16151_v9 = vld [vmem:[%s17372_s14 + $0xd38] sm:$0xff]  }
 0x25d   : > { %v14211_v17 = vpop.f32.mrb[23].mxu1  ;;  %14511 = vmatprep.subr.bf16.mxu1 %v16114_v1  ;;  %v16148_v1 = vld [vmem:[%s17372_s14 + $0xdb0] sm:$0xff]   ;;  %v16156_v15 = vld [vmem:[%s17372_s14 + $0xe00] sm:$0xff]  }
 0x25e   : > { %v17922_v21 = vadd.f32 %v14209_v14, %v9988_v13  ;;  %14490 = vmatpush3.bf16.msra.mxu0 %v16115_v60  ;;  %v16154_v13 = vld [vmem:[%s17372_s14 + $0xe40] sm:$0xff]   ;;  %v2837_v17 = vcombine.high %v2821_v12, %v2821_v12 }
 0x25f   : > { %14491 = vmatprep.subr.bf16.mxu0 %v16117_v7  ;;  %v16150_v7 = vld [vmem:[%s17372_s14 + $0xdf8] sm:$0xff]   ;;  %v16155_v14 = vld [vmem:[%s17372_s14 + $0xec0] sm:$0xff]  }
 0x260   : > { %14512 = vmatpush3.bf16.msra.mxu1 %v16116_v6 }
 0x261   : > { %14513 = vmatprep.subr.bf16.mxu1 %v16118_v16  ;;  %v16157_v16 = vld [vmem:[%s17372_s14 + $0xe80] sm:$0xff]  }
 0x262   : > { %14492 = vmatpush3.bf16.msra.mxu0 %v16119_v18  ;;  %v16158_v18 = vld [vmem:[%s17372_s14 + $0xe48] sm:$0xff]  }
 0x263   : > { %14521 = vmatprep.subr.bf16.mxu0 %v16121_v25  ;;  %v16165_v25 = vld [vmem:[%s17372_s14 + $0xe90] sm:$0xff]  }
 0x264   : > { %14514 = vmatpush3.bf16.msra.mxu1 %v16120_v22  ;;  %v16162_v22 = vld [vmem:[%s17372_s14 + $0xe50] sm:$0xff]  }
 0x265   : > { %10546 = vmatmul.mubr.bf16.vlgmr.msra.gmra.mrb[48].mxu0 %v2814_v24  ;;  %14543 = vmatprep.subr.bf16.mxu1 %v16122_v27  ;;  %v16164_v24 = vld [vmem:[%s17372_s14 + $0xe10] sm:$0xff]   ;;  %v16167_v27 = vld [vmem:[%s17372_s14 + $0xed8] sm:$0xff]  }
 0x266   : > { %14522 = vmatpush3.bf16.msra.mxu0 %v16123_v29  ;;  %10625 = vmatprep.mubr.bf16.mxu0 %v2835_v30  ;;  %v16169_v29 = vld [vmem:[%s17372_s14 + $0xe98] sm:$0xff]   ;;  %v16170_v30 = vld [vmem:[%s17372_s14 + $0xe60] sm:$0xff]  }
 0x267   : > { %10586 = vmatmul.mubr.bf16.vlgmr.msra.gmra.mrb[48].mxu1 %v2836_v32  ;;  %14523 = vmatprep.subr.bf16.mxu0 %v16125_v33  ;;  %v16172_v32 = vld [vmem:[%s17372_s14 + $0xe20] sm:$0xff]  }
 0x268   : > { %14544 = vmatpush3.bf16.msra.mxu1 %v16124_v31  ;;  %10665 = vmatprep.mubr.bf16.mxu1 %v2839_v36  ;;  %v16171_v31 = vld [vmem:[%s17372_s14 + $0xee0] sm:$0xff]   ;;  %v16175_v36 = vld [vmem:[%s17372_s14 + $0xee8] sm:$0xff]  }
 0x269   : > { %14545 = vmatprep.subr.bf16.mxu1 %v16126_v35  ;;  %v16173_v33 = vld [vmem:[%s17372_s14 + $0xea0] sm:$0xff]   ;;  %v16174_v35 = vld [vmem:[%s17372_s14 + $0xe68] sm:$0xff]  }
 0x26a   : > { %14524 = vmatpush3.bf16.msra.mxu0 %v16127_v37  ;;  %v16176_v37 = vld [vmem:[%s17372_s14 + $0xe28] sm:$0xff]  }
 0x26b   : > { %14525 = vmatprep.subr.bf16.mxu0 %v16129_v39  ;;  %v16178_v39 = vld [vmem:[%s17372_s14 + $0xe70] sm:$0xff]  }
 0x26c   : > { %14546 = vmatpush3.bf16.msra.mxu1 %v16128_v38  ;;  %v16177_v38 = vld [vmem:[%s17372_s14 + $0xea8] sm:$0xff]  }
 0x26d   : > { %14547 = vmatprep.subr.bf16.mxu1 %v16130_v40 }
 0x26e   : > { %14526 = vmatpush3.bf16.msra.mxu0 %v16131_v41  ;;  %v16179_v41 = vld [vmem:[%s17372_s14 + $0xef0] sm:$0xff]  }
 0x26f   : > { %14527 = vmatprep.subr.bf16.mxu0 %v16133_v44  ;;  %v16180_v44 = vld [vmem:[%s17372_s14 + $0xe30] sm:$0xff]  }
 0x270   : > { %14548 = vmatpush3.bf16.msra.mxu1 %v16132_v43 }
 0x271   : > { %14549 = vmatprep.subr.bf16.mxu1 %v16134_v45 }
 0x272   : > { %14528 = vmatpush3.bf16.msra.mxu0 %v16135_v46 }
 0x273   : > { %14529 = vmatprep.subr.bf16.mxu0 %v16137_v48  ;;  %v16181_v48 = vld [vmem:[%s17372_s14 + $0xeb0] sm:$0xff]  }
 0x274   : > { %14550 = vmatpush3.bf16.msra.mxu1 %v16136_v47 }
 0x275   : > { %14551 = vmatprep.subr.bf16.mxu1 %v16138_v49  ;;  %v16182_v49 = vld [vmem:[%s17372_s14 + $0xe78] sm:$0xff]  }
 0x276   : > { %14530 = vmatpush3.bf16.msra.mxu0 %v16139_v50 }
 0x277   : > { %14531 = vmatprep.subr.bf16.mxu0 %v16141_v52  ;;  %v16183_v52 = vld [vmem:[%s17372_s14 + $0xef8] sm:$0xff]  }
 0x278   : > { %14552 = vmatpush3.bf16.msra.mxu1 %v16140_v51  ;;  %v14229_v57 = vpop.f32.mrb[24].mxu0 }
 0x279   : > { %v14230_v59 = vpop.f32.mrb[25].mxu0  ;;  %14553 = vmatprep.subr.bf16.mxu1 %v16142_v53 }
 0x27a   : > { %v14251_v62 = vpop.f32.mrb[24].mxu1  ;;  %v14231_v63 = vadd.f32 %v14230_v59, %v14229_v57  ;;  %v14232_v0 = vpop.f32.mrb[26].mxu0  ;;  %14532 = vmatpush3.bf16.msra.mxu0 %v16143_v54 }
 0x27b   : > { %v14252_v60 = vpop.f32.mrb[25].mxu1  ;;  %v14233_v3 = vpop.f32.mrb[27].mxu0  ;;  %14533 = vmatprep.subr.bf16.mxu0 %v16145_v56  ;;  %v423_v56 = vld [vmem:[%s17442_s18 + $0x38] sm:$0xff] }
 0x27c   : > { %v10068_v4 = vadd.f32 %v14231_v63, %v17922_v21  ;;  %v14253_v5 = vadd.f32 %v14252_v60, %v14251_v62  ;;  %v14254_v6 = vpop.f32.mrb[26].mxu1  ;;  %14554 = vmatpush3.bf16.msra.mxu1 %v16144_v55  ;;  %v16161_v21 = vld [vmem:[%s17372_s14 + $0xe88] sm:$0xff]   ;;  %v2847_v59 = vrot.slane %v423_v56, %v17448_v42  ;;  %v16185_v63 = vld [vmem:[%s17372_s14 + $0xeb8] sm:$0xff]   ;;  %v16187_v3 = vld [vmem:[%s17372_s14 + $0xfc0] sm:$0xff]  }
 0x27d   : > { %v14255_v8 = vpop.f32.mrb[27].mxu1  ;;  %14555 = vmatprep.subr.bf16.mxu1 %v16146_v58  ;;  %v16184_v58 = vld [vmem:[%s17372_s14 + $0xe38] sm:$0xff]  }
 0x27e   : > { %v17962_v10 = vadd.f32 %v14253_v5, %v10068_v4  ;;  %14534 = vmatpush3.bf16.msra.mxu0 %v16147_v61  ;;  %v2840_v61 = vcombine.high %v423_v56, %v423_v56  ;;  %v2855_v0 = vcombine.high %v2847_v59, %v2847_v59  ;;  %v16188_v5 = vld [vmem:[%s17372_s14 + $0xf00] sm:$0xff]  }
 0x27f   : > { %14535 = vmatprep.subr.bf16.mxu0 %v16149_v2  ;;  %v16186_v2 = vld [vmem:[%s17372_s14 + $0xf40] sm:$0xff]  }
 0x280   : > { %14556 = vmatpush3.bf16.msra.mxu1 %v16148_v1  ;;  %v2863_v1 = vrot.slane %v2847_v59, %v17448_v42  ;;  %v18007_v60 = vrot.slane %v2840_v61, %v17448_v42  ;;  %v2877_v4 = vrot.slane %v2855_v0, %v17448_v42  ;;  %v16220_v56 = vld [vmem:[%s17372_s14 + $0x10c0] sm:$0xff]   ;;  %v16223_v61 = vld [vmem:[%s17372_s14 + $0x1048] sm:$0xff]  }
 0x281   : > { %14557 = vmatprep.subr.bf16.mxu1 %v16150_v7  ;;  %v16189_v7 = vld [vmem:[%s17372_s14 + $0xf80] sm:$0xff]   ;;  %v16226_v0 = vld [vmem:[%s17372_s14 + $0x1088] sm:$0xff]  }
 0x282   : > { %14536 = vmatpush3.bf16.msra.mxu0 %v16151_v9  ;;  %v2856_v6 = vcombine.high %v18007_v60, %v18007_v60  ;;  %v2887_v8 = vcombine.high %v2877_v4, %v2877_v4  ;;  %v2885_v9 = vcombine.high %v2863_v1, %v2863_v1 }
 0x283   : > { %14565 = vmatprep.subr.bf16.mxu0 %v16154_v13  ;;  %v16192_v13 = vld [vmem:[%s17372_s14 + $0xf08] sm:$0xff]  }
 0x284   : > { %14558 = vmatpush3.bf16.msra.mxu1 %v16152_v11  ;;  %v2884_v11 = vrot.slane %v2856_v6, %v17448_v42  ;;  %v16233_v6 = vld [vmem:[%s17372_s14 + $0x1018] sm:$0xff]  }
 0x285   : > { %10626 = vmatmul.mubr.bf16.vlgmr.msra.gmra.mrb[52].mxu0 %v2821_v12  ;;  %14587 = vmatprep.subr.bf16.mxu1 %v16155_v14  ;;  %v16191_v12 = vld [vmem:[%s17372_s14 + $0xfc8] sm:$0xff]  }
 0x286   : > { %14566 = vmatpush3.bf16.msra.mxu0 %v16156_v15  ;;  %10705 = vmatprep.mubr.bf16.mxu0 %v2877_v4  ;;  %v2888_v14 = vcombine.high %v2884_v11, %v2884_v11  ;;  %v16193_v15 = vld [vmem:[%s17372_s14 + $0xf88] sm:$0xff]   ;;  %v16231_v4 = vld [vmem:[%s17372_s14 + $0x1058] sm:$0xff]  }
 0x287   : > { %10666 = vmatmul.mubr.bf16.vlgmr.msra.gmra.mrb[52].mxu1 %v2837_v17  ;;  %14567 = vmatprep.subr.bf16.mxu0 %v16158_v18  ;;  %v16195_v17 = vld [vmem:[%s17372_s14 + $0xfd0] sm:$0xff]  }
 0x288   : > { %14588 = vmatpush3.bf16.msra.mxu1 %v16157_v16  ;;  %10745 = vmatprep.mubr.bf16.mxu1 %v2887_v8  ;;  %v16194_v16 = vld [vmem:[%s17372_s14 + $0xf50] sm:$0xff]   ;;  %v16235_v8 = vld [vmem:[%s17372_s14 + $0x1060] sm:$0xff]  }
 0x289   : > { %14589 = vmatprep.subr.bf16.mxu1 %v16159_v19  ;;  %v16196_v18 = vld [vmem:[%s17372_s14 + $0xf10] sm:$0xff]  }
 0x28a   : > { %14568 = vmatpush3.bf16.msra.mxu0 %v16160_v20  ;;  %v16197_v19 = vld [vmem:[%s17372_s14 + $0xf90] sm:$0xff]   ;;  %v16198_v20 = vld [vmem:[%s17372_s14 + $0xf58] sm:$0xff]  }
 0x28b   : > { %14569 = vmatprep.subr.bf16.mxu0 %v16162_v22  ;;  %v16200_v22 = vld [vmem:[%s17372_s14 + $0xf18] sm:$0xff]  }
 0x28c   : > { %14590 = vmatpush3.bf16.msra.mxu1 %v16161_v21  ;;  %v16199_v21 = vld [vmem:[%s17372_s14 + $0xfd8] sm:$0xff]  }
 0x28d   : > { %14591 = vmatprep.subr.bf16.mxu1 %v16163_v23  ;;  %v16201_v23 = vld [vmem:[%s17372_s14 + $0xf98] sm:$0xff]  }
 0x28e   : > { %14570 = vmatpush3.bf16.msra.mxu0 %v16164_v24  ;;  %v16202_v24 = vld [vmem:[%s17372_s14 + $0xf60] sm:$0xff]  }
 0x28f   : > { %14571 = vmatprep.subr.bf16.mxu0 %v16166_v26  ;;  %v16204_v26 = vld [vmem:[%s17372_s14 + $0xf20] sm:$0xff]  }
 0x290   : > { %14592 = vmatpush3.bf16.msra.mxu1 %v16165_v25  ;;  %v16203_v25 = vld [vmem:[%s17372_s14 + $0xfe0] sm:$0xff]  }
 0x291   : > { %14593 = vmatprep.subr.bf16.mxu1 %v16167_v27  ;;  %v16205_v27 = vld [vmem:[%s17372_s14 + $0xfa0] sm:$0xff]  }
 0x292   : > { %14572 = vmatpush3.bf16.msra.mxu0 %v16168_v28  ;;  %v16206_v28 = vld [vmem:[%s17372_s14 + $0xf68] sm:$0xff]  }
 0x293   : > { %14573 = vmatprep.subr.bf16.mxu0 %v16170_v30  ;;  %v16208_v30 = vld [vmem:[%s17372_s14 + $0xf28] sm:$0xff]  }
 0x294   : > { %14594 = vmatpush3.bf16.msra.mxu1 %v16169_v29  ;;  %v16207_v29 = vld [vmem:[%s17372_s14 + $0xfe8] sm:$0xff]  }
 0x295   : > { %14595 = vmatprep.subr.bf16.mxu1 %v16171_v31  ;;  %v16209_v31 = vld [vmem:[%s17372_s14 + $0xfa8] sm:$0xff]  }
 0x296   : > { %14574 = vmatpush3.bf16.msra.mxu0 %v16172_v32  ;;  %v16210_v32 = vld [vmem:[%s17372_s14 + $0xf70] sm:$0xff]  }
 0x297   : > { %14575 = vmatprep.subr.bf16.mxu0 %v16174_v35  ;;  %v16211_v35 = vld [vmem:[%s17372_s14 + $0xff0] sm:$0xff]  }
 0x298   : > { %14596 = vmatpush3.bf16.msra.mxu1 %v16173_v33  ;;  %v14273_v40 = vpop.f32.mrb[28].mxu0 }
 0x299   : > { %v14274_v43 = vpop.f32.mrb[29].mxu0  ;;  %14597 = vmatprep.subr.bf16.mxu1 %v16175_v36 }
 0x29a   : > { %v14295_v45 = vpop.f32.mrb[28].mxu1  ;;  %v14275_v46 = vadd.f32 %v14274_v43, %v14273_v40  ;;  %v14276_v47 = vpop.f32.mrb[30].mxu0  ;;  %14576 = vmatpush3.bf16.msra.mxu0 %v16176_v37  ;;  %v16212_v37 = vld [vmem:[%s17372_s14 + $0xf30] sm:$0xff]   ;;  %v16214_v43 = vld [vmem:[%s17372_s14 + $0xf78] sm:$0xff]  }
 0x29b   : > { %v14296_v50 = vpop.f32.mrb[29].mxu1  ;;  %v14277_v51 = vpop.f32.mrb[31].mxu0  ;;  %14577 = vmatprep.subr.bf16.mxu0 %v16178_v39 }
 0x29c   : > { %v10148_v53 = vadd.f32 %v14275_v46, %v17962_v10  ;;  %v14297_v54 = vadd.f32 %v14296_v50, %v14295_v45  ;;  %v14298_v55 = vpop.f32.mrb[30].mxu1  ;;  %14598 = vmatpush3.bf16.msra.mxu1 %v16177_v38  ;;  %v16190_v10 = vld [vmem:[%s17372_s14 + $0xf48] sm:$0xff]   ;;  %v16216_v51 = vld [vmem:[%s17372_s14 + $0xf38] sm:$0xff]  }
 0x29d   : > { %v14299_v57 = vpop.f32.mrb[31].mxu1  ;;  %14599 = vmatprep.subr.bf16.mxu1 %v16179_v41  ;;  %v16213_v41 = vld [vmem:[%s17372_s14 + $0xfb0] sm:$0xff]   ;;  %v16219_v55 = vld [vmem:[%s17372_s14 + $0x1040] sm:$0xff]  }
 0x29e   : > { %v18001_v62 = vadd.f32 %v14297_v54, %v10148_v53  ;;  %14578 = vmatpush3.bf16.msra.mxu0 %v16180_v44  ;;  %v16217_v53 = vld [vmem:[%s17372_s14 + $0xfb8] sm:$0xff]   ;;  %v2870_v54 = vrot.slane %v18007_v60, %v17448_v42  ;;  %v16221_v57 = vld [vmem:[%s17372_s14 + $0x1000] sm:$0xff]   ;;  %v16229_v60 = vld [vmem:[%s17372_s14 + $0x1010] sm:$0xff]  }
 0x29f   : > { %14579 = vmatprep.subr.bf16.mxu0 %v16182_v49  ;;  %v16215_v49 = vld [vmem:[%s17372_s14 + $0xff8] sm:$0xff]  }
 0x2a0   : > { %14600 = vmatpush3.bf16.msra.mxu1 %v16181_v48  ;;  %v2886_v59 = vcombine.high %v2870_v54, %v2870_v54 }
 0x2a1   : > { %14601 = vmatprep.subr.bf16.mxu1 %v16183_v52 }
 0x2a2   : > { %14580 = vmatpush3.bf16.msra.mxu0 %v16184_v58  ;;  %v16222_v58 = vld [vmem:[%s17372_s14 + $0x1080] sm:$0xff]  }
 0x2a3   : > { %14609 = vmatprep.subr.bf16.mxu0 %v16186_v2  ;;  %v16228_v2 = vld [vmem:[%s17372_s14 + $0x10d0] sm:$0xff]  }
 0x2a4   : > { %14602 = vmatpush3.bf16.msra.mxu1 %v16185_v63  ;;  %v16225_v63 = vld [vmem:[%s17372_s14 + $0x1008] sm:$0xff]  }
 0x2a5   : > { %10706 = vmatmul.mubr.bf16.vlgmr.msra.gmra.mrb[56].mxu0 %v2863_v1  ;;  %14631 = vmatprep.subr.bf16.mxu1 %v16187_v3  ;;  %v16227_v1 = vld [vmem:[%s17372_s14 + $0x1050] sm:$0xff]  }
 0x2a6   : > { %14610 = vmatpush3.bf16.msra.mxu0 %v16188_v5  ;;  %10785 = vmatprep.mubr.bf16.mxu0 %v2884_v11  ;;  %v16230_v3 = vld [vmem:[%s17372_s14 + $0x1090] sm:$0xff]   ;;  %v16232_v5 = vld [vmem:[%s17372_s14 + $0x10d8] sm:$0xff]   ;;  %v16238_v11 = vld [vmem:[%s17372_s14 + $0x10a0] sm:$0xff]  }
 0x2a7   : > { %10746 = vmatmul.mubr.bf16.vlgmr.msra.gmra.mrb[56].mxu1 %v2885_v9  ;;  %14611 = vmatprep.subr.bf16.mxu0 %v16190_v10  ;;  %v16236_v9 = vld [vmem:[%s17372_s14 + $0x10e0] sm:$0xff]  }
 0x2a8   : > { %14632 = vmatpush3.bf16.msra.mxu1 %v16189_v7  ;;  %10825 = vmatprep.mubr.bf16.mxu1 %v2888_v14  ;;  %v16234_v7 = vld [vmem:[%s17372_s14 + $0x1098] sm:$0xff]   ;;  %v16237_v10 = vld [vmem:[%s17372_s14 + $0x1020] sm:$0xff]   ;;  %v16241_v14 = vld [vmem:[%s17372_s14 + $0x1028] sm:$0xff]  }
 0x2a9   : > { %14633 = vmatprep.subr.bf16.mxu1 %v16191_v12  ;;  %v16239_v12 = vld [vmem:[%s17372_s14 + $0x1068] sm:$0xff]  }
 0x2aa   : > { %14612 = vmatpush3.bf16.msra.mxu0 %v16192_v13  ;;  %v16240_v13 = vld [vmem:[%s17372_s14 + $0x10e8] sm:$0xff]  }
 0x2ab   : > { %14613 = vmatprep.subr.bf16.mxu0 %v16194_v16  ;;  %v16243_v16 = vld [vmem:[%s17372_s14 + $0x1070] sm:$0xff]  }
 0x2ac   : > { %14634 = vmatpush3.bf16.msra.mxu1 %v16193_v15  ;;  %v16242_v15 = vld [vmem:[%s17372_s14 + $0x10a8] sm:$0xff]  }
 0x2ad   : > { %14635 = vmatprep.subr.bf16.mxu1 %v16195_v17 }
 0x2ae   : > { %14614 = vmatpush3.bf16.msra.mxu0 %v16196_v18  ;;  %v16244_v18 = vld [vmem:[%s17372_s14 + $0x10f0] sm:$0xff]  }
 0x2af   : > { %14615 = vmatprep.subr.bf16.mxu0 %v16198_v20  ;;  %v16245_v20 = vld [vmem:[%s17372_s14 + $0x1030] sm:$0xff]  }
 0x2b0   : > { %14636 = vmatpush3.bf16.msra.mxu1 %v16197_v19 }
 0x2b1   : > { %14637 = vmatprep.subr.bf16.mxu1 %v16199_v21 }
 0x2b2   : > { %14616 = vmatpush3.bf16.msra.mxu0 %v16200_v22 }
 0x2b3   : > { %14617 = vmatprep.subr.bf16.mxu0 %v16202_v24  ;;  %v16246_v24 = vld [vmem:[%s17372_s14 + $0x10b0] sm:$0xff]  }
 0x2b4   : > { %14638 = vmatpush3.bf16.msra.mxu1 %v16201_v23 }
 0x2b5   : > { %14639 = vmatprep.subr.bf16.mxu1 %v16203_v25  ;;  %v16247_v25 = vld [vmem:[%s17372_s14 + $0x1078] sm:$0xff]  }
 0x2b6   : > { %14618 = vmatpush3.bf16.msra.mxu0 %v16204_v26 }
 0x2b7   : > { %14619 = vmatprep.subr.bf16.mxu0 %v16206_v28  ;;  %v16248_v28 = vld [vmem:[%s17372_s14 + $0x10f8] sm:$0xff]  }
 0x2b8   : > { %14640 = vmatpush3.bf16.msra.mxu1 %v16205_v27  ;;  %v14317_v33 = vpop.f32.mrb[32].mxu0 }
 0x2b9   : > { %v14318_v36 = vpop.f32.mrb[33].mxu0  ;;  %14641 = vmatprep.subr.bf16.mxu1 %v16207_v29 }
 0x2ba   : > { %v14339_v38 = vpop.f32.mrb[32].mxu1  ;;  %v14319_v39 = vadd.f32 %v14318_v36, %v14317_v33  ;;  %v14320_v40 = vpop.f32.mrb[34].mxu0  ;;  %14620 = vmatpush3.bf16.msra.mxu0 %v16208_v30 }
 0x2bb   : > { %v14340_v44 = vpop.f32.mrb[33].mxu1  ;;  %v14321_v45 = vpop.f32.mrb[35].mxu0  ;;  %14621 = vmatprep.subr.bf16.mxu0 %v16210_v32  ;;  %v16249_v32 = vld [vmem:[%s17372_s14 + $0x1038] sm:$0xff]   ;;  %v16251_v40 = vld [vmem:[%s17372_s14 + $0x1140] sm:$0xff]  }
 0x2bc   : > { %v10228_v46 = vadd.f32 %v14319_v39, %v18001_v62  ;;  %v14341_v47 = vadd.f32 %v14340_v44, %v14339_v38  ;;  %v14342_v48 = vpop.f32.mrb[34].mxu1  ;;  %14642 = vmatpush3.bf16.msra.mxu1 %v16209_v31  ;;  %v16224_v62 = vld [vmem:[%s17372_s14 + $0x10c8] sm:$0xff]   ;;  %v16252_v44 = vld [vmem:[%s17372_s14 + $0x11c0] sm:$0xff]  }
 0x2bd   : > { %v14343_v50 = vpop.f32.mrb[35].mxu1  ;;  %14643 = vmatprep.subr.bf16.mxu1 %v16211_v35  ;;  %v424_v35 = vld [vmem:[%s17442_s18 + $0x40] sm:$0xff] }
 0x2be   : > { %v18044_v52 = vadd.f32 %v14341_v47, %v10228_v46  ;;  %14622 = vmatpush3.bf16.msra.mxu0 %v16212_v37  ;;  %v16250_v37 = vld [vmem:[%s17372_s14 + $0x10b8] sm:$0xff]   ;;  %v2896_v38 = vrot.slane %v424_v35, %v17448_v42  ;;  %v2889_v39 = vcombine.high %v424_v35, %v424_v35  ;;  %v16253_v46 = vld [vmem:[%s17372_s14 + $0x1100] sm:$0xff]  }
 0x2bf   : > { %14623 = vmatprep.subr.bf16.mxu0 %v16214_v43  ;;  %v16254_v48 = vld [vmem:[%s17372_s14 + $0x1180] sm:$0xff]  }
 0x2c0   : > { %14644 = vmatpush3.bf16.msra.mxu1 %v16213_v41  ;;  %v2904_v41 = vcombine.high %v2896_v38, %v2896_v38  ;;  %v2912_v43 = vrot.slane %v2896_v38, %v17448_v42  ;;  %v18090_v45 = vrot.slane %v2889_v39, %v17448_v42  ;;  %v16287_v35 = vld [vmem:[%s17372_s14 + $0x1280] sm:$0xff]   ;;  %v16289_v38 = vld [vmem:[%s17372_s14 + $0x12c8] sm:$0xff]  }
 0x2c1   : > { %14645 = vmatprep.subr.bf16.mxu1 %v16215_v49  ;;  %v16290_v39 = vld [vmem:[%s17372_s14 + $0x1208] sm:$0xff]  }
 0x2c2   : > { %14624 = vmatpush3.bf16.msra.mxu0 %v16216_v51  ;;  %v2926_v47 = vrot.slane %v2904_v41, %v17448_v42  ;;  %v2905_v49 = vcombine.high %v18090_v45, %v18090_v45  ;;  %v2934_v50 = vcombine.high %v2912_v43, %v2912_v43  ;;  %v16255_v51 = vld [vmem:[%s17372_s14 + $0x1148] sm:$0xff]   ;;  %v16292_v41 = vld [vmem:[%s17372_s14 + $0x1250] sm:$0xff]  }
 0x2c3   : > { %14653 = vmatprep.subr.bf16.mxu0 %v16219_v55  ;;  %v16257_v55 = vld [vmem:[%s17372_s14 + $0x1108] sm:$0xff]  }
 0x2c4   : > { %14646 = vmatpush3.bf16.msra.mxu1 %v16217_v53  ;;  %v16256_v53 = vld [vmem:[%s17372_s14 + $0x11c8] sm:$0xff]  }
 0x2c5   : > { %10786 = vmatmul.mubr.bf16.vlgmr.msra.gmra.mrb[60].mxu0 %v2870_v54  ;;  %14675 = vmatprep.subr.bf16.mxu1 %v16220_v56  ;;  %v2933_v54 = vrot.slane %v2905_v49, %v17448_v42  ;;  %v16258_v56 = vld [vmem:[%s17372_s14 + $0x1188] sm:$0xff]   ;;  %v16299_v49 = vld [vmem:[%s17372_s14 + $0x1298] sm:$0xff]  }
 0x2c6   : > { %14654 = vmatpush3.bf16.msra.mxu0 %v16221_v57  ;;  %10865 = vmatprep.mubr.bf16.mxu0 %v2926_v47 }
 0x2c7   : > { %10826 = vmatmul.mubr.bf16.vlgmr.msra.gmra.mrb[60].mxu1 %v2886_v59  ;;  %14655 = vmatprep.subr.bf16.mxu0 %v16223_v61  ;;  %v2937_v57 = vcombine.high %v2933_v54, %v2933_v54  ;;  %v16260_v59 = vld [vmem:[%s17372_s14 + $0x11d0] sm:$0xff]  }
 0x2c8   : > { %14676 = vmatpush3.bf16.msra.mxu1 %v16222_v58  ;;  %v16259_v58 = vld [vmem:[%s17372_s14 + $0x1150] sm:$0xff]  }
 0x2c9   : > { %14677 = vmatprep.subr.bf16.mxu1 %v16224_v62  ;;  %v16261_v61 = vld [vmem:[%s17372_s14 + $0x1110] sm:$0xff]  }
 0x2ca   : > { %14656 = vmatpush3.bf16.msra.mxu0 %v16225_v63  ;;  %v16262_v62 = vld [vmem:[%s17372_s14 + $0x1190] sm:$0xff]   ;;  %v16263_v63 = vld [vmem:[%s17372_s14 + $0x1158] sm:$0xff]  }
 0x2cb   : > { %14657 = vmatprep.subr.bf16.mxu0 %v16227_v1  ;;  %v16265_v1 = vld [vmem:[%s17372_s14 + $0x1118] sm:$0xff]  }
 0x2cc   : > { %14678 = vmatpush3.bf16.msra.mxu1 %v16226_v0  ;;  %v16264_v0 = vld [vmem:[%s17372_s14 + $0x11d8] sm:$0xff]  }
 0x2cd   : > { %14679 = vmatprep.subr.bf16.mxu1 %v16228_v2  ;;  %v16266_v2 = vld [vmem:[%s17372_s14 + $0x1198] sm:$0xff]  }
 0x2ce   : > { %14658 = vmatpush3.bf16.msra.mxu0 %v16229_v60  ;;  %v16267_v60 = vld [vmem:[%s17372_s14 + $0x1160] sm:$0xff]  }
 0x2cf   : > { %14659 = vmatprep.subr.bf16.mxu0 %v16231_v4  ;;  %v16269_v4 = vld [vmem:[%s17372_s14 + $0x1120] sm:$0xff]  }
 0x2d0   : > { %14680 = vmatpush3.bf16.msra.mxu1 %v16230_v3  ;;  %v16268_v3 = vld [vmem:[%s17372_s14 + $0x11e0] sm:$0xff]  }
 0x2d1   : > { %14681 = vmatprep.subr.bf16.mxu1 %v16232_v5  ;;  %v16270_v5 = vld [vmem:[%s17372_s14 + $0x11a0] sm:$0xff]  }
 0x2d2   : > { %14660 = vmatpush3.bf16.msra.mxu0 %v16233_v6  ;;  %v16271_v6 = vld [vmem:[%s17372_s14 + $0x1168] sm:$0xff]  }
 0x2d3   : > { %14661 = vmatprep.subr.bf16.mxu0 %v16235_v8  ;;  %v16273_v8 = vld [vmem:[%s17372_s14 + $0x1128] sm:$0xff]  }
 0x2d4   : > { %14682 = vmatpush3.bf16.msra.mxu1 %v16234_v7  ;;  %v16272_v7 = vld [vmem:[%s17372_s14 + $0x11e8] sm:$0xff]  }
 0x2d5   : > { %14683 = vmatprep.subr.bf16.mxu1 %v16236_v9  ;;  %v16274_v9 = vld [vmem:[%s17372_s14 + $0x11a8] sm:$0xff]  }
 0x2d6   : > { %14662 = vmatpush3.bf16.msra.mxu0 %v16237_v10  ;;  %v16275_v10 = vld [vmem:[%s17372_s14 + $0x1170] sm:$0xff]  }
 0x2d7   : > { %14663 = vmatprep.subr.bf16.mxu0 %v16239_v12  ;;  %v16276_v12 = vld [vmem:[%s17372_s14 + $0x11f0] sm:$0xff]  }
 0x2d8   : > { %14684 = vmatpush3.bf16.msra.mxu1 %v16238_v11  ;;  %v14361_v17 = vpop.f32.mrb[36].mxu0 }
 0x2d9   : > { %v14362_v19 = vpop.f32.mrb[37].mxu0  ;;  %14685 = vmatprep.subr.bf16.mxu1 %v16240_v13 }
 0x2da   : > { %v14383_v21 = vpop.f32.mrb[36].mxu1  ;;  %v14363_v22 = vadd.f32 %v14362_v19, %v14361_v17  ;;  %v14364_v23 = vpop.f32.mrb[38].mxu0  ;;  %14664 = vmatpush3.bf16.msra.mxu0 %v16241_v14  ;;  %v16277_v14 = vld [vmem:[%s17372_s14 + $0x1130] sm:$0xff]   ;;  %v16279_v19 = vld [vmem:[%s17372_s14 + $0x1178] sm:$0xff]  }
 0x2db   : > { %v14384_v26 = vpop.f32.mrb[37].mxu1  ;;  %v14365_v27 = vpop.f32.mrb[39].mxu0  ;;  %14665 = vmatprep.subr.bf16.mxu0 %v16243_v16 }
 0x2dc   : > { %v10308_v29 = vadd.f32 %v14363_v22, %v18044_v52  ;;  %v14385_v30 = vadd.f32 %v14384_v26, %v14383_v21  ;;  %v14386_v31 = vpop.f32.mrb[38].mxu1  ;;  %14686 = vmatpush3.bf16.msra.mxu1 %v16242_v15  ;;  %v2936_v52 = vcombine.high %v2926_v47, %v2926_v47  ;;  %v16281_v27 = vld [vmem:[%s17372_s14 + $0x1138] sm:$0xff]  }
 0x2dd   : > { %v14387_v33 = vpop.f32.mrb[39].mxu1  ;;  %14687 = vmatprep.subr.bf16.mxu1 %v16244_v18  ;;  %v16278_v18 = vld [vmem:[%s17372_s14 + $0x11b0] sm:$0xff]   ;;  %v16284_v31 = vld [vmem:[%s17372_s14 + $0x1240] sm:$0xff]   ;;  %v16297_v47 = vld [vmem:[%s17372_s14 + $0x12d8] sm:$0xff]  }
 0x2de   : > { %v18082_v36 = vadd.f32 %v14385_v30, %v10308_v29  ;;  %14666 = vmatpush3.bf16.msra.mxu0 %v16245_v20  ;;  %10905 = vmatprep.mubr.bf16.mxu1 %v2936_v52  ;;  %v16282_v29 = vld [vmem:[%s17372_s14 + $0x11b8] sm:$0xff]   ;;  %v2919_v30 = vrot.slane %v18090_v45, %v17448_v42  ;;  %v16286_v33 = vld [vmem:[%s17372_s14 + $0x1200] sm:$0xff]   ;;  %v16295_v45 = vld [vmem:[%s17372_s14 + $0x1290] sm:$0xff]  }
 0x2df   : > { %14667 = vmatprep.subr.bf16.mxu0 %v16247_v25  ;;  %v16280_v25 = vld [vmem:[%s17372_s14 + $0x11f8] sm:$0xff]   ;;  %v16302_v52 = vld [vmem:[%s17372_s14 + $0x1220] sm:$0xff]  }
 0x2e0   : > { %14688 = vmatpush3.bf16.msra.mxu1 %v16246_v24 }
 0x2e1   : > { %14689 = vmatprep.subr.bf16.mxu1 %v16248_v28 }
 0x2e2   : > { %14668 = vmatpush3.bf16.msra.mxu0 %v16249_v32  ;;  %v16285_v32 = vld [vmem:[%s17372_s14 + $0x12c0] sm:$0xff]  }
 0x2e3   : > { %14697 = vmatprep.subr.bf16.mxu0 %v16251_v40  ;;  %v16291_v40 = vld [vmem:[%s17372_s14 + $0x1288] sm:$0xff]  }
 0x2e4   : > { %14690 = vmatpush3.bf16.msra.mxu1 %v16250_v37  ;;  %v16288_v37 = vld [vmem:[%s17372_s14 + $0x1248] sm:$0xff]  }
 0x2e5   : > { %10866 = vmatmul.mubr.bf16.vlgmr.msra.gmra.mrb[64].mxu0 %v2912_v43  ;;  %14719 = vmatprep.subr.bf16.mxu1 %v16252_v44  ;;  %v16293_v43 = vld [vmem:[%s17372_s14 + $0x12d0] sm:$0xff]  }
 0x2e6   : > { %14698 = vmatpush3.bf16.msra.mxu0 %v16253_v46  ;;  %10945 = vmatprep.mubr.bf16.mxu0 %v2933_v54  ;;  %v16294_v44 = vld [vmem:[%s17372_s14 + $0x1210] sm:$0xff]   ;;  %v16296_v46 = vld [vmem:[%s17372_s14 + $0x1258] sm:$0xff]   ;;  %v16304_v54 = vld [vmem:[%s17372_s14 + $0x1268] sm:$0xff]  }
 0x2e7   : > { %10906 = vmatmul.mubr.bf16.vlgmr.msra.gmra.mrb[64].mxu1 %v2934_v50  ;;  %14699 = vmatprep.subr.bf16.mxu0 %v16255_v51  ;;  %v16300_v50 = vld [vmem:[%s17372_s14 + $0x1260] sm:$0xff]  }
 0x2e8   : > { %14720 = vmatpush3.bf16.msra.mxu1 %v16254_v48  ;;  %10985 = vmatprep.mubr.bf16.mxu1 %v2937_v57  ;;  %v16298_v48 = vld [vmem:[%s17372_s14 + $0x1218] sm:$0xff]   ;;  %v16301_v51 = vld [vmem:[%s17372_s14 + $0x12e0] sm:$0xff]   ;;  %v16307_v57 = vld [vmem:[%s17372_s14 + $0x12a8] sm:$0xff]  }
 0x2e9   : > { %14721 = vmatprep.subr.bf16.mxu1 %v16256_v53  ;;  %v16303_v53 = vld [vmem:[%s17372_s14 + $0x12a0] sm:$0xff]  }
 0x2ea   : > { %14700 = vmatpush3.bf16.msra.mxu0 %v16257_v55  ;;  %v16305_v55 = vld [vmem:[%s17372_s14 + $0x12e8] sm:$0xff]  }
 0x2eb   : > { %14701 = vmatprep.subr.bf16.mxu0 %v16259_v58  ;;  %v16308_v58 = vld [vmem:[%s17372_s14 + $0x1270] sm:$0xff]  }
 0x2ec   : > { %14722 = vmatpush3.bf16.msra.mxu1 %v16258_v56  ;;  %v16306_v56 = vld [vmem:[%s17372_s14 + $0x1228] sm:$0xff]  }
 0x2ed   : > { %14723 = vmatprep.subr.bf16.mxu1 %v16260_v59 }
 0x2ee   : > { %14702 = vmatpush3.bf16.msra.mxu0 %v16261_v61  ;;  %v16309_v61 = vld [vmem:[%s17372_s14 + $0x12f0] sm:$0xff]  }
 0x2ef   : > { %14703 = vmatprep.subr.bf16.mxu0 %v16263_v63  ;;  %v16310_v63 = vld [vmem:[%s17372_s14 + $0x1230] sm:$0xff]  }
 0x2f0   : > { %14724 = vmatpush3.bf16.msra.mxu1 %v16262_v62 }
 0x2f1   : > { %14725 = vmatprep.subr.bf16.mxu1 %v16264_v0 }
 0x2f2   : > { %14704 = vmatpush3.bf16.msra.mxu0 %v16265_v1 }
 0x2f3   : > { %14705 = vmatprep.subr.bf16.mxu0 %v16267_v60  ;;  %v16311_v60 = vld [vmem:[%s17372_s14 + $0x12b0] sm:$0xff]  }
 0x2f4   : > { %14726 = vmatpush3.bf16.msra.mxu1 %v16266_v2 }
 0x2f5   : > { %14727 = vmatprep.subr.bf16.mxu1 %v16268_v3  ;;  %v16312_v3 = vld [vmem:[%s17372_s14 + $0x1278] sm:$0xff]  }
 0x2f6   : > { %14706 = vmatpush3.bf16.msra.mxu0 %v16269_v4 }
 0x2f7   : > { %14707 = vmatprep.subr.bf16.mxu0 %v16271_v6 }
 0x2f8   : > { %14728 = vmatpush3.bf16.msra.mxu1 %v16270_v5  ;;  %v14405_v11 = vpop.f32.mrb[40].mxu0 }
 0x2f9   : > { %v14406_v13 = vpop.f32.mrb[41].mxu0  ;;  %14729 = vmatprep.subr.bf16.mxu1 %v16272_v7 }
 0x2fa   : > { %v14427_v15 = vpop.f32.mrb[40].mxu1  ;;  %v14407_v16 = vadd.f32 %v14406_v13, %v14405_v11  ;;  %v14408_v17 = vpop.f32.mrb[42].mxu0  ;;  %14708 = vmatpush3.bf16.msra.mxu0 %v16273_v8  ;;  %v16314_v11 = vld [vmem:[%s17372_s14 + $0x1238] sm:$0xff]   ;;  %v425_v13 = vld [vmem:[%s17442_s18 + $0x48] sm:$0xff] }
 0x2fb   : > { %v14428_v20 = vpop.f32.mrb[41].mxu1  ;;  %v14409_v21 = vpop.f32.mrb[43].mxu0  ;;  %14709 = vmatprep.subr.bf16.mxu0 %v16275_v10  ;;  %v16315_v17 = vld [vmem:[%s17372_s14 + $0x12b8] sm:$0xff]  }
 0x2fc   : > { %v10388_v22 = vadd.f32 %v14407_v16, %v18082_v36  ;;  %v14429_v23 = vadd.f32 %v14428_v20, %v14427_v15  ;;  %v14430_v24 = vpop.f32.mrb[42].mxu1  ;;  %14730 = vmatpush3.bf16.msra.mxu1 %v16274_v9  ;;  %v2935_v36 = vcombine.high %v2919_v30, %v2919_v30  ;;  %v16313_v9 = vld [vmem:[%s17372_s14 + $0x12f8] sm:$0xff]   ;;  %v16316_v15 = vld [vmem:[%s17372_s14 + $0x1340] sm:$0xff]   ;;  %v2938_v16 = vcombine.high %v425_v13, %v425_v13 }
 0x2fd   : > { %v14431_v26 = vpop.f32.mrb[43].mxu1  ;;  %14731 = vmatprep.subr.bf16.mxu1 %v16276_v12  ;;  %v16317_v20 = vld [vmem:[%s17372_s14 + $0x13c0] sm:$0xff]  }
 0x2fe   : > { %v18126_v28 = vadd.f32 %v14429_v23, %v10388_v22  ;;  %14710 = vmatpush3.bf16.msra.mxu0 %v16277_v14  ;;  %v2945_v14 = vrot.slane %v425_v13, %v17448_v42  ;;  %v18172_v21 = vrot.slane %v2938_v16, %v17448_v42  ;;  %v16318_v23 = vld [vmem:[%s17372_s14 + $0x1300] sm:$0xff]   ;;  %v16320_v26 = vld [vmem:[%s17372_s14 + $0x1348] sm:$0xff]  }
 0x2ff   : > { %14711 = vmatprep.subr.bf16.mxu0 %v16279_v19  ;;  %v16353_v13 = vld [vmem:[%s17372_s14 + $0x1448] sm:$0xff]  }
 0x300   : > { %14732 = vmatpush3.bf16.msra.mxu1 %v16278_v18  ;;  %v2953_v18 = vcombine.high %v2945_v14, %v2945_v14  ;;  %v2961_v19 = vrot.slane %v2945_v14, %v17448_v42  ;;  %v2954_v24 = vcombine.high %v18172_v21, %v18172_v21  ;;  %v16352_v14 = vld [vmem:[%s17372_s14 + $0x1480] sm:$0xff]   ;;  %v16355_v16 = vld [vmem:[%s17372_s14 + $0x1408] sm:$0xff]  }
 0x301   : > { %14733 = vmatprep.subr.bf16.mxu1 %v16280_v25 }
 0x302   : > { %14712 = vmatpush3.bf16.msra.mxu0 %v16281_v27  ;;  %v2975_v22 = vrot.slane %v2953_v18, %v17448_v42  ;;  %v2983_v25 = vcombine.high %v2961_v19, %v2961_v19  ;;  %v16356_v18 = vld [vmem:[%s17372_s14 + $0x1488] sm:$0xff]  }
 0x303   : > { %14741 = vmatprep.subr.bf16.mxu0 %v16284_v31  ;;  %v16322_v31 = vld [vmem:[%s17372_s14 + $0x1308] sm:$0xff]  }
 0x304   : > { %14734 = vmatpush3.bf16.msra.mxu1 %v16282_v29  ;;  %v2985_v27 = vcombine.high %v2975_v22, %v2975_v22  ;;  %v2982_v29 = vrot.slane %v2954_v24, %v17448_v42  ;;  %v16363_v24 = vld [vmem:[%s17372_s14 + $0x1418] sm:$0xff]  }
 0x305   : > { %10946 = vmatmul.mubr.bf16.vlgmr.msra.gmra.mrb[68].mxu0 %v2919_v30  ;;  %14763 = vmatprep.subr.bf16.mxu1 %v16285_v32  ;;  %v16321_v30 = vld [vmem:[%s17372_s14 + $0x13c8] sm:$0xff]  }
 0x306   : > { %14742 = vmatpush3.bf16.msra.mxu0 %v16286_v33  ;;  %11025 = vmatprep.mubr.bf16.mxu0 %v2975_v22  ;;  %v2986_v32 = vcombine.high %v2982_v29, %v2982_v29  ;;  %v16324_v33 = vld [vmem:[%s17372_s14 + $0x1350] sm:$0xff]  }
 0x307   : > { %10986 = vmatmul.mubr.bf16.vlgmr.msra.gmra.mrb[68].mxu1 %v2935_v36  ;;  %14743 = vmatprep.subr.bf16.mxu0 %v16288_v37  ;;  %v16325_v36 = vld [vmem:[%s17372_s14 + $0x13d0] sm:$0xff]  }
 0x308   : > { %14764 = vmatpush3.bf16.msra.mxu1 %v16287_v35  ;;  %11065 = vmatprep.mubr.bf16.mxu1 %v2985_v27  ;;  %v16323_v35 = vld [vmem:[%s17372_s14 + $0x1388] sm:$0xff]   ;;  %v16326_v37 = vld [vmem:[%s17372_s14 + $0x1310] sm:$0xff]   ;;  %v16366_v27 = vld [vmem:[%s17372_s14 + $0x14e0] sm:$0xff]  }
 0x309   : > { %14765 = vmatprep.subr.bf16.mxu1 %v16289_v38  ;;  %v16328_v38 = vld [vmem:[%s17372_s14 + $0x1358] sm:$0xff]   ;;  %v16360_v22 = vld [vmem:[%s17372_s14 + $0x1490] sm:$0xff]  }
 0x30a   : > { %14744 = vmatpush3.bf16.msra.mxu0 %v16290_v39  ;;  %v16327_v39 = vld [vmem:[%s17372_s14 + $0x1390] sm:$0xff]  }
 0x30b   : > { %14745 = vmatprep.subr.bf16.mxu0 %v16292_v41  ;;  %v16330_v41 = vld [vmem:[%s17372_s14 + $0x1318] sm:$0xff]  }
 0x30c   : > { %14766 = vmatpush3.bf16.msra.mxu1 %v16291_v40  ;;  %v16329_v40 = vld [vmem:[%s17372_s14 + $0x13d8] sm:$0xff]  }
 0x30d   : > { %14767 = vmatprep.subr.bf16.mxu1 %v16293_v43  ;;  %v16332_v43 = vld [vmem:[%s17372_s14 + $0x1360] sm:$0xff]  }
 0x30e   : > { %14746 = vmatpush3.bf16.msra.mxu0 %v16294_v44  ;;  %v16331_v44 = vld [vmem:[%s17372_s14 + $0x1398] sm:$0xff]  }
 0x30f   : > { %14747 = vmatprep.subr.bf16.mxu0 %v16296_v46  ;;  %v16334_v46 = vld [vmem:[%s17372_s14 + $0x1320] sm:$0xff]  }
 0x310   : > { %14768 = vmatpush3.bf16.msra.mxu1 %v16295_v45  ;;  %v16333_v45 = vld [vmem:[%s17372_s14 + $0x13e0] sm:$0xff]  }
 0x311   : > { %14769 = vmatprep.subr.bf16.mxu1 %v16297_v47  ;;  %v16336_v47 = vld [vmem:[%s17372_s14 + $0x1368] sm:$0xff]  }
 0x312   : > { %14748 = vmatpush3.bf16.msra.mxu0 %v16298_v48  ;;  %v16335_v48 = vld [vmem:[%s17372_s14 + $0x13a0] sm:$0xff]  }
 0x313   : > { %14749 = vmatprep.subr.bf16.mxu0 %v16300_v50  ;;  %v16338_v50 = vld [vmem:[%s17372_s14 + $0x1328] sm:$0xff]  }
 0x314   : > { %14770 = vmatpush3.bf16.msra.mxu1 %v16299_v49  ;;  %v16337_v49 = vld [vmem:[%s17372_s14 + $0x13e8] sm:$0xff]  }
 0x315   : > { %14771 = vmatprep.subr.bf16.mxu1 %v16301_v51 }
 0x316   : > { %14750 = vmatpush3.bf16.msra.mxu0 %v16302_v52  ;;  %v16340_v52 = vld [vmem:[%s17372_s14 + $0x1370] sm:$0xff]  }
 0x317   : > { %14751 = vmatprep.subr.bf16.mxu0 %v16304_v54  ;;  %v16339_v54 = vld [vmem:[%s17372_s14 + $0x13a8] sm:$0xff]  }
 0x318   : > { %14772 = vmatpush3.bf16.msra.mxu1 %v16303_v53  ;;  %v14449_v59 = vpop.f32.mrb[44].mxu0 }
 0x319   : > { %v14450_v62 = vpop.f32.mrb[45].mxu0  ;;  %14773 = vmatprep.subr.bf16.mxu1 %v16305_v55 }
 0x31a   : > { %v14471_v0 = vpop.f32.mrb[44].mxu1  ;;  %v14451_v1 = vadd.f32 %v14450_v62, %v14449_v59  ;;  %v14452_v2 = vpop.f32.mrb[46].mxu0  ;;  %14752 = vmatpush3.bf16.msra.mxu0 %v16306_v56  ;;  %v16342_v59 = vld [vmem:[%s17372_s14 + $0x1330] sm:$0xff]  }
 0x31b   : > { %v14472_v4 = vpop.f32.mrb[45].mxu1  ;;  %v14453_v5 = vpop.f32.mrb[47].mxu0  ;;  %14753 = vmatprep.subr.bf16.mxu0 %v16308_v58  ;;  %v16341_v58 = vld [vmem:[%s17372_s14 + $0x13f0] sm:$0xff]   ;;  %v16344_v2 = vld [vmem:[%s17372_s14 + $0x1378] sm:$0xff]  }
 0x31c   : > { %v10468_v6 = vadd.f32 %v14451_v1, %v18126_v28  ;;  %v14473_v7 = vadd.f32 %v14472_v4, %v14471_v0  ;;  %v14474_v8 = vpop.f32.mrb[46].mxu1  ;;  %14774 = vmatpush3.bf16.msra.mxu1 %v16307_v57  ;;  %v16319_v28 = vld [vmem:[%s17372_s14 + $0x1380] sm:$0xff]   ;;  %v16345_v5 = vld [vmem:[%s17372_s14 + $0x13f8] sm:$0xff]  }
 0x31d   : > { %v14475_v10 = vpop.f32.mrb[47].mxu1  ;;  %14775 = vmatprep.subr.bf16.mxu1 %v16309_v61  ;;  %v16349_v8 = vld [vmem:[%s17372_s14 + $0x1440] sm:$0xff]  }
 0x31e   : > { %v18163_v12 = vadd.f32 %v14473_v7, %v10468_v6  ;;  %14754 = vmatpush3.bf16.msra.mxu0 %v16310_v63  ;;  %v16346_v6 = vld [vmem:[%s17372_s14 + $0x1338] sm:$0xff]   ;;  %v2968_v7 = vrot.slane %v18172_v21, %v17448_v42  ;;  %v16350_v10 = vld [vmem:[%s17372_s14 + $0x14c0] sm:$0xff]  }
 0x31f   : > { %14755 = vmatprep.subr.bf16.mxu0 %v16312_v3  ;;  %v16343_v3 = vld [vmem:[%s17372_s14 + $0x13b0] sm:$0xff]   ;;  %v16361_v21 = vld [vmem:[%s17372_s14 + $0x1458] sm:$0xff]  }
 0x320   : > { %14776 = vmatpush3.bf16.msra.mxu1 %v16311_v60 }
 0x321   : > { %14777 = vmatprep.subr.bf16.mxu1 %v16313_v9  ;;  %v16347_v9 = vld [vmem:[%s17372_s14 + $0x13b8] sm:$0xff]  }
 0x322   : > { %14756 = vmatpush3.bf16.msra.mxu0 %v16314_v11  ;;  %v16351_v11 = vld [vmem:[%s17372_s14 + $0x1400] sm:$0xff]  }
 0x323   : > { %14785 = vmatprep.subr.bf16.mxu0 %v16316_v15  ;;  %v16354_v15 = vld [vmem:[%s17372_s14 + $0x14c8] sm:$0xff]  }
 0x324   : > { %14778 = vmatpush3.bf16.msra.mxu1 %v16315_v17  ;;  %v16357_v17 = vld [vmem:[%s17372_s14 + $0x1450] sm:$0xff]  }
 0x325   : > { %14807 = vmatprep.subr.bf16.mxu1 %v16317_v20  ;;  %11026 = vmatmul.mubr.bf16.vlgmr.msra.gmra.mrb[72].mxu0 %v2961_v19  ;;  %v16358_v19 = vld [vmem:[%s17372_s14 + $0x14d0] sm:$0xff]  }
 0x326   : > { %14786 = vmatpush3.bf16.msra.mxu0 %v16318_v23  ;;  %11105 = vmatprep.mubr.bf16.mxu0 %v2982_v29  ;;  %v16359_v20 = vld [vmem:[%s17372_s14 + $0x1410] sm:$0xff]   ;;  %v16362_v23 = vld [vmem:[%s17372_s14 + $0x14d8] sm:$0xff]   ;;  %v16369_v29 = vld [vmem:[%s17372_s14 + $0x1468] sm:$0xff]  }
 0x327   : > { %11066 = vmatmul.mubr.bf16.vlgmr.msra.gmra.mrb[72].mxu1 %v2983_v25  ;;  %14787 = vmatprep.subr.bf16.mxu0 %v16320_v26  ;;  %v16365_v25 = vld [vmem:[%s17372_s14 + $0x1460] sm:$0xff]   ;;  %v16364_v26 = vld [vmem:[%s17372_s14 + $0x1498] sm:$0xff]  }
 0x328   : > { %14808 = vmatpush3.bf16.msra.mxu1 %v16319_v28  ;;  %11145 = vmatprep.mubr.bf16.mxu1 %v2986_v32  ;;  %v16367_v28 = vld [vmem:[%s17372_s14 + $0x1420] sm:$0xff]   ;;  %v16371_v32 = vld [vmem:[%s17372_s14 + $0x1428] sm:$0xff]  }
 0x329   : > { %14809 = vmatprep.subr.bf16.mxu1 %v16321_v30  ;;  %v16368_v30 = vld [vmem:[%s17372_s14 + $0x14a0] sm:$0xff]  }
 0x32a   : > { %14788 = vmatpush3.bf16.msra.mxu0 %v16322_v31  ;;  %v16370_v31 = vld [vmem:[%s17372_s14 + $0x14e8] sm:$0xff]  }
 0x32b   : > { %14789 = vmatprep.subr.bf16.mxu0 %v16324_v33 }
 0x32c   : > { %14810 = vmatpush3.bf16.msra.mxu1 %v16323_v35  ;;  %v16373_v35 = vld [vmem:[%s17372_s14 + $0x1470] sm:$0xff]  }
 0x32d   : > { %14811 = vmatprep.subr.bf16.mxu1 %v16325_v36 }
 0x32e   : > { %14790 = vmatpush3.bf16.msra.mxu0 %v16326_v37  ;;  %v16372_v37 = vld [vmem:[%s17372_s14 + $0x14a8] sm:$0xff]  }
 0x32f   : > { %14791 = vmatprep.subr.bf16.mxu0 %v16328_v38 }
 0x330   : > { %14812 = vmatpush3.bf16.msra.mxu1 %v16327_v39 }
 0x331   : > { %14813 = vmatprep.subr.bf16.mxu1 %v16329_v40 }
 0x332   : > { %14792 = vmatpush3.bf16.msra.mxu0 %v16330_v41  ;;  %v16374_v41 = vld [vmem:[%s17372_s14 + $0x14f0] sm:$0xff]  }
 0x333   : > { %14793 = vmatprep.subr.bf16.mxu0 %v16332_v43  ;;  %v16375_v43 = vld [vmem:[%s17372_s14 + $0x1430] sm:$0xff]  }
 0x334   : > { %14814 = vmatpush3.bf16.msra.mxu1 %v16331_v44 }
 0x335   : > { %14815 = vmatprep.subr.bf16.mxu1 %v16333_v45 }
 0x336   : > { %14794 = vmatpush3.bf16.msra.mxu0 %v16334_v46  ;;  %v16376_v46 = vld [vmem:[%s17372_s14 + $0x14b0] sm:$0xff]  }
 0x337   : > { %14795 = vmatprep.subr.bf16.mxu0 %v16336_v47 }
 0x338   : > { %v14493_v51 = vpop.f32.mrb[48].mxu0  ;;  %14816 = vmatpush3.bf16.msra.mxu1 %v16335_v48 }
 0x339   : > { %v14494_v53 = vpop.f32.mrb[49].mxu0  ;;  %14817 = vmatprep.subr.bf16.mxu1 %v16337_v49 }
 0x33a   : > { %v14515_v55 = vpop.f32.mrb[48].mxu1  ;;  %v14495_v56 = vadd.f32 %v14494_v53, %v14493_v51  ;;  %v14496_v57 = vpop.f32.mrb[50].mxu0  ;;  %14796 = vmatpush3.bf16.msra.mxu0 %v16338_v50  ;;  %v16377_v50 = vld [vmem:[%s17372_s14 + $0x1478] sm:$0xff]  }
 0x33b   : > { %v14516_v61 = vpop.f32.mrb[49].mxu1  ;;  %v14497_v62 = vpop.f32.mrb[51].mxu0  ;;  %14797 = vmatprep.subr.bf16.mxu0 %v16340_v52  ;;  %v16378_v52 = vld [vmem:[%s17372_s14 + $0x14f8] sm:$0xff]   ;;  %v16381_v57 = vld [vmem:[%s17372_s14 + $0x1540] sm:$0xff]  }
 0x33c   : > { %v10548_v63 = vadd.f32 %v14495_v56, %v18163_v12  ;;  %v14517_v0 = vadd.f32 %v14516_v61, %v14515_v55  ;;  %v14518_v1 = vpop.f32.mrb[50].mxu1  ;;  %14818 = vmatpush3.bf16.msra.mxu1 %v16339_v54  ;;  %v2984_v12 = vcombine.high %v2968_v7, %v2968_v7  ;;  %v16379_v54 = vld [vmem:[%s17372_s14 + $0x1438] sm:$0xff]   ;;  %v426_v55 = vld [vmem:[%s17442_s18 + $0x50] sm:$0xff] }
 0x33d   : > { %v14519_v60 = vpop.f32.mrb[51].mxu1  ;;  %14819 = vmatprep.subr.bf16.mxu1 %v16341_v58  ;;  %v2994_v56 = vrot.slane %v426_v55, %v17448_v42  ;;  %v2987_v58 = vcombine.high %v426_v55, %v426_v55  ;;  %v16383_v1 = vld [vmem:[%s17372_s14 + $0x1500] sm:$0xff]  }
 0x33e   : > { %v18206_v4 = vadd.f32 %v14517_v0, %v10548_v63  ;;  %14798 = vmatpush3.bf16.msra.mxu0 %v16342_v59  ;;  %v16380_v59 = vld [vmem:[%s17372_s14 + $0x14b8] sm:$0xff]   ;;  %v16382_v63 = vld [vmem:[%s17372_s14 + $0x15c0] sm:$0xff]  }
 0x33f   : > { %14799 = vmatprep.subr.bf16.mxu0 %v16344_v2  ;;  %v3002_v61 = vcombine.high %v2994_v56, %v2994_v56  ;;  %v3010_v62 = vrot.slane %v2994_v56, %v17448_v42  ;;  %v18254_v0 = vrot.slane %v2987_v58, %v17448_v42  ;;  %v16384_v60 = vld [vmem:[%s17372_s14 + $0x1580] sm:$0xff]   ;;  %v16418_v56 = vld [vmem:[%s17372_s14 + $0x1648] sm:$0xff]  }
 0x340   : > { %14820 = vmatpush3.bf16.msra.mxu1 %v16343_v3  ;;  %v16420_v58 = vld [vmem:[%s17372_s14 + $0x1608] sm:$0xff]  }
 0x341   : > { %14821 = vmatprep.subr.bf16.mxu1 %v16345_v5  ;;  %v3024_v2 = vrot.slane %v3002_v61, %v17448_v42  ;;  %v3003_v3 = vcombine.high %v18254_v0, %v18254_v0  ;;  %v16385_v5 = vld [vmem:[%s17372_s14 + $0x1548] sm:$0xff]   ;;  %v16422_v61 = vld [vmem:[%s17372_s14 + $0x1650] sm:$0xff]  }
 0x342   : > { %14800 = vmatpush3.bf16.msra.mxu0 %v16346_v6 }
 0x343   : > { %14829 = vmatprep.subr.bf16.mxu0 %v16349_v8  ;;  %v3034_v6 = vcombine.high %v3024_v2, %v3024_v2  ;;  %v3031_v8 = vrot.slane %v3003_v3, %v17448_v42  ;;  %v16429_v3 = vld [vmem:[%s17372_s14 + $0x1698] sm:$0xff]  }
 0x344   : > { %14822 = vmatpush3.bf16.msra.mxu1 %v16347_v9  ;;  %v16387_v9 = vld [vmem:[%s17372_s14 + $0x1508] sm:$0xff]  }
 0x345   : > { %11106 = vmatmul.mubr.bf16.vlgmr.msra.gmra.mrb[76].mxu0 %v2968_v7  ;;  %14851 = vmatprep.subr.bf16.mxu1 %v16350_v10  ;;  %v16386_v7 = vld [vmem:[%s17372_s14 + $0x15c8] sm:$0xff]  }
 0x346   : > { %14830 = vmatpush3.bf16.msra.mxu0 %v16351_v11  ;;  %11185 = vmatprep.mubr.bf16.mxu0 %v3024_v2  ;;  %v16388_v10 = vld [vmem:[%s17372_s14 + $0x1588] sm:$0xff]   ;;  %v3035_v11 = vcombine.high %v3031_v8, %v3031_v8  ;;  %v16427_v2 = vld [vmem:[%s17372_s14 + $0x16d8] sm:$0xff]  }
 0x347   : > { %11146 = vmatmul.mubr.bf16.vlgmr.msra.gmra.mrb[76].mxu1 %v2984_v12  ;;  %14831 = vmatprep.subr.bf16.mxu0 %v16353_v13  ;;  %v16389_v12 = vld [vmem:[%s17372_s14 + $0x1550] sm:$0xff]  }
 0x348   : > { %14852 = vmatpush3.bf16.msra.mxu1 %v16352_v14  ;;  %11225 = vmatprep.mubr.bf16.mxu1 %v3034_v6  ;;  %v16390_v13 = vld [vmem:[%s17372_s14 + $0x15d0] sm:$0xff]   ;;  %v16432_v6 = vld [vmem:[%s17372_s14 + $0x1620] sm:$0xff]  }
 0x349   : > { %14853 = vmatprep.subr.bf16.mxu1 %v16354_v15  ;;  %v16391_v14 = vld [vmem:[%s17372_s14 + $0x1510] sm:$0xff]  }
 0x34a   : > { %14832 = vmatpush3.bf16.msra.mxu0 %v16355_v16  ;;  %v16392_v15 = vld [vmem:[%s17372_s14 + $0x1590] sm:$0xff]   ;;  %v16393_v16 = vld [vmem:[%s17372_s14 + $0x1558] sm:$0xff]  }
 0x34b   : > { %14833 = vmatprep.subr.bf16.mxu0 %v16357_v17  ;;  %v16394_v17 = vld [vmem:[%s17372_s14 + $0x15d8] sm:$0xff]  }
 0x34c   : > { %14854 = vmatpush3.bf16.msra.mxu1 %v16356_v18  ;;  %v16395_v18 = vld [vmem:[%s17372_s14 + $0x1518] sm:$0xff]  }
 0x34d   : > { %14855 = vmatprep.subr.bf16.mxu1 %v16358_v19  ;;  %v16396_v19 = vld [vmem:[%s17372_s14 + $0x1598] sm:$0xff]  }
 0x34e   : > { %14834 = vmatpush3.bf16.msra.mxu0 %v16359_v20  ;;  %v16397_v20 = vld [vmem:[%s17372_s14 + $0x1560] sm:$0xff]  }
 0x34f   : > { %14835 = vmatprep.subr.bf16.mxu0 %v16361_v21  ;;  %v16398_v21 = vld [vmem:[%s17372_s14 + $0x15e0] sm:$0xff]  }
 0x350   : > { %14856 = vmatpush3.bf16.msra.mxu1 %v16360_v22  ;;  %v16399_v22 = vld [vmem:[%s17372_s14 + $0x1520] sm:$0xff]  }
 0x351   : > { %14857 = vmatprep.subr.bf16.mxu1 %v16362_v23  ;;  %v16400_v23 = vld [vmem:[%s17372_s14 + $0x15a0] sm:$0xff]  }
 0x352   : > { %14836 = vmatpush3.bf16.msra.mxu0 %v16363_v24  ;;  %v16401_v24 = vld [vmem:[%s17372_s14 + $0x1568] sm:$0xff]  }
 0x353   : > { %14837 = vmatprep.subr.bf16.mxu0 %v16365_v25  ;;  %v16402_v25 = vld [vmem:[%s17372_s14 + $0x15e8] sm:$0xff]  }
 0x354   : > { %14858 = vmatpush3.bf16.msra.mxu1 %v16364_v26  ;;  %v16403_v26 = vld [vmem:[%s17372_s14 + $0x1528] sm:$0xff]  }
 0x355   : > { %14859 = vmatprep.subr.bf16.mxu1 %v16366_v27 }
 0x356   : > { %14838 = vmatpush3.bf16.msra.mxu0 %v16367_v28  ;;  %v16404_v28 = vld [vmem:[%s17372_s14 + $0x15a8] sm:$0xff]  }
 0x357   : > { %14839 = vmatprep.subr.bf16.mxu0 %v16369_v29 }
 0x358   : > { %v14537_v33 = vpop.f32.mrb[52].mxu0  ;;  %14860 = vmatpush3.bf16.msra.mxu1 %v16368_v30  ;;  %v16405_v30 = vld [vmem:[%s17372_s14 + $0x1570] sm:$0xff]  }
 0x359   : > { %v14538_v36 = vpop.f32.mrb[53].mxu0  ;;  %14861 = vmatprep.subr.bf16.mxu1 %v16370_v31 }
 0x35a   : > { %v14559_v38 = vpop.f32.mrb[52].mxu1  ;;  %v14539_v39 = vadd.f32 %v14538_v36, %v14537_v33  ;;  %v14540_v40 = vpop.f32.mrb[54].mxu0  ;;  %14840 = vmatpush3.bf16.msra.mxu0 %v16371_v32  ;;  %v16407_v36 = vld [vmem:[%s17372_s14 + $0x1530] sm:$0xff]  }
 0x35b   : > { %v14560_v44 = vpop.f32.mrb[53].mxu1  ;;  %v14541_v45 = vpop.f32.mrb[55].mxu0  ;;  %14841 = vmatprep.subr.bf16.mxu0 %v16373_v35  ;;  %v16406_v35 = vld [vmem:[%s17372_s14 + $0x15f0] sm:$0xff]  }
 0x35c   : > { %v10628_v47 = vadd.f32 %v14539_v39, %v18206_v4  ;;  %v14561_v48 = vadd.f32 %v14560_v44, %v14559_v38  ;;  %v14562_v49 = vpop.f32.mrb[54].mxu1  ;;  %14862 = vmatpush3.bf16.msra.mxu1 %v16372_v37  ;;  %v3032_v4 = vcombine.high %v3010_v62, %v3010_v62  ;;  %v16409_v45 = vld [vmem:[%s17372_s14 + $0x1578] sm:$0xff]  }
 0x35d   : > { %v14563_v51 = vpop.f32.mrb[55].mxu1  ;;  %14863 = vmatprep.subr.bf16.mxu1 %v16374_v41  ;;  %v16412_v49 = vld [vmem:[%s17372_s14 + $0x15b8] sm:$0xff]  }
 0x35e   : > { %v18244_v53 = vadd.f32 %v14561_v48, %v10628_v47  ;;  %14842 = vmatpush3.bf16.msra.mxu0 %v16375_v43  ;;  %v16408_v43 = vld [vmem:[%s17372_s14 + $0x15b0] sm:$0xff]   ;;  %v16410_v47 = vld [vmem:[%s17372_s14 + $0x15f8] sm:$0xff]   ;;  %v16414_v51 = vld [vmem:[%s17372_s14 + $0x1640] sm:$0xff]  }
 0x35f   : > { %14843 = vmatprep.subr.bf16.mxu0 %v16377_v50  ;;  %v16411_v48 = vld [vmem:[%s17372_s14 + $0x1538] sm:$0xff]   ;;  %v3017_v50 = vrot.slane %v18254_v0, %v17448_v42  ;;  %v16425_v0 = vld [vmem:[%s17372_s14 + $0x1690] sm:$0xff]  }
 0x360   : > { %14864 = vmatpush3.bf16.msra.mxu1 %v16376_v46 }
 0x361   : > { %14865 = vmatprep.subr.bf16.mxu1 %v16378_v52  ;;  %v16415_v52 = vld [vmem:[%s17372_s14 + $0x16c0] sm:$0xff]   ;;  %v3033_v55 = vcombine.high %v3017_v50, %v3017_v50 }
 0x362   : > { %14844 = vmatpush3.bf16.msra.mxu0 %v16379_v54  ;;  %v16417_v54 = vld [vmem:[%s17372_s14 + $0x1680] sm:$0xff]  }
 0x363   : > { %14873 = vmatprep.subr.bf16.mxu0 %v16381_v57  ;;  %v16419_v57 = vld [vmem:[%s17372_s14 + $0x16c8] sm:$0xff]  }
 0x364   : > { %14866 = vmatpush3.bf16.msra.mxu1 %v16380_v59  ;;  %v16421_v59 = vld [vmem:[%s17372_s14 + $0x1688] sm:$0xff]  }
 0x365   : > { %14895 = vmatprep.subr.bf16.mxu1 %v16382_v63  ;;  %11186 = vmatmul.mubr.bf16.vlgmr.msra.gmra.mrb[80].mxu0 %v3010_v62  ;;  %v16423_v62 = vld [vmem:[%s17372_s14 + $0x16d0] sm:$0xff]  }
 0x366   : > { %14874 = vmatpush3.bf16.msra.mxu0 %v16383_v1  ;;  %11265 = vmatprep.mubr.bf16.mxu0 %v3031_v8  ;;  %v16424_v63 = vld [vmem:[%s17372_s14 + $0x1610] sm:$0xff]   ;;  %v16426_v1 = vld [vmem:[%s17372_s14 + $0x1658] sm:$0xff]   ;;  %v16434_v8 = vld [vmem:[%s17372_s14 + $0x1668] sm:$0xff]  }
 0x367   : > { %11226 = vmatmul.mubr.bf16.vlgmr.msra.gmra.mrb[80].mxu1 %v3032_v4  ;;  %14875 = vmatprep.subr.bf16.mxu0 %v16385_v5  ;;  %v16430_v4 = vld [vmem:[%s17372_s14 + $0x1660] sm:$0xff]  }
 0x368   : > { %14896 = vmatpush3.bf16.msra.mxu1 %v16384_v60  ;;  %11305 = vmatprep.mubr.bf16.mxu1 %v3035_v11  ;;  %v16428_v60 = vld [vmem:[%s17372_s14 + $0x1618] sm:$0xff]   ;;  %v16431_v5 = vld [vmem:[%s17372_s14 + $0x16e0] sm:$0xff]  }
 0x369   : > { %14897 = vmatprep.subr.bf16.mxu1 %v16386_v7  ;;  %v16433_v7 = vld [vmem:[%s17372_s14 + $0x16a0] sm:$0xff]  }
 0x36a   : > { %14876 = vmatpush3.bf16.msra.mxu0 %v16387_v9  ;;  %v16435_v9 = vld [vmem:[%s17372_s14 + $0x16e8] sm:$0xff]  }
 0x36b   : > { %14877 = vmatprep.subr.bf16.mxu0 %v16389_v12  ;;  %v16437_v12 = vld [vmem:[%s17372_s14 + $0x16a8] sm:$0xff]  }
 0x36c   : > { %14898 = vmatpush3.bf16.msra.mxu1 %v16388_v10  ;;  %v16436_v10 = vld [vmem:[%s17372_s14 + $0x1628] sm:$0xff]  }
 0x36d   : > { %14899 = vmatprep.subr.bf16.mxu1 %v16390_v13 }
 0x36e   : > { %14878 = vmatpush3.bf16.msra.mxu0 %v16391_v14  ;;  %v16438_v14 = vld [vmem:[%s17372_s14 + $0x1670] sm:$0xff]  }
 0x36f   : > { %14879 = vmatprep.subr.bf16.mxu0 %v16393_v16 }
 0x370   : > { %14900 = vmatpush3.bf16.msra.mxu1 %v16392_v15 }
 0x371   : > { %14901 = vmatprep.subr.bf16.mxu1 %v16394_v17 }
 0x372   : > { %14880 = vmatpush3.bf16.msra.mxu0 %v16395_v18  ;;  %v16439_v18 = vld [vmem:[%s17372_s14 + $0x16f0] sm:$0xff]  }
 0x373   : > { %14881 = vmatprep.subr.bf16.mxu0 %v16397_v20 }
 0x374   : > { %14902 = vmatpush3.bf16.msra.mxu1 %v16396_v19  ;;  %v16440_v19 = vld [vmem:[%s17372_s14 + $0x1630] sm:$0xff]  }
 0x375   : > { %14903 = vmatprep.subr.bf16.mxu1 %v16398_v21 }
 0x376   : > { %14882 = vmatpush3.bf16.msra.mxu0 %v16399_v22 }
 0x377   : > { %14883 = vmatprep.subr.bf16.mxu0 %v16401_v24 }
 0x378   : > { %v14581_v27 = vpop.f32.mrb[56].mxu0  ;;  %14904 = vmatpush3.bf16.msra.mxu1 %v16400_v23 }
 0x379   : > { %v14582_v29 = vpop.f32.mrb[57].mxu0  ;;  %14905 = vmatprep.subr.bf16.mxu1 %v16402_v25  ;;  %v16441_v25 = vld [vmem:[%s17372_s14 + $0x16b0] sm:$0xff]  }
 0x37a   : > { %v14603_v31 = vpop.f32.mrb[56].mxu1  ;;  %v14583_v32 = vadd.f32 %v14582_v29, %v14581_v27  ;;  %v14584_v33 = vpop.f32.mrb[58].mxu0  ;;  %14884 = vmatpush3.bf16.msra.mxu0 %v16403_v26  ;;  %v16442_v27 = vld [vmem:[%s17372_s14 + $0x1678] sm:$0xff]  }
 0x37b   : > { %v14604_v37 = vpop.f32.mrb[57].mxu1  ;;  %v14585_v38 = vpop.f32.mrb[59].mxu0  ;;  %14885 = vmatprep.subr.bf16.mxu0 %v16405_v30  ;;  %v16443_v29 = vld [vmem:[%s17372_s14 + $0x16f8] sm:$0xff]   ;;  %v16446_v33 = vld [vmem:[%s17372_s14 + $0x1740] sm:$0xff]  }
 0x37c   : > { %v10708_v39 = vadd.f32 %v14583_v32, %v18244_v53  ;;  %v14605_v40 = vadd.f32 %v14604_v37, %v14603_v31  ;;  %v14606_v41 = vpop.f32.mrb[58].mxu1  ;;  %14906 = vmatpush3.bf16.msra.mxu1 %v16404_v28  ;;  %v16416_v53 = vld [vmem:[%s17372_s14 + $0x1600] sm:$0xff]   ;;  %v16444_v30 = vld [vmem:[%s17372_s14 + $0x1638] sm:$0xff]  }
 0x37d   : > { %v14607_v44 = vpop.f32.mrb[59].mxu1  ;;  %14907 = vmatprep.subr.bf16.mxu1 %v16406_v35  ;;  %v427_v31 = vld [vmem:[%s17442_s18 + $0x58] sm:$0xff]  ;;  %v16448_v41 = vld [vmem:[%s17372_s14 + $0x1700] sm:$0xff]  }
 0x37e   : > { %v18288_v46 = vadd.f32 %v14605_v40, %v10708_v39  ;;  %14886 = vmatpush3.bf16.msra.mxu0 %v16407_v36  ;;  %v3043_v32 = vrot.slane %v427_v31, %v17448_v42  ;;  %v3036_v35 = vcombine.high %v427_v31, %v427_v31  ;;  %v16445_v36 = vld [vmem:[%s17372_s14 + $0x16b8] sm:$0xff]   ;;  %v16447_v39 = vld [vmem:[%s17372_s14 + $0x17c0] sm:$0xff]  }
 0x37f   : > { %14887 = vmatprep.subr.bf16.mxu0 %v16409_v45  ;;  %v16449_v44 = vld [vmem:[%s17372_s14 + $0x1780] sm:$0xff]  }
 0x380   : > { %14908 = vmatpush3.bf16.msra.mxu1 %v16408_v43  ;;  %v3051_v37 = vcombine.high %v3043_v32, %v3043_v32  ;;  %v3059_v38 = vrot.slane %v3043_v32, %v17448_v42  ;;  %v18336_v40 = vrot.slane %v3036_v35, %v17448_v42  ;;  %v16483_v32 = vld [vmem:[%s17372_s14 + $0x1848] sm:$0xff]  }
 0x381   : > { %14909 = vmatprep.subr.bf16.mxu1 %v16410_v47  ;;  %v16450_v47 = vld [vmem:[%s17372_s14 + $0x1748] sm:$0xff]  }
 0x382   : > { %14888 = vmatpush3.bf16.msra.mxu0 %v16411_v48  ;;  %v3073_v43 = vrot.slane %v3051_v37, %v17448_v42  ;;  %v3052_v45 = vcombine.high %v18336_v40, %v18336_v40  ;;  %v16485_v35 = vld [vmem:[%s17372_s14 + $0x1808] sm:$0xff]   ;;  %v16487_v37 = vld [vmem:[%s17372_s14 + $0x1850] sm:$0xff]  }
 0x383   : > { %14917 = vmatprep.subr.bf16.mxu0 %v16414_v51  ;;  %v16452_v51 = vld [vmem:[%s17372_s14 + $0x1708] sm:$0xff]  }
 0x384   : > { %14910 = vmatpush3.bf16.msra.mxu1 %v16412_v49  ;;  %v3083_v48 = vcombine.high %v3073_v43, %v3073_v43  ;;  %v16451_v49 = vld [vmem:[%s17372_s14 + $0x17c8] sm:$0xff]  }
 0x385   : > { %11266 = vmatmul.mubr.bf16.vlgmr.msra.gmra.mrb[84].mxu0 %v3017_v50  ;;  %14939 = vmatprep.subr.bf16.mxu1 %v16415_v52  ;;  %v3080_v50 = vrot.slane %v3052_v45, %v17448_v42  ;;  %v16453_v52 = vld [vmem:[%s17372_s14 + $0x1788] sm:$0xff]   ;;  %v16494_v45 = vld [vmem:[%s17372_s14 + $0x1898] sm:$0xff]  }
 0x386   : > { %14918 = vmatpush3.bf16.msra.mxu0 %v16416_v53  ;;  %11345 = vmatprep.mubr.bf16.mxu0 %v3073_v43  ;;  %v16492_v43 = vld [vmem:[%s17372_s14 + $0x18d8] sm:$0xff]  }
 0x387   : > { %11306 = vmatmul.mubr.bf16.vlgmr.msra.gmra.mrb[84].mxu1 %v3033_v55  ;;  %14919 = vmatprep.subr.bf16.mxu0 %v16418_v56  ;;  %v3084_v53 = vcombine.high %v3080_v50, %v3080_v50  ;;  %v16455_v55 = vld [vmem:[%s17372_s14 + $0x17d0] sm:$0xff]  }
 0x388   : > { %14940 = vmatpush3.bf16.msra.mxu1 %v16417_v54  ;;  %11385 = vmatprep.mubr.bf16.mxu1 %v3083_v48  ;;  %v16454_v54 = vld [vmem:[%s17372_s14 + $0x1750] sm:$0xff]   ;;  %v16497_v48 = vld [vmem:[%s17372_s14 + $0x1820] sm:$0xff]  }
 0x389   : > { %14941 = vmatprep.subr.bf16.mxu1 %v16419_v57  ;;  %v16456_v56 = vld [vmem:[%s17372_s14 + $0x1710] sm:$0xff]  }
 0x38a   : > { %14920 = vmatpush3.bf16.msra.mxu0 %v16420_v58  ;;  %v16457_v57 = vld [vmem:[%s17372_s14 + $0x1790] sm:$0xff]   ;;  %v16458_v58 = vld [vmem:[%s17372_s14 + $0x1758] sm:$0xff]  }
 0x38b   : > { %14921 = vmatprep.subr.bf16.mxu0 %v16422_v61  ;;  %v16460_v61 = vld [vmem:[%s17372_s14 + $0x1718] sm:$0xff]  }
 0x38c   : > { %14942 = vmatpush3.bf16.msra.mxu1 %v16421_v59  ;;  %v16459_v59 = vld [vmem:[%s17372_s14 + $0x17d8] sm:$0xff]  }
 0x38d   : > { %14943 = vmatprep.subr.bf16.mxu1 %v16423_v62  ;;  %v16461_v62 = vld [vmem:[%s17372_s14 + $0x1798] sm:$0xff]  }
 0x38e   : > { %14922 = vmatpush3.bf16.msra.mxu0 %v16424_v63  ;;  %v16462_v63 = vld [vmem:[%s17372_s14 + $0x1760] sm:$0xff]  }
 0x38f   : > { %14923 = vmatprep.subr.bf16.mxu0 %v16426_v1  ;;  %v16464_v1 = vld [vmem:[%s17372_s14 + $0x1720] sm:$0xff]  }
 0x390   : > { %14944 = vmatpush3.bf16.msra.mxu1 %v16425_v0  ;;  %v16463_v0 = vld [vmem:[%s17372_s14 + $0x17e0] sm:$0xff]  }
 0x391   : > { %14945 = vmatprep.subr.bf16.mxu1 %v16427_v2  ;;  %v16465_v2 = vld [vmem:[%s17372_s14 + $0x17a0] sm:$0xff]  }
 0x392   : > { %14924 = vmatpush3.bf16.msra.mxu0 %v16428_v60  ;;  %v16466_v60 = vld [vmem:[%s17372_s14 + $0x1768] sm:$0xff]  }
 0x393   : > { %14925 = vmatprep.subr.bf16.mxu0 %v16430_v4 }
 0x394   : > { %14946 = vmatpush3.bf16.msra.mxu1 %v16429_v3  ;;  %v16467_v3 = vld [vmem:[%s17372_s14 + $0x17e8] sm:$0xff]  }
 0x395   : > { %14947 = vmatprep.subr.bf16.mxu1 %v16431_v5  ;;  %v16468_v5 = vld [vmem:[%s17372_s14 + $0x1728] sm:$0xff]  }
 0x396   : > { %14926 = vmatpush3.bf16.msra.mxu0 %v16432_v6 }
 0x397   : > { %14927 = vmatprep.subr.bf16.mxu0 %v16434_v8 }
 0x398   : > { %v14625_v11 = vpop.f32.mrb[60].mxu0  ;;  %14948 = vmatpush3.bf16.msra.mxu1 %v16433_v7  ;;  %v16469_v7 = vld [vmem:[%s17372_s14 + $0x17a8] sm:$0xff]  }
 0x399   : > { %v14626_v13 = vpop.f32.mrb[61].mxu0  ;;  %14949 = vmatprep.subr.bf16.mxu1 %v16435_v9 }
 0x39a   : > { %v14647_v15 = vpop.f32.mrb[60].mxu1  ;;  %v14627_v16 = vadd.f32 %v14626_v13, %v14625_v11  ;;  %v14628_v17 = vpop.f32.mrb[62].mxu0  ;;  %14928 = vmatpush3.bf16.msra.mxu0 %v16436_v10  ;;  %v16470_v11 = vld [vmem:[%s17372_s14 + $0x1770] sm:$0xff]  }
 0x39b   : > { %v14648_v20 = vpop.f32.mrb[61].mxu1  ;;  %v14629_v21 = vpop.f32.mrb[63].mxu0  ;;  %14929 = vmatprep.subr.bf16.mxu0 %v16438_v14 }
 0x39c   : > { %v10788_v22 = vadd.f32 %v14627_v16, %v18288_v46  ;;  %v14649_v23 = vadd.f32 %v14648_v20, %v14647_v15  ;;  %v14650_v24 = vpop.f32.mrb[62].mxu1  ;;  %14950 = vmatpush3.bf16.msra.mxu1 %v16437_v12  ;;  %v3081_v46 = vcombine.high %v3059_v38, %v3059_v38  ;;  %v16471_v12 = vld [vmem:[%s17372_s14 + $0x17f0] sm:$0xff]  }
 0x39d   : > { %v14651_v26 = vpop.f32.mrb[63].mxu1  ;;  %14951 = vmatprep.subr.bf16.mxu1 %v16439_v18  ;;  %v16472_v18 = vld [vmem:[%s17372_s14 + $0x1730] sm:$0xff]   ;;  %v16476_v24 = vld [vmem:[%s17372_s14 + $0x1738] sm:$0xff]  }
 0x39e   : > { %v18325_v28 = vadd.f32 %v14649_v23, %v10788_v22  ;;  %14930 = vmatpush3.bf16.msra.mxu0 %v16440_v19  ;;  %v16473_v20 = vld [vmem:[%s17372_s14 + $0x17b0] sm:$0xff]   ;;  %v16474_v22 = vld [vmem:[%s17372_s14 + $0x1778] sm:$0xff]   ;;  %v3066_v26 = vrot.slane %v18336_v40, %v17448_v42 }
 0x39f   : > { %14931 = vmatprep.subr.bf16.mxu0 %v16442_v27  ;;  %v16475_v23 = vld [vmem:[%s17372_s14 + $0x17f8] sm:$0xff]   ;;  %v16479_v27 = vld [vmem:[%s17372_s14 + $0x1840] sm:$0xff]   ;;  %v16490_v40 = vld [vmem:[%s17372_s14 + $0x1890] sm:$0xff]  }
 0x3a0   : > { %14952 = vmatpush3.bf16.msra.mxu1 %v16441_v25  ;;  %v16477_v25 = vld [vmem:[%s17372_s14 + $0x17b8] sm:$0xff]   ;;  %v3082_v31 = vcombine.high %v3066_v26, %v3066_v26 }
 0x3a1   : > { %14953 = vmatprep.subr.bf16.mxu1 %v16443_v29  ;;  %v16481_v29 = vld [vmem:[%s17372_s14 + $0x1800] sm:$0xff]  }
 0x3a2   : > { %14932 = vmatpush3.bf16.msra.mxu0 %v16444_v30  ;;  %v16482_v30 = vld [vmem:[%s17372_s14 + $0x1880] sm:$0xff]  }
 0x3a3   : > { %14961 = vmatprep.subr.bf16.mxu0 %v16446_v33  ;;  %v16484_v33 = vld [vmem:[%s17372_s14 + $0x18c8] sm:$0xff]  }
 0x3a4   : > { %14954 = vmatpush3.bf16.msra.mxu1 %v16445_v36  ;;  %v16486_v36 = vld [vmem:[%s17372_s14 + $0x1888] sm:$0xff]  }
 0x3a5   : > { %14983 = vmatprep.subr.bf16.mxu1 %v16447_v39  ;;  %11346 = vmatmul.mubr.bf16.vlgmr.msra.gmra.mrb[88].mxu0 %v3059_v38  ;;  %v16488_v38 = vld [vmem:[%s17372_s14 + $0x18d0] sm:$0xff]  }
 0x3a6   : > { %14962 = vmatpush3.bf16.msra.mxu0 %v16448_v41  ;;  %11425 = vmatprep.mubr.bf16.mxu0 %v3080_v50  ;;  %v16489_v39 = vld [vmem:[%s17372_s14 + $0x1810] sm:$0xff]   ;;  %v16491_v41 = vld [vmem:[%s17372_s14 + $0x1858] sm:$0xff]   ;;  %v16499_v50 = vld [vmem:[%s17372_s14 + $0x1868] sm:$0xff]  }
 0x3a7   : > { %11386 = vmatmul.mubr.bf16.vlgmr.msra.gmra.mrb[88].mxu1 %v3081_v46  ;;  %14963 = vmatprep.subr.bf16.mxu0 %v16450_v47  ;;  %v16495_v46 = vld [vmem:[%s17372_s14 + $0x1860] sm:$0xff]  }
 0x3a8   : > { %14984 = vmatpush3.bf16.msra.mxu1 %v16449_v44  ;;  %11465 = vmatprep.mubr.bf16.mxu1 %v3084_v53  ;;  %v16493_v44 = vld [vmem:[%s17372_s14 + $0x1818] sm:$0xff]   ;;  %v16496_v47 = vld [vmem:[%s17372_s14 + $0x18e0] sm:$0xff]   ;;  %v16501_v53 = vld [vmem:[%s17372_s14 + $0x1828] sm:$0xff]  }
 0x3a9   : > { %14985 = vmatprep.subr.bf16.mxu1 %v16451_v49  ;;  %v16498_v49 = vld [vmem:[%s17372_s14 + $0x18a0] sm:$0xff]  }
 0x3aa   : > { %14964 = vmatpush3.bf16.msra.mxu0 %v16452_v51  ;;  %v16500_v51 = vld [vmem:[%s17372_s14 + $0x18e8] sm:$0xff]  }
 0x3ab   : > { %14965 = vmatprep.subr.bf16.mxu0 %v16454_v54 }
 0x3ac   : > { %14986 = vmatpush3.bf16.msra.mxu1 %v16453_v52 }
 0x3ad   : > { %14987 = vmatprep.subr.bf16.mxu1 %v16455_v55  ;;  %v16502_v55 = vld [vmem:[%s17372_s14 + $0x18a8] sm:$0xff]  }
 0x3ae   : > { %14966 = vmatpush3.bf16.msra.mxu0 %v16456_v56 }
 0x3af   : > { %14967 = vmatprep.subr.bf16.mxu0 %v16458_v58 }
 0x3b0   : > { %14988 = vmatpush3.bf16.msra.mxu1 %v16457_v57 }
 0x3b1   : > { %14989 = vmatprep.subr.bf16.mxu1 %v16459_v59  ;;  %v16503_v59 = vld [vmem:[%s17372_s14 + $0x1870] sm:$0xff]  }
 0x3b2   : > { %14968 = vmatpush3.bf16.msra.mxu0 %v16460_v61  ;;  %v16504_v61 = vld [vmem:[%s17372_s14 + $0x18f0] sm:$0xff]  }
 0x3b3   : > { %14969 = vmatprep.subr.bf16.mxu0 %v16462_v63 }
 0x3b4   : > { %14990 = vmatpush3.bf16.msra.mxu1 %v16461_v62 }
 0x3b5   : > { %14991 = vmatprep.subr.bf16.mxu1 %v16463_v0 }
 0x3b6   : > { %14970 = vmatpush3.bf16.msra.mxu0 %v16464_v1 }
 0x3b7   : > { %14971 = vmatprep.subr.bf16.mxu0 %v16466_v60  ;;  %v16505_v60 = vld [vmem:[%s17372_s14 + $0x1830] sm:$0xff]  }
 0x3b8   : > { %v14669_v4 = vpop.f32.mrb[64].mxu0  ;;  %14992 = vmatpush3.bf16.msra.mxu1 %v16465_v2 }
 0x3b9   : > { %v14670_v6 = vpop.f32.mrb[65].mxu0  ;;  %14993 = vmatprep.subr.bf16.mxu1 %v16467_v3 }
 0x3ba   : > { %v14691_v8 = vpop.f32.mrb[64].mxu1  ;;  %v14671_v9 = vadd.f32 %v14670_v6, %v14669_v4  ;;  %v14672_v10 = vpop.f32.mrb[66].mxu0  ;;  %14972 = vmatpush3.bf16.msra.mxu0 %v16468_v5  ;;  %v16506_v4 = vld [vmem:[%s17372_s14 + $0x18b0] sm:$0xff]   ;;  %v16507_v6 = vld [vmem:[%s17372_s14 + $0x1878] sm:$0xff]  }
 0x3bb   : > { %v14692_v13 = vpop.f32.mrb[65].mxu1  ;;  %v14673_v14 = vpop.f32.mrb[67].mxu0  ;;  %14973 = vmatprep.subr.bf16.mxu0 %v16470_v11  ;;  %v16511_v11 = vld [vmem:[%s17372_s14 + $0x1940] sm:$0xff]  }
 0x3bc   : > { %v10868_v15 = vadd.f32 %v14671_v9, %v18325_v28  ;;  %v14693_v16 = vadd.f32 %v14692_v13, %v14691_v8  ;;  %v14694_v17 = vpop.f32.mrb[66].mxu1  ;;  %14994 = vmatpush3.bf16.msra.mxu1 %v16469_v7  ;;  %v16480_v28 = vld [vmem:[%s17372_s14 + $0x18c0] sm:$0xff]   ;;  %v16508_v7 = vld [vmem:[%s17372_s14 + $0x18f8] sm:$0xff]  }
 0x3bd   : > { %v14695_v19 = vpop.f32.mrb[67].mxu1  ;;  %14995 = vmatprep.subr.bf16.mxu1 %v16471_v12  ;;  %v16509_v8 = vld [vmem:[%s17372_s14 + $0x1838] sm:$0xff]  }
 0x3be   : > { %v18369_v21 = vadd.f32 %v14693_v16, %v10868_v15  ;;  %14974 = vmatpush3.bf16.msra.mxu0 %v16472_v18  ;;  %v428_v9 = vld [vmem:[%s17442_s18 + $0x60] sm:$0xff] }
 0x3bf   : > { %14975 = vmatprep.subr.bf16.mxu0 %v16474_v22  ;;  %v3092_v10 = vrot.slane %v428_v9, %v17448_v42  ;;  %v3085_v12 = vcombine.high %v428_v9, %v428_v9  ;;  %v16510_v13 = vld [vmem:[%s17372_s14 + $0x18b8] sm:$0xff]   ;;  %v16512_v16 = vld [vmem:[%s17372_s14 + $0x19c0] sm:$0xff]  }
 0x3c0   : > { %14996 = vmatpush3.bf16.msra.mxu1 %v16473_v20  ;;  %v16513_v18 = vld [vmem:[%s17372_s14 + $0x1900] sm:$0xff]  }
 0x3c1   : > { %14997 = vmatprep.subr.bf16.mxu1 %v16475_v23  ;;  %v3100_v14 = vcombine.high %v3092_v10, %v3092_v10  ;;  %v3108_v15 = vrot.slane %v3092_v10, %v17448_v42  ;;  %v18418_v17 = vrot.slane %v3085_v12, %v17448_v42  ;;  %v16514_v20 = vld [vmem:[%s17372_s14 + $0x1980] sm:$0xff]   ;;  %v16515_v23 = vld [vmem:[%s17372_s14 + $0x1948] sm:$0xff]  }
 0x3c2   : > { %14976 = vmatpush3.bf16.msra.mxu0 %v16476_v24  ;;  %v16548_v10 = vld [vmem:[%s17372_s14 + $0x1a48] sm:$0xff]  }
 0x3c3   : > { %15005 = vmatprep.subr.bf16.mxu0 %v16479_v27  ;;  %v3122_v19 = vrot.slane %v3100_v14, %v17448_v42  ;;  %v3130_v22 = vcombine.high %v3108_v15, %v3108_v15  ;;  %v16517_v27 = vld [vmem:[%s17372_s14 + $0x1908] sm:$0xff]   ;;  %v16552_v14 = vld [vmem:[%s17372_s14 + $0x1a50] sm:$0xff]  }
 0x3c4   : > { %14998 = vmatpush3.bf16.msra.mxu1 %v16477_v25  ;;  %v16516_v25 = vld [vmem:[%s17372_s14 + $0x19c8] sm:$0xff]  }
 0x3c5   : > { %11426 = vmatmul.mubr.bf16.vlgmr.msra.gmra.mrb[92].mxu0 %v3066_v26  ;;  %15027 = vmatprep.subr.bf16.mxu1 %v16480_v28  ;;  %v3132_v24 = vcombine.high %v3122_v19, %v3122_v19  ;;  %v16518_v28 = vld [vmem:[%s17372_s14 + $0x1988] sm:$0xff]  }
 0x3c6   : > { %15006 = vmatpush3.bf16.msra.mxu0 %v16481_v29  ;;  %11505 = vmatprep.mubr.bf16.mxu0 %v3122_v19  ;;  %v16550_v12 = vld [vmem:[%s17372_s14 + $0x1a08] sm:$0xff]   ;;  %v16557_v19 = vld [vmem:[%s17372_s14 + $0x1ad8] sm:$0xff]  }
 0x3c7   : > { %11466 = vmatmul.mubr.bf16.vlgmr.msra.gmra.mrb[92].mxu1 %v3082_v31  ;;  %15007 = vmatprep.subr.bf16.mxu0 %v16483_v32  ;;  %v16520_v31 = vld [vmem:[%s17372_s14 + $0x19d0] sm:$0xff]  }
 0x3c8   : > { %15028 = vmatpush3.bf16.msra.mxu1 %v16482_v30  ;;  %11545 = vmatprep.mubr.bf16.mxu1 %v3132_v24  ;;  %v16519_v30 = vld [vmem:[%s17372_s14 + $0x1950] sm:$0xff]   ;;  %v16562_v24 = vld [vmem:[%s17372_s14 + $0x1a20] sm:$0xff]  }
 0x3c9   : > { %15029 = vmatprep.subr.bf16.mxu1 %v16484_v33  ;;  %v16521_v32 = vld [vmem:[%s17372_s14 + $0x1910] sm:$0xff]  }
 0x3ca   : > { %15008 = vmatpush3.bf16.msra.mxu0 %v16485_v35  ;;  %v16522_v33 = vld [vmem:[%s17372_s14 + $0x1990] sm:$0xff]   ;;  %v16523_v35 = vld [vmem:[%s17372_s14 + $0x1958] sm:$0xff]  }
 0x3cb   : > { %15009 = vmatprep.subr.bf16.mxu0 %v16487_v37  ;;  %v16525_v37 = vld [vmem:[%s17372_s14 + $0x1918] sm:$0xff]  }
 0x3cc   : > { %15030 = vmatpush3.bf16.msra.mxu1 %v16486_v36  ;;  %v16524_v36 = vld [vmem:[%s17372_s14 + $0x19d8] sm:$0xff]  }
 0x3cd   : > { %15031 = vmatprep.subr.bf16.mxu1 %v16488_v38  ;;  %v16526_v38 = vld [vmem:[%s17372_s14 + $0x1998] sm:$0xff]  }
 0x3ce   : > { %15010 = vmatpush3.bf16.msra.mxu0 %v16489_v39  ;;  %v16527_v39 = vld [vmem:[%s17372_s14 + $0x1960] sm:$0xff]  }
 0x3cf   : > { %15011 = vmatprep.subr.bf16.mxu0 %v16491_v41  ;;  %v16529_v41 = vld [vmem:[%s17372_s14 + $0x1920] sm:$0xff]  }
 0x3d0   : > { %15032 = vmatpush3.bf16.msra.mxu1 %v16490_v40  ;;  %v16528_v40 = vld [vmem:[%s17372_s14 + $0x19e0] sm:$0xff]  }
 0x3d1   : > { %15033 = vmatprep.subr.bf16.mxu1 %v16492_v43  ;;  %v16530_v43 = vld [vmem:[%s17372_s14 + $0x19a0] sm:$0xff]  }
 0x3d2   : > { %15012 = vmatpush3.bf16.msra.mxu0 %v16493_v44  ;;  %v16531_v44 = vld [vmem:[%s17372_s14 + $0x1968] sm:$0xff]  }
 0x3d3   : > { %15013 = vmatprep.subr.bf16.mxu0 %v16495_v46 }
 0x3d4   : > { %15034 = vmatpush3.bf16.msra.mxu1 %v16494_v45  ;;  %v16532_v45 = vld [vmem:[%s17372_s14 + $0x19e8] sm:$0xff]  }
 0x3d5   : > { %15035 = vmatprep.subr.bf16.mxu1 %v16496_v47  ;;  %v16533_v47 = vld [vmem:[%s17372_s14 + $0x1928] sm:$0xff]  }
 0x3d6   : > { %15014 = vmatpush3.bf16.msra.mxu0 %v16497_v48 }
 0x3d7   : > { %15015 = vmatprep.subr.bf16.mxu0 %v16499_v50 }
 0x3d8   : > { %v14713_v52 = vpop.f32.mrb[68].mxu0  ;;  %15036 = vmatpush3.bf16.msra.mxu1 %v16498_v49  ;;  %v16534_v49 = vld [vmem:[%s17372_s14 + $0x19a8] sm:$0xff]  }
 0x3d9   : > { %v14714_v54 = vpop.f32.mrb[69].mxu0  ;;  %15037 = vmatprep.subr.bf16.mxu1 %v16500_v51 }
 0x3da   : > { %v14735_v56 = vpop.f32.mrb[68].mxu1  ;;  %v14715_v57 = vadd.f32 %v14714_v54, %v14713_v52  ;;  %v14716_v58 = vpop.f32.mrb[70].mxu0  ;;  %15016 = vmatpush3.bf16.msra.mxu0 %v16501_v53  ;;  %v16535_v53 = vld [vmem:[%s17372_s14 + $0x1970] sm:$0xff]  }
 0x3db   : > { %v14736_v62 = vpop.f32.mrb[69].mxu1  ;;  %v14717_v63 = vpop.f32.mrb[71].mxu0  ;;  %15017 = vmatprep.subr.bf16.mxu0 %v16503_v59  ;;  %v16536_v54 = vld [vmem:[%s17372_s14 + $0x19f0] sm:$0xff]  }
 0x3dc   : > { %v10948_v0 = vadd.f32 %v14715_v57, %v18369_v21  ;;  %v14737_v1 = vadd.f32 %v14736_v62, %v14735_v56  ;;  %v14738_v2 = vpop.f32.mrb[70].mxu1  ;;  %15038 = vmatpush3.bf16.msra.mxu1 %v16502_v55  ;;  %v3101_v21 = vcombine.high %v18418_v17, %v18418_v17  ;;  %v16538_v63 = vld [vmem:[%s17372_s14 + $0x19b0] sm:$0xff]  }
 0x3dd   : > { %v14739_v3 = vpop.f32.mrb[71].mxu1  ;;  %15039 = vmatprep.subr.bf16.mxu1 %v16504_v61  ;;  %v16537_v61 = vld [vmem:[%s17372_s14 + $0x1930] sm:$0xff]   ;;  %v16540_v2 = vld [vmem:[%s17372_s14 + $0x19f8] sm:$0xff]  }
 0x3de   : > { %v18406_v5 = vadd.f32 %v14737_v1, %v10948_v0  ;;  %15018 = vmatpush3.bf16.msra.mxu0 %v16505_v60  ;;  %v3129_v26 = vrot.slane %v3101_v21, %v17448_v42  ;;  %v16539_v1 = vld [vmem:[%s17372_s14 + $0x1978] sm:$0xff]  }
 0x3df   : > { %15019 = vmatprep.subr.bf16.mxu0 %v16507_v6  ;;  %v16541_v60 = vld [vmem:[%s17372_s14 + $0x1938] sm:$0xff]   ;;  %v16545_v6 = vld [vmem:[%s17372_s14 + $0x1ac0] sm:$0xff]  }
 0x3e0   : > { %15040 = vmatpush3.bf16.msra.mxu1 %v16506_v4  ;;  %v3133_v29 = vcombine.high %v3129_v26, %v3129_v26  ;;  %v16542_v3 = vld [vmem:[%s17372_s14 + $0x19b8] sm:$0xff]   ;;  %v3115_v4 = vrot.slane %v18418_v17, %v17448_v42  ;;  %v16555_v17 = vld [vmem:[%s17372_s14 + $0x1a90] sm:$0xff]  }
 0x3e1   : > { %15041 = vmatprep.subr.bf16.mxu1 %v16508_v7  ;;  %v16546_v7 = vld [vmem:[%s17372_s14 + $0x1a00] sm:$0xff]   ;;  %v16559_v21 = vld [vmem:[%s17372_s14 + $0x1a98] sm:$0xff]  }
 0x3e2   : > { %15020 = vmatpush3.bf16.msra.mxu0 %v16509_v8  ;;  %v16547_v8 = vld [vmem:[%s17372_s14 + $0x1a80] sm:$0xff]   ;;  %v3131_v9 = vcombine.high %v3115_v4, %v3115_v4 }
 0x3e3   : > { %15049 = vmatprep.subr.bf16.mxu0 %v16511_v11  ;;  %v16549_v11 = vld [vmem:[%s17372_s14 + $0x1ac8] sm:$0xff]  }
 0x3e4   : > { %15042 = vmatpush3.bf16.msra.mxu1 %v16510_v13  ;;  %v16551_v13 = vld [vmem:[%s17372_s14 + $0x1a88] sm:$0xff]  }
 0x3e5   : > { %15071 = vmatprep.subr.bf16.mxu1 %v16512_v16  ;;  %11506 = vmatmul.mubr.bf16.vlgmr.msra.gmra.mrb[96].mxu0 %v3108_v15  ;;  %v16553_v15 = vld [vmem:[%s17372_s14 + $0x1ad0] sm:$0xff]  }
 0x3e6   : > { %15050 = vmatpush3.bf16.msra.mxu0 %v16513_v18  ;;  %11585 = vmatprep.mubr.bf16.mxu0 %v3129_v26  ;;  %v16554_v16 = vld [vmem:[%s17372_s14 + $0x1a10] sm:$0xff]   ;;  %v16556_v18 = vld [vmem:[%s17372_s14 + $0x1a58] sm:$0xff]   ;;  %v16564_v26 = vld [vmem:[%s17372_s14 + $0x1a68] sm:$0xff]  }
 0x3e7   : > { %11546 = vmatmul.mubr.bf16.vlgmr.msra.gmra.mrb[96].mxu1 %v3130_v22  ;;  %15051 = vmatprep.subr.bf16.mxu0 %v16515_v23  ;;  %v16560_v22 = vld [vmem:[%s17372_s14 + $0x1a60] sm:$0xff]  }
 0x3e8   : > { %15072 = vmatpush3.bf16.msra.mxu1 %v16514_v20  ;;  %11625 = vmatprep.mubr.bf16.mxu1 %v3133_v29  ;;  %v16558_v20 = vld [vmem:[%s17372_s14 + $0x1a18] sm:$0xff]   ;;  %v16561_v23 = vld [vmem:[%s17372_s14 + $0x1ae0] sm:$0xff]   ;;  %v16566_v29 = vld [vmem:[%s17372_s14 + $0x1a28] sm:$0xff]  }
 0x3e9   : > { %15073 = vmatprep.subr.bf16.mxu1 %v16516_v25  ;;  %v16563_v25 = vld [vmem:[%s17372_s14 + $0x1aa0] sm:$0xff]  }
 0x3ea   : > { %15052 = vmatpush3.bf16.msra.mxu0 %v16517_v27  ;;  %v16565_v27 = vld [vmem:[%s17372_s14 + $0x1ae8] sm:$0xff]  }
 0x3eb   : > { %15053 = vmatprep.subr.bf16.mxu0 %v16519_v30 }
 0x3ec   : > { %15074 = vmatpush3.bf16.msra.mxu1 %v16518_v28 }
 0x3ed   : > { %15075 = vmatprep.subr.bf16.mxu1 %v16520_v31  ;;  %v16567_v31 = vld [vmem:[%s17372_s14 + $0x1aa8] sm:$0xff]  }
 0x3ee   : > { %15054 = vmatpush3.bf16.msra.mxu0 %v16521_v32 }
 0x3ef   : > { %15055 = vmatprep.subr.bf16.mxu0 %v16523_v35 }
 0x3f0   : > { %15076 = vmatpush3.bf16.msra.mxu1 %v16522_v33 }
 0x3f1   : > { %15077 = vmatprep.subr.bf16.mxu1 %v16524_v36  ;;  %v16568_v36 = vld [vmem:[%s17372_s14 + $0x1a70] sm:$0xff]  }
 0x3f2   : > { %15056 = vmatpush3.bf16.msra.mxu0 %v16525_v37  ;;  %v16569_v37 = vld [vmem:[%s17372_s14 + $0x1af0] sm:$0xff]  }
 0x3f3   : > { %15057 = vmatprep.subr.bf16.mxu0 %v16527_v39 }
 0x3f4   : > { %15078 = vmatpush3.bf16.msra.mxu1 %v16526_v38 }
 0x3f5   : > { %15079 = vmatprep.subr.bf16.mxu1 %v16528_v40 }
 0x3f6   : > { %15058 = vmatpush3.bf16.msra.mxu0 %v16529_v41 }
 0x3f7   : > { %15059 = vmatprep.subr.bf16.mxu0 %v16531_v44  ;;  %v16570_v44 = vld [vmem:[%s17372_s14 + $0x1a30] sm:$0xff]  }
 0x3f8   : > { %v14757_v46 = vpop.f32.mrb[72].mxu0  ;;  %15080 = vmatpush3.bf16.msra.mxu1 %v16530_v43 }
 0x3f9   : > { %v14758_v48 = vpop.f32.mrb[73].mxu0  ;;  %15081 = vmatprep.subr.bf16.mxu1 %v16532_v45 }
 0x3fa   : > { %v14779_v50 = vpop.f32.mrb[72].mxu1  ;;  %v14759_v51 = vadd.f32 %v14758_v48, %v14757_v46  ;;  %v14760_v52 = vpop.f32.mrb[74].mxu0  ;;  %15060 = vmatpush3.bf16.msra.mxu0 %v16533_v47  ;;  %v16571_v46 = vld [vmem:[%s17372_s14 + $0x1ab0] sm:$0xff]   ;;  %v16572_v48 = vld [vmem:[%s17372_s14 + $0x1a78] sm:$0xff]  }
 0x3fb   : > { %v14780_v55 = vpop.f32.mrb[73].mxu1  ;;  %v14761_v56 = vpop.f32.mrb[75].mxu0  ;;  %15061 = vmatprep.subr.bf16.mxu0 %v16535_v53  ;;  %v16576_v53 = vld [vmem:[%s17372_s14 + $0x1b40] sm:$0xff]  }
 0x3fc   : > { %v11028_v57 = vadd.f32 %v14759_v51, %v18406_v5  ;;  %v14781_v58 = vadd.f32 %v14780_v55, %v14779_v50  ;;  %v14782_v59 = vpop.f32.mrb[74].mxu1  ;;  %15082 = vmatpush3.bf16.msra.mxu1 %v16534_v49  ;;  %v16544_v5 = vld [vmem:[%s17372_s14 + $0x1a40] sm:$0xff]   ;;  %v16573_v49 = vld [vmem:[%s17372_s14 + $0x1af8] sm:$0xff]  }
 0x3fd   : > { %v14783_v62 = vpop.f32.mrb[75].mxu1  ;;  %15083 = vmatprep.subr.bf16.mxu1 %v16536_v54  ;;  %v16574_v50 = vld [vmem:[%s17372_s14 + $0x1a38] sm:$0xff]   ;;  %v429_v51 = vld [vmem:[%s17442_s18 + $0x68] sm:$0xff] }
 0x3fe   : > { %v18451_v0 = vadd.f32 %v14781_v58, %v11028_v57  ;;  %15062 = vmatpush3.bf16.msra.mxu0 %v16537_v61  ;;  %v3141_v52 = vrot.slane %v429_v51, %v17448_v42  ;;  %v3134_v54 = vcombine.high %v429_v51, %v429_v51  ;;  %v16575_v55 = vld [vmem:[%s17372_s14 + $0x1ab8] sm:$0xff]   ;;  %v16577_v58 = vld [vmem:[%s17372_s14 + $0x1bc0] sm:$0xff]  }
 0x3ff   : > { %15063 = vmatprep.subr.bf16.mxu0 %v16539_v1  ;;  %v16578_v61 = vld [vmem:[%s17372_s14 + $0x1b00] sm:$0xff]  }
 0x400   : > { %15084 = vmatpush3.bf16.msra.mxu1 %v16538_v63  ;;  %v3149_v56 = vcombine.high %v3141_v52, %v3141_v52  ;;  %v3157_v57 = vrot.slane %v3141_v52, %v17448_v42  ;;  %v18500_v59 = vrot.slane %v3134_v54, %v17448_v42  ;;  %v16579_v63 = vld [vmem:[%s17372_s14 + $0x1b80] sm:$0xff]   ;;  %v16613_v52 = vld [vmem:[%s17372_s14 + $0x1c48] sm:$0xff]  }
 0x401   : > { %15085 = vmatprep.subr.bf16.mxu1 %v16540_v2  ;;  %v16580_v2 = vld [vmem:[%s17372_s14 + $0x1b48] sm:$0xff]  }
 0x402   : > { %15064 = vmatpush3.bf16.msra.mxu0 %v16541_v60  ;;  %v3171_v62 = vrot.slane %v3149_v56, %v17448_v42  ;;  %v3179_v1 = vcombine.high %v3157_v57, %v3157_v57  ;;  %v16615_v54 = vld [vmem:[%s17372_s14 + $0x1c08] sm:$0xff]   ;;  %v16617_v56 = vld [vmem:[%s17372_s14 + $0x1c50] sm:$0xff]  }
 0x403   : > { %15093 = vmatprep.subr.bf16.mxu0 %v16544_v5  ;;  %v16582_v5 = vld [vmem:[%s17372_s14 + $0x1b08] sm:$0xff]  }
 0x404   : > { %15086 = vmatpush3.bf16.msra.mxu1 %v16542_v3  ;;  %v3181_v60 = vcombine.high %v3171_v62, %v3171_v62  ;;  %v16581_v3 = vld [vmem:[%s17372_s14 + $0x1bc8] sm:$0xff]  }
 0x405   : > { %11586 = vmatmul.mubr.bf16.vlgmr.msra.gmra.mrb[100].mxu0 %v3115_v4  ;;  %15115 = vmatprep.subr.bf16.mxu1 %v16545_v6  ;;  %v16583_v6 = vld [vmem:[%s17372_s14 + $0x1b88] sm:$0xff]  }
 0x406   : > { %15094 = vmatpush3.bf16.msra.mxu0 %v16546_v7  ;;  %11665 = vmatprep.mubr.bf16.mxu0 %v3171_v62  ;;  %v16622_v62 = vld [vmem:[%s17372_s14 + $0x1cd8] sm:$0xff]  }
 0x407   : > { %11626 = vmatmul.mubr.bf16.vlgmr.msra.gmra.mrb[100].mxu1 %v3131_v9  ;;  %15095 = vmatprep.subr.bf16.mxu0 %v16548_v10  ;;  %v16585_v9 = vld [vmem:[%s17372_s14 + $0x1bd0] sm:$0xff]  }
 0x408   : > { %15116 = vmatpush3.bf16.msra.mxu1 %v16547_v8  ;;  %11705 = vmatprep.mubr.bf16.mxu1 %v3181_v60  ;;  %v16584_v8 = vld [vmem:[%s17372_s14 + $0x1b50] sm:$0xff]   ;;  %v16627_v60 = vld [vmem:[%s17372_s14 + $0x1c20] sm:$0xff]  }
 0x409   : > { %15117 = vmatprep.subr.bf16.mxu1 %v16549_v11  ;;  %v16586_v10 = vld [vmem:[%s17372_s14 + $0x1b10] sm:$0xff]  }
 0x40a   : > { %15096 = vmatpush3.bf16.msra.mxu0 %v16550_v12  ;;  %v16587_v11 = vld [vmem:[%s17372_s14 + $0x1b90] sm:$0xff]   ;;  %v16588_v12 = vld [vmem:[%s17372_s14 + $0x1b58] sm:$0xff]  }
 0x40b   : > { %15097 = vmatprep.subr.bf16.mxu0 %v16552_v14  ;;  %v16590_v14 = vld [vmem:[%s17372_s14 + $0x1b18] sm:$0xff]  }
 0x40c   : > { %15118 = vmatpush3.bf16.msra.mxu1 %v16551_v13  ;;  %v16589_v13 = vld [vmem:[%s17372_s14 + $0x1bd8] sm:$0xff]  }
 0x40d   : > { %15119 = vmatprep.subr.bf16.mxu1 %v16553_v15  ;;  %v16591_v15 = vld [vmem:[%s17372_s14 + $0x1b98] sm:$0xff]  }
 0x40e   : > { %15098 = vmatpush3.bf16.msra.mxu0 %v16554_v16  ;;  %v16592_v16 = vld [vmem:[%s17372_s14 + $0x1b60] sm:$0xff]  }
 0x40f   : > { %15099 = vmatprep.subr.bf16.mxu0 %v16556_v18  ;;  %v16594_v18 = vld [vmem:[%s17372_s14 + $0x1b20] sm:$0xff]  }
 0x410   : > { %15120 = vmatpush3.bf16.msra.mxu1 %v16555_v17  ;;  %v16593_v17 = vld [vmem:[%s17372_s14 + $0x1be0] sm:$0xff]  }
 0x411   : > { %15121 = vmatprep.subr.bf16.mxu1 %v16557_v19  ;;  %v16595_v19 = vld [vmem:[%s17372_s14 + $0x1ba0] sm:$0xff]  }
 0x412   : > { %15100 = vmatpush3.bf16.msra.mxu0 %v16558_v20  ;;  %v16596_v20 = vld [vmem:[%s17372_s14 + $0x1b68] sm:$0xff]  }
 0x413   : > { %15101 = vmatprep.subr.bf16.mxu0 %v16560_v22 }
 0x414   : > { %15122 = vmatpush3.bf16.msra.mxu1 %v16559_v21  ;;  %v16597_v21 = vld [vmem:[%s17372_s14 + $0x1be8] sm:$0xff]  }
 0x415   : > { %15123 = vmatprep.subr.bf16.mxu1 %v16561_v23  ;;  %v16598_v23 = vld [vmem:[%s17372_s14 + $0x1b28] sm:$0xff]  }
 0x416   : > { %15102 = vmatpush3.bf16.msra.mxu0 %v16562_v24 }
 0x417   : > { %15103 = vmatprep.subr.bf16.mxu0 %v16564_v26 }
 0x418   : > { %v14801_v28 = vpop.f32.mrb[76].mxu0  ;;  %15124 = vmatpush3.bf16.msra.mxu1 %v16563_v25  ;;  %v16599_v25 = vld [vmem:[%s17372_s14 + $0x1ba8] sm:$0xff]  }
 0x419   : > { %v14802_v30 = vpop.f32.mrb[77].mxu0  ;;  %15125 = vmatprep.subr.bf16.mxu1 %v16565_v27 }
 0x41a   : > { %v14823_v32 = vpop.f32.mrb[76].mxu1  ;;  %v14803_v33 = vadd.f32 %v14802_v30, %v14801_v28  ;;  %v14804_v35 = vpop.f32.mrb[78].mxu0  ;;  %15104 = vmatpush3.bf16.msra.mxu0 %v16566_v29  ;;  %v16600_v29 = vld [vmem:[%s17372_s14 + $0x1b70] sm:$0xff]  }
 0x41b   : > { %v14824_v38 = vpop.f32.mrb[77].mxu1  ;;  %v14805_v39 = vpop.f32.mrb[79].mxu0  ;;  %15105 = vmatprep.subr.bf16.mxu0 %v16568_v36  ;;  %v16601_v30 = vld [vmem:[%s17372_s14 + $0x1bf0] sm:$0xff]  }
 0x41c   : > { %v11108_v40 = vadd.f32 %v14803_v33, %v18451_v0  ;;  %v14825_v41 = vadd.f32 %v14824_v38, %v14823_v32  ;;  %v14826_v43 = vpop.f32.mrb[78].mxu1  ;;  %15126 = vmatpush3.bf16.msra.mxu1 %v16567_v31  ;;  %v3150_v0 = vcombine.high %v18500_v59, %v18500_v59  ;;  %v16603_v39 = vld [vmem:[%s17372_s14 + $0x1bb0] sm:$0xff]  }
 0x41d   : > { %v14827_v45 = vpop.f32.mrb[79].mxu1  ;;  %15127 = vmatprep.subr.bf16.mxu1 %v16569_v37  ;;  %v16602_v37 = vld [vmem:[%s17372_s14 + $0x1b30] sm:$0xff]   ;;  %v16605_v43 = vld [vmem:[%s17372_s14 + $0x1bf8] sm:$0xff]  }
 0x41e   : > { %v18488_v47 = vadd.f32 %v14825_v41, %v11108_v40  ;;  %15106 = vmatpush3.bf16.msra.mxu0 %v16570_v44  ;;  %v3178_v4 = vrot.slane %v3150_v0, %v17448_v42  ;;  %v16604_v41 = vld [vmem:[%s17372_s14 + $0x1b78] sm:$0xff]  }
 0x41f   : > { %15107 = vmatprep.subr.bf16.mxu0 %v16572_v48  ;;  %v16606_v44 = vld [vmem:[%s17372_s14 + $0x1b38] sm:$0xff]   ;;  %v16610_v48 = vld [vmem:[%s17372_s14 + $0x1cc0] sm:$0xff]  }
 0x420   : > { %15128 = vmatpush3.bf16.msra.mxu1 %v16571_v46  ;;  %v3182_v7 = vcombine.high %v3178_v4, %v3178_v4  ;;  %v16607_v45 = vld [vmem:[%s17372_s14 + $0x1bb8] sm:$0xff]   ;;  %v3164_v46 = vrot.slane %v18500_v59, %v17448_v42  ;;  %v16620_v59 = vld [vmem:[%s17372_s14 + $0x1c90] sm:$0xff]  }
 0x421   : > { %15129 = vmatprep.subr.bf16.mxu1 %v16573_v49  ;;  %v16611_v49 = vld [vmem:[%s17372_s14 + $0x1c00] sm:$0xff]   ;;  %v16624_v0 = vld [vmem:[%s17372_s14 + $0x1c98] sm:$0xff]  }
 0x422   : > { %15108 = vmatpush3.bf16.msra.mxu0 %v16574_v50  ;;  %v16612_v50 = vld [vmem:[%s17372_s14 + $0x1c80] sm:$0xff]   ;;  %v3180_v51 = vcombine.high %v3164_v46, %v3164_v46 }
 0x423   : > { %15137 = vmatprep.subr.bf16.mxu0 %v16576_v53  ;;  %v16614_v53 = vld [vmem:[%s17372_s14 + $0x1cc8] sm:$0xff]  }
 0x424   : > { %15130 = vmatpush3.bf16.msra.mxu1 %v16575_v55  ;;  %v16616_v55 = vld [vmem:[%s17372_s14 + $0x1c88] sm:$0xff]  }
 0x425   : > { %15159 = vmatprep.subr.bf16.mxu1 %v16577_v58  ;;  %11666 = vmatmul.mubr.bf16.vlgmr.msra.gmra.mrb[104].mxu0 %v3157_v57  ;;  %v16618_v57 = vld [vmem:[%s17372_s14 + $0x1cd0] sm:$0xff]  }
 0x426   : > { %15138 = vmatpush3.bf16.msra.mxu0 %v16578_v61  ;;  %11745 = vmatprep.mubr.bf16.mxu0 %v3178_v4  ;;  %v16619_v58 = vld [vmem:[%s17372_s14 + $0x1c10] sm:$0xff]   ;;  %v16621_v61 = vld [vmem:[%s17372_s14 + $0x1c58] sm:$0xff]   ;;  %v16629_v4 = vld [vmem:[%s17372_s14 + $0x1c68] sm:$0xff]  }
 0x427   : > { %11706 = vmatmul.mubr.bf16.vlgmr.msra.gmra.mrb[104].mxu1 %v3179_v1  ;;  %15139 = vmatprep.subr.bf16.mxu0 %v16580_v2  ;;  %v16625_v1 = vld [vmem:[%s17372_s14 + $0x1c60] sm:$0xff]  }
 0x428   : > { %15160 = vmatpush3.bf16.msra.mxu1 %v16579_v63  ;;  %11785 = vmatprep.mubr.bf16.mxu1 %v3182_v7  ;;  %v16623_v63 = vld [vmem:[%s17372_s14 + $0x1c18] sm:$0xff]   ;;  %v16626_v2 = vld [vmem:[%s17372_s14 + $0x1ce0] sm:$0xff]   ;;  %v16631_v7 = vld [vmem:[%s17372_s14 + $0x1c28] sm:$0xff]  }
 0x429   : > { %15161 = vmatprep.subr.bf16.mxu1 %v16581_v3  ;;  %v16628_v3 = vld [vmem:[%s17372_s14 + $0x1ca0] sm:$0xff]  }
 0x42a   : > { %15140 = vmatpush3.bf16.msra.mxu0 %v16582_v5  ;;  %v16630_v5 = vld [vmem:[%s17372_s14 + $0x1ce8] sm:$0xff]  }
 0x42b   : > { %15141 = vmatprep.subr.bf16.mxu0 %v16584_v8 }
 0x42c   : > { %15162 = vmatpush3.bf16.msra.mxu1 %v16583_v6 }
 0x42d   : > { %15163 = vmatprep.subr.bf16.mxu1 %v16585_v9  ;;  %v16632_v9 = vld [vmem:[%s17372_s14 + $0x1ca8] sm:$0xff]  }
 0x42e   : > { %15142 = vmatpush3.bf16.msra.mxu0 %v16586_v10 }
 0x42f   : > { %15143 = vmatprep.subr.bf16.mxu0 %v16588_v12 }
 0x430   : > { %15164 = vmatpush3.bf16.msra.mxu1 %v16587_v11 }
 0x431   : > { %15165 = vmatprep.subr.bf16.mxu1 %v16589_v13  ;;  %v16633_v13 = vld [vmem:[%s17372_s14 + $0x1c70] sm:$0xff]  }
 0x432   : > { %15144 = vmatpush3.bf16.msra.mxu0 %v16590_v14  ;;  %v16634_v14 = vld [vmem:[%s17372_s14 + $0x1cf0] sm:$0xff]  }
 0x433   : > { %15145 = vmatprep.subr.bf16.mxu0 %v16592_v16 }
 0x434   : > { %15166 = vmatpush3.bf16.msra.mxu1 %v16591_v15 }
 0x435   : > { %15167 = vmatprep.subr.bf16.mxu1 %v16593_v17 }
 0x436   : > { %15146 = vmatpush3.bf16.msra.mxu0 %v16594_v18 }
 0x437   : > { %15147 = vmatprep.subr.bf16.mxu0 %v16596_v20  ;;  %v16635_v20 = vld [vmem:[%s17372_s14 + $0x1c30] sm:$0xff]  }
 0x438   : > { %v14845_v22 = vpop.f32.mrb[80].mxu0  ;;  %15168 = vmatpush3.bf16.msra.mxu1 %v16595_v19 }
 0x439   : > { %v14846_v24 = vpop.f32.mrb[81].mxu0  ;;  %15169 = vmatprep.subr.bf16.mxu1 %v16597_v21 }
 0x43a   : > { %v14867_v26 = vpop.f32.mrb[80].mxu1  ;;  %v14847_v27 = vadd.f32 %v14846_v24, %v14845_v22  ;;  %v14848_v28 = vpop.f32.mrb[82].mxu0  ;;  %15148 = vmatpush3.bf16.msra.mxu0 %v16598_v23  ;;  %v16636_v22 = vld [vmem:[%s17372_s14 + $0x1cb0] sm:$0xff]   ;;  %v16637_v24 = vld [vmem:[%s17372_s14 + $0x1c78] sm:$0xff]  }
 0x43b   : > { %v14868_v31 = vpop.f32.mrb[81].mxu1  ;;  %v14849_v32 = vpop.f32.mrb[83].mxu0  ;;  %15149 = vmatprep.subr.bf16.mxu0 %v16600_v29  ;;  %v16641_v29 = vld [vmem:[%s17372_s14 + $0x1d40] sm:$0xff]  }
 0x43c   : > { %v11188_v33 = vadd.f32 %v14847_v27, %v18488_v47  ;;  %v14869_v35 = vadd.f32 %v14868_v31, %v14867_v26  ;;  %v14870_v36 = vpop.f32.mrb[82].mxu1  ;;  %15170 = vmatpush3.bf16.msra.mxu1 %v16599_v25  ;;  %v16609_v47 = vld [vmem:[%s17372_s14 + $0x1c40] sm:$0xff]   ;;  %v16638_v25 = vld [vmem:[%s17372_s14 + $0x1cf8] sm:$0xff]   ;;  %v430_v27 = vld [vmem:[%s17442_s18 + $0x70] sm:$0xff] }
 0x43d   : > { %v14871_v38 = vpop.f32.mrb[83].mxu1  ;;  %15171 = vmatprep.subr.bf16.mxu1 %v16601_v30  ;;  %v16639_v26 = vld [vmem:[%s17372_s14 + $0x1c38] sm:$0xff]   ;;  %v3190_v28 = vrot.slane %v430_v27, %v17448_v42  ;;  %v3183_v30 = vcombine.high %v430_v27, %v430_v27 }
 0x43e   : > { %v18533_v40 = vadd.f32 %v14869_v35, %v11188_v33  ;;  %15150 = vmatpush3.bf16.msra.mxu0 %v16602_v37  ;;  %v16640_v31 = vld [vmem:[%s17372_s14 + $0x1cb8] sm:$0xff]   ;;  %v16642_v35 = vld [vmem:[%s17372_s14 + $0x1dc0] sm:$0xff]  }
 0x43f   : > { %15151 = vmatprep.subr.bf16.mxu0 %v16604_v41  ;;  %v3198_v32 = vcombine.high %v3190_v28, %v3190_v28  ;;  %v3206_v33 = vrot.slane %v3190_v28, %v17448_v42  ;;  %v18582_v36 = vrot.slane %v3183_v30, %v17448_v42  ;;  %v16643_v37 = vld [vmem:[%s17372_s14 + $0x1d00] sm:$0xff]   ;;  %v16678_v28 = vld [vmem:[%s17372_s14 + $0x1e48] sm:$0xff]  }
 0x440   : > { %15172 = vmatpush3.bf16.msra.mxu1 %v16603_v39  ;;  %v16644_v39 = vld [vmem:[%s17372_s14 + $0x1d80] sm:$0xff]   ;;  %v16680_v30 = vld [vmem:[%s17372_s14 + $0x1e08] sm:$0xff]  }
 0x441   : > { %15173 = vmatprep.subr.bf16.mxu1 %v16605_v43  ;;  %v3220_v38 = vrot.slane %v3198_v32, %v17448_v42  ;;  %v3228_v41 = vcombine.high %v3206_v33, %v3206_v33  ;;  %v16645_v43 = vld [vmem:[%s17372_s14 + $0x1d48] sm:$0xff]   ;;  %v16682_v32 = vld [vmem:[%s17372_s14 + $0x1e50] sm:$0xff]  }
 0x442   : > { %15152 = vmatpush3.bf16.msra.mxu0 %v16606_v44 }
 0x443   : > { %15181 = vmatprep.subr.bf16.mxu0 %v16609_v47  ;;  %v3230_v44 = vcombine.high %v3220_v38, %v3220_v38  ;;  %v16647_v47 = vld [vmem:[%s17372_s14 + $0x1d08] sm:$0xff]  }
 0x444   : > { %15174 = vmatpush3.bf16.msra.mxu1 %v16607_v45  ;;  %v16646_v45 = vld [vmem:[%s17372_s14 + $0x1dc8] sm:$0xff]  }
 0x445   : > { %11746 = vmatmul.mubr.bf16.vlgmr.msra.gmra.mrb[108].mxu0 %v3164_v46  ;;  %15203 = vmatprep.subr.bf16.mxu1 %v16610_v48  ;;  %v16648_v48 = vld [vmem:[%s17372_s14 + $0x1d88] sm:$0xff]  }
 0x446   : > { %15182 = vmatpush3.bf16.msra.mxu0 %v16611_v49  ;;  %11825 = vmatprep.mubr.bf16.mxu0 %v3220_v38  ;;  %v16687_v38 = vld [vmem:[%s17372_s14 + $0x1ed8] sm:$0xff]  }
 0x447   : > { %11786 = vmatmul.mubr.bf16.vlgmr.msra.gmra.mrb[108].mxu1 %v3180_v51  ;;  %15183 = vmatprep.subr.bf16.mxu0 %v16613_v52  ;;  %v16650_v51 = vld [vmem:[%s17372_s14 + $0x1dd0] sm:$0xff]  }
 0x448   : > { %15204 = vmatpush3.bf16.msra.mxu1 %v16612_v50  ;;  %11865 = vmatprep.mubr.bf16.mxu1 %v3230_v44  ;;  %v16649_v50 = vld [vmem:[%s17372_s14 + $0x1d50] sm:$0xff]   ;;  %v16692_v44 = vld [vmem:[%s17372_s14 + $0x1e20] sm:$0xff]  }
 0x449   : > { %15205 = vmatprep.subr.bf16.mxu1 %v16614_v53  ;;  %v16651_v52 = vld [vmem:[%s17372_s14 + $0x1d10] sm:$0xff]  }
 0x44a   : > { %15184 = vmatpush3.bf16.msra.mxu0 %v16615_v54  ;;  %v16652_v53 = vld [vmem:[%s17372_s14 + $0x1d90] sm:$0xff]   ;;  %v16653_v54 = vld [vmem:[%s17372_s14 + $0x1d58] sm:$0xff]  }
 0x44b   : > { %15185 = vmatprep.subr.bf16.mxu0 %v16617_v56  ;;  %v16655_v56 = vld [vmem:[%s17372_s14 + $0x1d18] sm:$0xff]  }
 0x44c   : > { %15206 = vmatpush3.bf16.msra.mxu1 %v16616_v55  ;;  %v16654_v55 = vld [vmem:[%s17372_s14 + $0x1dd8] sm:$0xff]  }
 0x44d   : > { %15207 = vmatprep.subr.bf16.mxu1 %v16618_v57  ;;  %v16656_v57 = vld [vmem:[%s17372_s14 + $0x1d98] sm:$0xff]  }
 0x44e   : > { %15186 = vmatpush3.bf16.msra.mxu0 %v16619_v58  ;;  %v16657_v58 = vld [vmem:[%s17372_s14 + $0x1d60] sm:$0xff]  }
 0x44f   : > { %15187 = vmatprep.subr.bf16.mxu0 %v16621_v61  ;;  %v16659_v61 = vld [vmem:[%s17372_s14 + $0x1d20] sm:$0xff]  }
 0x450   : > { %15208 = vmatpush3.bf16.msra.mxu1 %v16620_v59  ;;  %v16658_v59 = vld [vmem:[%s17372_s14 + $0x1de0] sm:$0xff]  }
 0x451   : > { %15209 = vmatprep.subr.bf16.mxu1 %v16622_v62  ;;  %v16660_v62 = vld [vmem:[%s17372_s14 + $0x1da0] sm:$0xff]  }
 0x452   : > { %15188 = vmatpush3.bf16.msra.mxu0 %v16623_v63  ;;  %v16661_v63 = vld [vmem:[%s17372_s14 + $0x1d68] sm:$0xff]  }
 0x453   : > { %15189 = vmatprep.subr.bf16.mxu0 %v16625_v1 }
 0x454   : > { %15210 = vmatpush3.bf16.msra.mxu1 %v16624_v0  ;;  %v16662_v0 = vld [vmem:[%s17372_s14 + $0x1de8] sm:$0xff]  }
 0x455   : > { %15211 = vmatprep.subr.bf16.mxu1 %v16626_v2  ;;  %v16663_v2 = vld [vmem:[%s17372_s14 + $0x1d28] sm:$0xff]  }
 0x456   : > { %15190 = vmatpush3.bf16.msra.mxu0 %v16627_v60 }
 0x457   : > { %15191 = vmatprep.subr.bf16.mxu0 %v16629_v4 }
 0x458   : > { %v14889_v6 = vpop.f32.mrb[84].mxu0  ;;  %15212 = vmatpush3.bf16.msra.mxu1 %v16628_v3  ;;  %v16664_v3 = vld [vmem:[%s17372_s14 + $0x1da8] sm:$0xff]  }
 0x459   : > { %v14890_v8 = vpop.f32.mrb[85].mxu0  ;;  %15213 = vmatprep.subr.bf16.mxu1 %v16630_v5 }
 0x45a   : > { %v14911_v10 = vpop.f32.mrb[84].mxu1  ;;  %v14891_v11 = vadd.f32 %v14890_v8, %v14889_v6  ;;  %v14892_v12 = vpop.f32.mrb[86].mxu0  ;;  %15192 = vmatpush3.bf16.msra.mxu0 %v16631_v7  ;;  %v16665_v7 = vld [vmem:[%s17372_s14 + $0x1d70] sm:$0xff]  }
 0x45b   : > { %v14912_v15 = vpop.f32.mrb[85].mxu1  ;;  %v14893_v16 = vpop.f32.mrb[87].mxu0  ;;  %15193 = vmatprep.subr.bf16.mxu0 %v16633_v13  ;;  %v16666_v8 = vld [vmem:[%s17372_s14 + $0x1df0] sm:$0xff]  }
 0x45c   : > { %v11268_v17 = vadd.f32 %v14891_v11, %v18533_v40  ;;  %v14913_v18 = vadd.f32 %v14912_v15, %v14911_v10  ;;  %v14914_v19 = vpop.f32.mrb[86].mxu1  ;;  %15214 = vmatpush3.bf16.msra.mxu1 %v16632_v9  ;;  %v3199_v40 = vcombine.high %v18582_v36, %v18582_v36  ;;  %v16668_v16 = vld [vmem:[%s17372_s14 + $0x1db0] sm:$0xff]  }
 0x45d   : > { %v14915_v21 = vpop.f32.mrb[87].mxu1  ;;  %15215 = vmatprep.subr.bf16.mxu1 %v16634_v14  ;;  %v16667_v14 = vld [vmem:[%s17372_s14 + $0x1d30] sm:$0xff]   ;;  %v16670_v19 = vld [vmem:[%s17372_s14 + $0x1df8] sm:$0xff]  }
 0x45e   : > { %v18570_v23 = vadd.f32 %v14913_v18, %v11268_v17  ;;  %15194 = vmatpush3.bf16.msra.mxu0 %v16635_v20  ;;  %v3227_v46 = vrot.slane %v3199_v40, %v17448_v42  ;;  %v16669_v18 = vld [vmem:[%s17372_s14 + $0x1d78] sm:$0xff]  }
 0x45f   : > { %15195 = vmatprep.subr.bf16.mxu0 %v16637_v24  ;;  %v16671_v20 = vld [vmem:[%s17372_s14 + $0x1d38] sm:$0xff]   ;;  %v16675_v24 = vld [vmem:[%s17372_s14 + $0x1ec0] sm:$0xff]  }
 0x460   : > { %15216 = vmatpush3.bf16.msra.mxu1 %v16636_v22  ;;  %v3231_v49 = vcombine.high %v3227_v46, %v3227_v46  ;;  %v16672_v21 = vld [vmem:[%s17372_s14 + $0x1db8] sm:$0xff]   ;;  %v3213_v22 = vrot.slane %v18582_v36, %v17448_v42  ;;  %v16685_v36 = vld [vmem:[%s17372_s14 + $0x1e90] sm:$0xff]  }
 0x461   : > { %15217 = vmatprep.subr.bf16.mxu1 %v16638_v25  ;;  %v16676_v25 = vld [vmem:[%s17372_s14 + $0x1e00] sm:$0xff]   ;;  %v16689_v40 = vld [vmem:[%s17372_s14 + $0x1e98] sm:$0xff]  }
 0x462   : > { %15196 = vmatpush3.bf16.msra.mxu0 %v16639_v26  ;;  %v16677_v26 = vld [vmem:[%s17372_s14 + $0x1e80] sm:$0xff]   ;;  %v3229_v27 = vcombine.high %v3213_v22, %v3213_v22 }
 0x463   : > { %15225 = vmatprep.subr.bf16.mxu0 %v16641_v29  ;;  %v16679_v29 = vld [vmem:[%s17372_s14 + $0x1ec8] sm:$0xff]  }
 0x464   : > { %15218 = vmatpush3.bf16.msra.mxu1 %v16640_v31  ;;  %v16681_v31 = vld [vmem:[%s17372_s14 + $0x1e88] sm:$0xff]  }
 0x465   : > { %15247 = vmatprep.subr.bf16.mxu1 %v16642_v35  ;;  %11826 = vmatmul.mubr.bf16.vlgmr.msra.gmra.mrb[112].mxu0 %v3206_v33  ;;  %v16683_v33 = vld [vmem:[%s17372_s14 + $0x1ed0] sm:$0xff]  }
 0x466   : > { %15226 = vmatpush3.bf16.msra.mxu0 %v16643_v37  ;;  %11905 = vmatprep.mubr.bf16.mxu0 %v3227_v46  ;;  %v16684_v35 = vld [vmem:[%s17372_s14 + $0x1e10] sm:$0xff]   ;;  %v16686_v37 = vld [vmem:[%s17372_s14 + $0x1e58] sm:$0xff]   ;;  %v16694_v46 = vld [vmem:[%s17372_s14 + $0x1e68] sm:$0xff]  }
 0x467   : > { %11866 = vmatmul.mubr.bf16.vlgmr.msra.gmra.mrb[112].mxu1 %v3228_v41  ;;  %15227 = vmatprep.subr.bf16.mxu0 %v16645_v43  ;;  %v16690_v41 = vld [vmem:[%s17372_s14 + $0x1e60] sm:$0xff]  }
 0x468   : > { %15248 = vmatpush3.bf16.msra.mxu1 %v16644_v39  ;;  %11945 = vmatprep.mubr.bf16.mxu1 %v3231_v49  ;;  %v16688_v39 = vld [vmem:[%s17372_s14 + $0x1e18] sm:$0xff]   ;;  %v16691_v43 = vld [vmem:[%s17372_s14 + $0x1ee0] sm:$0xff]   ;;  %v16696_v49 = vld [vmem:[%s17372_s14 + $0x1e28] sm:$0xff]  }
 0x469   : > { %15249 = vmatprep.subr.bf16.mxu1 %v16646_v45  ;;  %v16693_v45 = vld [vmem:[%s17372_s14 + $0x1ea0] sm:$0xff]  }
 0x46a   : > { %15228 = vmatpush3.bf16.msra.mxu0 %v16647_v47  ;;  %v16695_v47 = vld [vmem:[%s17372_s14 + $0x1ee8] sm:$0xff]  }
 0x46b   : > { %15229 = vmatprep.subr.bf16.mxu0 %v16649_v50 }
 0x46c   : > { %15250 = vmatpush3.bf16.msra.mxu1 %v16648_v48 }
 0x46d   : > { %15251 = vmatprep.subr.bf16.mxu1 %v16650_v51  ;;  %v16697_v51 = vld [vmem:[%s17372_s14 + $0x1ea8] sm:$0xff]  }
 0x46e   : > { %15230 = vmatpush3.bf16.msra.mxu0 %v16651_v52 }
 0x46f   : > { %15231 = vmatprep.subr.bf16.mxu0 %v16653_v54 }
 0x470   : > { %15252 = vmatpush3.bf16.msra.mxu1 %v16652_v53 }
 0x471   : > { %15253 = vmatprep.subr.bf16.mxu1 %v16654_v55  ;;  %v16698_v55 = vld [vmem:[%s17372_s14 + $0x1e70] sm:$0xff]  }
 0x472   : > { %15232 = vmatpush3.bf16.msra.mxu0 %v16655_v56  ;;  %v16699_v56 = vld [vmem:[%s17372_s14 + $0x1ef0] sm:$0xff]  }
 0x473   : > { %15233 = vmatprep.subr.bf16.mxu0 %v16657_v58 }
 0x474   : > { %15254 = vmatpush3.bf16.msra.mxu1 %v16656_v57 }
 0x475   : > { %15255 = vmatprep.subr.bf16.mxu1 %v16658_v59 }
 0x476   : > { %15234 = vmatpush3.bf16.msra.mxu0 %v16659_v61 }
 0x477   : > { %15235 = vmatprep.subr.bf16.mxu0 %v16661_v63  ;;  %v16700_v63 = vld [vmem:[%s17372_s14 + $0x1e30] sm:$0xff]  }
 0x478   : > { %v14933_v1 = vpop.f32.mrb[88].mxu0  ;;  %15256 = vmatpush3.bf16.msra.mxu1 %v16660_v62 }
 0x479   : > { %v14934_v60 = vpop.f32.mrb[89].mxu0  ;;  %15257 = vmatprep.subr.bf16.mxu1 %v16662_v0 }
 0x47a   : > { %v14955_v4 = vpop.f32.mrb[88].mxu1  ;;  %v14935_v5 = vadd.f32 %v14934_v60, %v14933_v1  ;;  %v14936_v6 = vpop.f32.mrb[90].mxu0  ;;  %15236 = vmatpush3.bf16.msra.mxu0 %v16663_v2  ;;  %v16701_v1 = vld [vmem:[%s17372_s14 + $0x1eb0] sm:$0xff]   ;;  %v16702_v60 = vld [vmem:[%s17372_s14 + $0x1e78] sm:$0xff]  }
 0x47b   : > { %v14956_v9 = vpop.f32.mrb[89].mxu1  ;;  %v14937_v10 = vpop.f32.mrb[91].mxu0  ;;  %15237 = vmatprep.subr.bf16.mxu0 %v16665_v7  ;;  %v16706_v7 = vld [vmem:[%s17372_s14 + $0x1f40] sm:$0xff]  }
 0x47c   : > { %v11348_v11 = vadd.f32 %v14935_v5, %v18570_v23  ;;  %v14957_v12 = vadd.f32 %v14956_v9, %v14955_v4  ;;  %v14958_v13 = vpop.f32.mrb[90].mxu1  ;;  %15258 = vmatpush3.bf16.msra.mxu1 %v16664_v3  ;;  %v16674_v23 = vld [vmem:[%s17372_s14 + $0x1e40] sm:$0xff]   ;;  %v16703_v3 = vld [vmem:[%s17372_s14 + $0x1ef8] sm:$0xff]  }
 0x47d   : > { %v14959_v15 = vpop.f32.mrb[91].mxu1  ;;  %15259 = vmatprep.subr.bf16.mxu1 %v16666_v8  ;;  %v16704_v4 = vld [vmem:[%s17372_s14 + $0x1e38] sm:$0xff]  }
 0x47e   : > { %v18615_v17 = vadd.f32 %v14957_v12, %v11348_v11  ;;  %15238 = vmatpush3.bf16.msra.mxu0 %v16667_v14  ;;  %v431_v5 = vld [vmem:[%s17442_s18 + $0x78] sm:$0xff]  ;;  %v16707_v12 = vld [vmem:[%s17372_s14 + $0x1fc0] sm:$0xff]  }
 0x47f   : > { %15239 = vmatprep.subr.bf16.mxu0 %v16669_v18  ;;  %v3239_v6 = vrot.slane %v431_v5, %v17448_v42  ;;  %v3232_v8 = vcombine.high %v431_v5, %v431_v5  ;;  %v16705_v9 = vld [vmem:[%s17372_s14 + $0x1eb8] sm:$0xff]   ;;  %v16708_v15 = vld [vmem:[%s17372_s14 + $0x1f00] sm:$0xff]   ;;  %v16710_v18 = vld [vmem:[%s17372_s14 + $0x1f48] sm:$0xff]  }
 0x480   : > { %15260 = vmatpush3.bf16.msra.mxu1 %v16668_v16 }
 0x481   : > { %15261 = vmatprep.subr.bf16.mxu1 %v16670_v19  ;;  %v3247_v10 = vcombine.high %v3239_v6, %v3239_v6  ;;  %v3255_v11 = vrot.slane %v3239_v6, %v17448_v42  ;;  %v18664_v13 = vrot.slane %v3232_v8, %v17448_v42 }
 0x482   : > { %15240 = vmatpush3.bf16.msra.mxu0 %v16671_v20  ;;  %v16709_v20 = vld [vmem:[%s17372_s14 + $0x1f80] sm:$0xff]  }
 0x483   : > { %15269 = vmatprep.subr.bf16.mxu0 %v16674_v23  ;;  %v3269_v14 = vrot.slane %v3247_v10, %v17448_v42  ;;  %v3248_v16 = vcombine.high %v18664_v13, %v18664_v13  ;;  %v16712_v23 = vld [vmem:[%s17372_s14 + $0x1f08] sm:$0xff]  }
 0x484   : > { %15262 = vmatpush3.bf16.msra.mxu1 %v16672_v21 }
 0x485   : > { %11906 = vmatmul.mubr.bf16.vlgmr.msra.gmra.mrb[116].mxu0 %v3213_v22  ;;  %15291 = vmatprep.subr.bf16.mxu1 %v16675_v24  ;;  %v3279_v19 = vcombine.high %v3269_v14, %v3269_v14  ;;  %v3276_v21 = vrot.slane %v3248_v16, %v17448_v42  ;;  %v16711_v22 = vld [vmem:[%s17372_s14 + $0x1fc8] sm:$0xff]  }
 0x486   : > { %15270 = vmatpush3.bf16.msra.mxu0 %v16676_v25  ;;  %11985 = vmatprep.mubr.bf16.mxu0 %v3269_v14  ;;  %v16714_v25 = vld [vmem:[%s17372_s14 + $0x1f50] sm:$0xff]  }
 0x487   : > { %11946 = vmatmul.mubr.bf16.vlgmr.msra.gmra.mrb[116].mxu1 %v3229_v27  ;;  %15271 = vmatprep.subr.bf16.mxu0 %v16678_v28  ;;  %v3280_v24 = vcombine.high %v3276_v21, %v3276_v21  ;;  %v16715_v27 = vld [vmem:[%s17372_s14 + $0x1fd0] sm:$0xff]  }
 0x488   : > { %15292 = vmatpush3.bf16.msra.mxu1 %v16677_v26  ;;  %12025 = vmatprep.mubr.bf16.mxu1 %v3279_v19  ;;  %v16713_v26 = vld [vmem:[%s17372_s14 + $0x1f88] sm:$0xff]   ;;  %v16716_v28 = vld [vmem:[%s17372_s14 + $0x1f10] sm:$0xff]  }
 0x489   : > { %15293 = vmatprep.subr.bf16.mxu1 %v16679_v29  ;;  %v16718_v29 = vld [vmem:[%s17372_s14 + $0x1f58] sm:$0xff]  }
 0x48a   : > { %15272 = vmatpush3.bf16.msra.mxu0 %v16680_v30  ;;  %v16717_v30 = vld [vmem:[%s17372_s14 + $0x1f90] sm:$0xff]  }
 0x48b   : > { %15273 = vmatprep.subr.bf16.mxu0 %v16682_v32  ;;  %v16720_v32 = vld [vmem:[%s17372_s14 + $0x1f18] sm:$0xff]  }
 0x48c   : > { %15294 = vmatpush3.bf16.msra.mxu1 %v16681_v31  ;;  %v16719_v31 = vld [vmem:[%s17372_s14 + $0x1fd8] sm:$0xff]  }
 0x48d   : > { %15295 = vmatprep.subr.bf16.mxu1 %v16683_v33  ;;  %v16722_v33 = vld [vmem:[%s17372_s14 + $0x1f60] sm:$0xff]  }
 0x48e   : > { %15274 = vmatpush3.bf16.msra.mxu0 %v16684_v35  ;;  %v16721_v35 = vld [vmem:[%s17372_s14 + $0x1f98] sm:$0xff]  }
 0x48f   : > { %15275 = vmatprep.subr.bf16.mxu0 %v16686_v37  ;;  %v16724_v37 = vld [vmem:[%s17372_s14 + $0x1f20] sm:$0xff]  }
 0x490   : > { %15296 = vmatpush3.bf16.msra.mxu1 %v16685_v36  ;;  %v16723_v36 = vld [vmem:[%s17372_s14 + $0x1fe0] sm:$0xff]  }
 0x491   : > { %15297 = vmatprep.subr.bf16.mxu1 %v16687_v38  ;;  %v16726_v38 = vld [vmem:[%s17372_s14 + $0x1f68] sm:$0xff]  }
 0x492   : > { %15276 = vmatpush3.bf16.msra.mxu0 %v16688_v39  ;;  %v16725_v39 = vld [vmem:[%s17372_s14 + $0x1fa0] sm:$0xff]  }
 0x493   : > { %15277 = vmatprep.subr.bf16.mxu0 %v16690_v41  ;;  %v16727_v41 = vld [vmem:[%s17372_s14 + $0x1fe8] sm:$0xff]  }
 0x494   : > { %15298 = vmatpush3.bf16.msra.mxu1 %v16689_v40 }
 0x495   : > { %15299 = vmatprep.subr.bf16.mxu1 %v16691_v43 }
 0x496   : > { %15278 = vmatpush3.bf16.msra.mxu0 %v16692_v44  ;;  %v16728_v44 = vld [vmem:[%s17372_s14 + $0x1f28] sm:$0xff]  }
 0x497   : > { %15279 = vmatprep.subr.bf16.mxu0 %v16694_v46 }
 0x498   : > { %v14977_v48 = vpop.f32.mrb[92].mxu0  ;;  %15300 = vmatpush3.bf16.msra.mxu1 %v16693_v45 }
 0x499   : > { %v14978_v50 = vpop.f32.mrb[93].mxu0  ;;  %15301 = vmatprep.subr.bf16.mxu1 %v16695_v47 }
 0x49a   : > { %v14999_v52 = vpop.f32.mrb[92].mxu1  ;;  %v14979_v53 = vadd.f32 %v14978_v50, %v14977_v48  ;;  %v14980_v54 = vpop.f32.mrb[94].mxu0  ;;  %15280 = vmatpush3.bf16.msra.mxu0 %v16696_v49  ;;  %v16729_v48 = vld [vmem:[%s17372_s14 + $0x1fa8] sm:$0xff]   ;;  %v16730_v49 = vld [vmem:[%s17372_s14 + $0x1f70] sm:$0xff]  }
 0x49b   : > { %v15000_v57 = vpop.f32.mrb[93].mxu1  ;;  %v14981_v58 = vpop.f32.mrb[95].mxu0  ;;  %15281 = vmatprep.subr.bf16.mxu0 %v16698_v55  ;;  %v16731_v55 = vld [vmem:[%s17372_s14 + $0x1ff0] sm:$0xff]  }
 0x49c   : > { %v11428_v59 = vadd.f32 %v14979_v53, %v18615_v17  ;;  %v15001_v61 = vadd.f32 %v15000_v57, %v14999_v52  ;;  %v15002_v62 = vpop.f32.mrb[94].mxu1  ;;  %15302 = vmatpush3.bf16.msra.mxu1 %v16697_v51  ;;  %v3277_v17 = vcombine.high %v3255_v11, %v3255_v11  ;;  %v16732_v57 = vld [vmem:[%s17372_s14 + $0x1f30] sm:$0xff]  }
 0x49d   : > { %v15003_v0 = vpop.f32.mrb[95].mxu1  ;;  %15303 = vmatprep.subr.bf16.mxu1 %v16699_v56  ;;  %v16735_v62 = vld [vmem:[%s17372_s14 + $0x1ff8] sm:$0xff]  }
 0x49e   : > { %v18652_v2 = vadd.f32 %v15001_v61, %v11428_v59  ;;  %15282 = vmatpush3.bf16.msra.mxu0 %v16700_v63  ;;  %v16734_v59 = vld [vmem:[%s17372_s14 + $0x1f78] sm:$0xff]   ;;  %v16733_v61 = vld [vmem:[%s17372_s14 + $0x1fb0] sm:$0xff]   ;;  %v3262_v0 = vrot.slane %v18664_v13, %v17448_v42 }
 0x49f   : > { %15283 = vmatprep.subr.bf16.mxu0 %v16702_v60  ;;  %v16736_v63 = vld [vmem:[%s17372_s14 + $0x1f38] sm:$0xff]  }
 0x4a0   : > { %15304 = vmatpush3.bf16.msra.mxu1 %v16701_v1  ;;  %v16737_v1 = vld [vmem:[%s17372_s14 + $0x1fb8] sm:$0xff]  }
 0x4a1   : > { %15305 = vmatprep.subr.bf16.mxu1 %v16703_v3 }
 0x4a2   : > { %15284 = vmatpush3.bf16.msra.mxu0 %v16704_v4 }
 0x4a3   : > { %15313 = vmatprep.subr.bf16.mxu0 %v16706_v7 }
 0x4a4   : > { %15306 = vmatpush3.bf16.msra.mxu1 %v16705_v9 }
 0x4a5   : > { %15335 = vmatprep.subr.bf16.mxu1 %v16707_v12  ;;  %11986 = vmatmul.mubr.bf16.vlgmr.msra.gmra.mrb[120].mxu0 %v3255_v11 }
 0x4a6   : > { %15314 = vmatpush3.bf16.msra.mxu0 %v16708_v15  ;;  %12065 = vmatprep.mubr.bf16.mxu0 %v3276_v21 }
 0x4a7   : > { %12026 = vmatmul.mubr.bf16.vlgmr.msra.gmra.mrb[120].mxu1 %v3277_v17  ;;  %15315 = vmatprep.subr.bf16.mxu0 %v16710_v18 }
 0x4a8   : > { %15336 = vmatpush3.bf16.msra.mxu1 %v16709_v20  ;;  %12105 = vmatprep.mubr.bf16.mxu1 %v3280_v24 }
 0x4a9   : > { %15337 = vmatprep.subr.bf16.mxu1 %v16711_v22 }
 0x4aa   : > { %15316 = vmatpush3.bf16.msra.mxu0 %v16712_v23 }
 0x4ab   : > { %15317 = vmatprep.subr.bf16.mxu0 %v16714_v25 }
 0x4ac   : > { %15338 = vmatpush3.bf16.msra.mxu1 %v16713_v26 }
 0x4ad   : > { %15339 = vmatprep.subr.bf16.mxu1 %v16715_v27 }
 0x4ae   : > { %15318 = vmatpush3.bf16.msra.mxu0 %v16716_v28 }
 0x4af   : > { %15319 = vmatprep.subr.bf16.mxu0 %v16718_v29 }
 0x4b0   : > { %15340 = vmatpush3.bf16.msra.mxu1 %v16717_v30 }
 0x4b1   : > { %15341 = vmatprep.subr.bf16.mxu1 %v16719_v31 }
 0x4b2   : > { %15320 = vmatpush3.bf16.msra.mxu0 %v16720_v32 }
 0x4b3   : > { %15321 = vmatprep.subr.bf16.mxu0 %v16722_v33 }
 0x4b4   : > { %15342 = vmatpush3.bf16.msra.mxu1 %v16721_v35 }
 0x4b5   : > { %15343 = vmatprep.subr.bf16.mxu1 %v16723_v36 }
 0x4b6   : > { %15322 = vmatpush3.bf16.msra.mxu0 %v16724_v37 }
 0x4b7   : > { %15323 = vmatprep.subr.bf16.mxu0 %v16726_v38 }
 0x4b8   : > { %v15021_v40 = vpop.f32.mrb[96].mxu0  ;;  %15344 = vmatpush3.bf16.msra.mxu1 %v16725_v39 }
 0x4b9   : > { %v15022_v43 = vpop.f32.mrb[97].mxu0  ;;  %15345 = vmatprep.subr.bf16.mxu1 %v16727_v41 }
 0x4ba   : > { %v15043_v45 = vpop.f32.mrb[96].mxu1  ;;  %v15023_v46 = vadd.f32 %v15022_v43, %v15021_v40  ;;  %v15024_v47 = vpop.f32.mrb[98].mxu0  ;;  %15324 = vmatpush3.bf16.msra.mxu0 %v16728_v44 }
 0x4bb   : > { %v15044_v50 = vpop.f32.mrb[97].mxu1  ;;  %v15025_v51 = vpop.f32.mrb[99].mxu0  ;;  %15325 = vmatprep.subr.bf16.mxu0 %v16730_v49 }
 0x4bc   : > { %v11508_v52 = vadd.f32 %v15023_v46, %v18652_v2  ;;  %v15045_v53 = vadd.f32 %v15044_v50, %v15043_v45  ;;  %v15046_v54 = vpop.f32.mrb[98].mxu1  ;;  %15346 = vmatpush3.bf16.msra.mxu1 %v16729_v48  ;;  %v3278_v2 = vcombine.high %v3262_v0, %v3262_v0 }
 0x4bd   : > { %v15047_v56 = vpop.f32.mrb[99].mxu1  ;;  %15347 = vmatprep.subr.bf16.mxu1 %v16731_v55 }
 0x4be   : > { %v11548_v58 = vadd.f32 %v15045_v53, %v11508_v52  ;;  %15326 = vmatpush3.bf16.msra.mxu0 %v16732_v57 }
 0x4bf   : > { %15327 = vmatprep.subr.bf16.mxu0 %v16734_v59 }
 0x4c0   : > { %15348 = vmatpush3.bf16.msra.mxu1 %v16733_v61 }
 0x4c1   : > { %15349 = vmatprep.subr.bf16.mxu1 %v16735_v62 }
 0x4c2   : > { %15328 = vmatpush3.bf16.msra.mxu0 %v16736_v63 }
 0x4c4   : > { %15350 = vmatpush3.bf16.msra.mxu1 %v16737_v1 }
 0x4c5   : > { %12066 = vmatmul.mubr.bf16.vlgmr.msra.gmra.mrb[124].mxu0 %v3262_v0 }
 0x4c7   : > { %12106 = vmatmul.mubr.bf16.vlgmr.msra.gmra.mrb[124].mxu1 %v3278_v2 }
 0x4d8   : > { %v15065_v60 = vpop.f32.mrb[100].mxu0 }
 0x4d9   : > { %v15066_v3 = vpop.f32.mrb[101].mxu0 }
 0x4da   : > { %v15087_v4 = vpop.f32.mrb[100].mxu1  ;;  %v15067_v5 = vadd.f32 %v15066_v3, %v15065_v60  ;;  %v15068_v6 = vpop.f32.mrb[102].mxu0 }
 0x4db   : > { %v15088_v7 = vpop.f32.mrb[101].mxu1  ;;  %v15069_v8 = vpop.f32.mrb[103].mxu0 }
 0x4dc   : > { %v11588_v9 = vadd.f32 %v15067_v5, %v11548_v58  ;;  %v15089_v10 = vadd.f32 %v15088_v7, %v15087_v4  ;;  %v15090_v11 = vpop.f32.mrb[102].mxu1 }
 0x4dd   : > { %v15091_v12 = vpop.f32.mrb[103].mxu1 }
 0x4de   : > { %v11628_v42 = vadd.f32 %v15089_v10, %v11588_v9 }
 0x4f8   : > { %v15109_v13 = vpop.f32.mrb[104].mxu0 }
 0x4f9   : > { %v15110_v14 = vpop.f32.mrb[105].mxu0 }
 0x4fa   : > { %v15131_v15 = vpop.f32.mrb[104].mxu1  ;;  %v15111_v16 = vadd.f32 %v15110_v14, %v15109_v13  ;;  %v15112_v17 = vpop.f32.mrb[106].mxu0 }
 0x4fb   : > { %v15132_v18 = vpop.f32.mrb[105].mxu1  ;;  %v15113_v19 = vpop.f32.mrb[107].mxu0 }
 0x4fc   : > { %v11668_v20 = vadd.f32 %v15111_v16, %v11628_v42  ;;  %v15133_v21 = vadd.f32 %v15132_v18, %v15131_v15  ;;  %v15134_v22 = vpop.f32.mrb[106].mxu1 }
 0x4fd   : > { %v15135_v23 = vpop.f32.mrb[107].mxu1 }
 0x4fe   : > { %v11708_v24 = vadd.f32 %v15133_v21, %v11668_v20  ;;  %v432_v20 = vld [vmem:[#allocation2] sm:$0x3] }
 0x518   : > { %v15153_v25 = vpop.f32.mrb[108].mxu0 }
 0x519   : > { %v15154_v26 = vpop.f32.mrb[109].mxu0 }
 0x51a   : > { %v15175_v27 = vpop.f32.mrb[108].mxu1  ;;  %v15155_v28 = vadd.f32 %v15154_v26, %v15153_v25  ;;  %v15156_v29 = vpop.f32.mrb[110].mxu0  ;;  %v12130_v25 = vld [vmem:[%s17400_s20 + $0x8] sm:$0xff] (!%p13936_p10)  ;;  %v12131_v26 = vld [vmem:[%s17400_s20 + $0x10] sm:$0xff] (!%p13936_p10) }
 0x51b   : > { %v15176_v30 = vpop.f32.mrb[109].mxu1  ;;  %v15157_v31 = vpop.f32.mrb[111].mxu0  ;;  %v12132_v29 = vld [vmem:[%s17400_s20 + $0x18] sm:$0xff] (!%p13936_p10) }
 0x51c   : > { %v11748_v32 = vadd.f32 %v15155_v28, %v11708_v24  ;;  %v15177_v33 = vadd.f32 %v15176_v30, %v15175_v27  ;;  %v15178_v35 = vpop.f32.mrb[110].mxu1  ;;  %v12129_v24 = vld [vmem:[%s17400_s20] sm:$0xff] (!%p13936_p10)  ;;  %v17035_v27 = vmov (!%p13936_p10), 0.0|0.0   ;;  %v17037_v30 = vmov (!%p13936_p10), 0.0  }
 0x51d   : > { %v15179_v36 = vpop.f32.mrb[111].mxu1  ;;  %15409 = vmatprep.subr.bf16.mxu0 (!%p13936_p10), %v17035_v27  ;;  %v15410_v28 = vpack.c.bf16 (!%p13936_p10), %v12130_v25, %v12129_v24  ;;  %15406 = vmatprep.mubr.msk.f32.mxu0 (!%p13936_p10), %vm17036_vm0, %v17037_v30  ;;  %v15413_v31 = vpack.c.bf16 (!%p13936_p10), %v12132_v29, %v12131_v26  ;;  %v12218_v35 = vld [vmem:[%s17388_s19 + $0x8] sm:$0xff] (!%p13936_p10)  ;;  %v12220_v25 = vld [vmem:[%s17388_s19 + $0x18] sm:$0xff] (!%p13936_p10) }
 0x51e   : > { %v11788_v37 = vadd.f32 %v15177_v33, %v11748_v32  ;;  %12409 = vmatprep.mubr.f32.mxu1 (!%p13936_p10), %v17037_v30  ;;  %v12133_v32 = vld [vmem:[%s17400_s20 + $0x20] sm:$0xff] (!%p13936_p10)  ;;  %v12134_v33 = vld [vmem:[%s17400_s20 + $0x28] sm:$0xff] (!%p13936_p10) }
 0x51f   : > { %15411 = vmatpush3.bf16.msra.mxu0 (!%p13936_p10), %v15410_v28  ;;  %v12226_v36 = vld [vmem:[%s17388_s19 + $0x48] sm:$0xff] (!%p13936_p10)  ;;  %v12228_v26 = vld [vmem:[%s17388_s19 + $0x58] sm:$0xff] (!%p13936_p10) }
 0x520   : > { %15412 = vmatprep.subr.bf16.mxu0 (!%p13936_p10), %v17035_v27  ;;  %v12322_v24 = vld [vmem:[%s17388_s19 + $0x348] sm:$0xff] (!%p13936_p10) }
 0x523   : > { %15414 = vmatpush3.bf16.msra.mxu0 (!%p13936_p10), %v15413_v31 }
 0x524   : > { %15415 = vmatprep.subr.bf16.mxu0 (!%p13936_p10), %v17035_v27 }
 0x538   : > { %v15197_v38 = vpop.f32.mrb[112].mxu0 }
 0x539   : > { %v15198_v39 = vpop.f32.mrb[113].mxu0 }
 0x53a   : > { %v15219_v40 = vpop.f32.mrb[112].mxu1  ;;  %v15199_v41 = vadd.f32 %v15198_v39, %v15197_v38  ;;  %v15200_v43 = vpop.f32.mrb[114].mxu0  ;;  %v12217_v38 = vld [vmem:[%s17388_s19] sm:$0xff] (!%p13936_p10)  ;;  %v15416_v39 = vpack.c.bf16 (!%p13936_p10), %v12134_v33, %v12133_v32  ;;  %v12219_v32 = vld [vmem:[%s17388_s19 + $0x10] sm:$0xff] (!%p13936_p10) }
 0x53b   : > { %v15220_v44 = vpop.f32.mrb[113].mxu1  ;;  %v15201_v45 = vpop.f32.mrb[115].mxu0  ;;  %v12136_v43 = vld [vmem:[%s17400_s20 + $0x38] sm:$0xff] (!%p13936_p10) }
 0x53c   : > { %v11828_v46 = vadd.f32 %v15199_v41, %v11788_v37  ;;  %v15221_v47 = vadd.f32 %v15220_v44, %v15219_v40  ;;  %v15222_v48 = vpop.f32.mrb[114].mxu1  ;;  %v15433_v37 = vpack.c.bf16 (!%p13936_p10), %v12226_v36, %v12218_v35  ;;  %v12225_v40 = vld [vmem:[%s17388_s19 + $0x40] sm:$0xff] (!%p13936_p10)  ;;  %v12135_v41 = vld [vmem:[%s17400_s20 + $0x30] sm:$0xff] (!%p13936_p10)  ;;  %15417 = vmatpush3.bf16.msra.mxu0 (!%p13936_p10), %v15416_v39 }
 0x53d   : > { %v15223_v49 = vpop.f32.mrb[115].mxu1  ;;  %v15435_v44 = vpack.c.bf16 (!%p13936_p10), %v12225_v40, %v12217_v38  ;;  %v12234_v45 = vld [vmem:[%s17388_s19 + $0x88] sm:$0xff] (!%p13936_p10)  ;;  %v12241_v48 = vld [vmem:[%s17388_s19 + $0xc0] sm:$0xff] (!%p13936_p10)  ;;  %15418 = vmatprep.subr.bf16.mxu0 (!%p13936_p10), %v17035_v27  ;;  %v12227_v38 = vld [vmem:[%s17388_s19 + $0x50] sm:$0xff] (!%p13936_p10) }
 0x53e   : > { %v11868_v50 = vadd.f32 %v15221_v47, %v11828_v46  ;;  %15434 = vmatprep.subr.bf16.mxu1 (!%p13936_p10), %v15433_v37  ;;  %v12242_v46 = vld [vmem:[%s17388_s19 + $0xc8] sm:$0xff] (!%p13936_p10)  ;;  %v12233_v47 = vld [vmem:[%s17388_s19 + $0x80] sm:$0xff] (!%p13936_p10)  ;;  %v15465_v37 = vpack.c.bf16 (!%p13936_p10), %v12228_v26, %v12220_v25  ;;  %v12300_v25 = vld [vmem:[%s17388_s19 + $0x298] sm:$0xff] (!%p13936_p10) }
 0x53f   : > { %15436 = vmatpush1.bf16.msra.mxu1 (!%p13936_p10), %v15435_v44  ;;  %v15437_v49 = vpack.c.bf16 (!%p13936_p10), %v12242_v46, %v12234_v45  ;;  %v12313_v35 = vld [vmem:[%s17388_s19 + $0x300] sm:$0xff] (!%p13936_p10)  ;;  %v12330_v39 = vld [vmem:[%s17388_s19 + $0x388] sm:$0xff] (!%p13936_p10)  ;;  %v15467_v46 = vpack.c.bf16 (!%p13936_p10), %v12227_v38, %v12219_v32  ;;  %v12308_v26 = vld [vmem:[%s17388_s19 + $0x2d8] sm:$0xff] (!%p13936_p10) }
 0x540   : > { %v12321_v36 = vld [vmem:[%s17388_s19 + $0x340] sm:$0xff] (!%p13936_p10)  ;;  %v12338_v40 = vld [vmem:[%s17388_s19 + $0x3c8] sm:$0xff] (!%p13936_p10) }
 0x541   : > { %15438 = vmatprep.subr.bf16.mxu1 (!%p13936_p10), %v15437_v49  ;;  %v15459_v45 = vpack.c.bf16 (!%p13936_p10), %v12321_v36, %v12313_v35  ;;  %v12337_v49 = vld [vmem:[%s17388_s19 + $0x3c0] sm:$0xff] (!%p13936_p10)  ;;  %v15485_v36 = vpack.c.bf16 (!%p13936_p10), %v12308_v26, %v12300_v25  ;;  %v12286_v38 = vld [vmem:[%s17388_s19 + $0x228] sm:$0xff] (!%p13936_p10) }
 0x542   : > { %v12277_v35 = vld [vmem:[%s17388_s19 + $0x1e0] sm:$0xff] (!%p13936_p10) }
 0x558   : > { %v15241_v51 = vpop.f32.mrb[116].mxu0 }
 0x559   : > { %v15242_v52 = vpop.f32.mrb[117].mxu0 }
 0x55a   : > { %v15263_v53 = vpop.f32.mrb[116].mxu1  ;;  %v15243_v54 = vadd.f32 %v15242_v52, %v15241_v51  ;;  %v15244_v55 = vpop.f32.mrb[118].mxu0  ;;  %v15419_v51 = vpack.c.bf16 (!%p13936_p10), %v12136_v43, %v12135_v41  ;;  %v12137_v52 = vld [vmem:[%s17400_s20 + $0x40] sm:$0xff] (!%p13936_p10) }
 0x55b   : > { %v15264_v56 = vpop.f32.mrb[117].mxu1  ;;  %v15245_v57 = vpop.f32.mrb[119].mxu0  ;;  %v12138_v55 = vld [vmem:[%s17400_s20 + $0x48] sm:$0xff] (!%p13936_p10)  ;;  %v12236_v41 = vld [vmem:[%s17388_s19 + $0x98] sm:$0xff] (!%p13936_p10) }
 0x55c   : > { %v11908_v58 = vadd.f32 %v15243_v54, %v11868_v50  ;;  %v15265_v59 = vadd.f32 %v15264_v56, %v15263_v53  ;;  %v15266_v61 = vpop.f32.mrb[118].mxu1  ;;  %v15439_v50 = vpack.c.bf16 (!%p13936_p10), %v12241_v48, %v12233_v47  ;;  %v12250_v53 = vld [vmem:[%s17388_s19 + $0x108] sm:$0xff] (!%p13936_p10)  ;;  %v12249_v57 = vld [vmem:[%s17388_s19 + $0x100] sm:$0xff] (!%p13936_p10)  ;;  %15420 = vmatpush3.bf16.msra.mxu0 (!%p13936_p10), %v15419_v51  ;;  %v12244_v43 = vld [vmem:[%s17388_s19 + $0xd8] sm:$0xff] (!%p13936_p10) }
 0x55d   : > { %v15267_v62 = vpop.f32.mrb[119].mxu1  ;;  %v12258_v54 = vld [vmem:[%s17388_s19 + $0x148] sm:$0xff] (!%p13936_p10)  ;;  %15421 = vmatprep.subr.bf16.mxu0 (!%p13936_p10), %v17035_v27  ;;  %v12235_v47 = vld [vmem:[%s17388_s19 + $0x90] sm:$0xff] (!%p13936_p10)  ;;  %v12329_v48 = vld [vmem:[%s17388_s19 + $0x380] sm:$0xff] (!%p13936_p10) }
 0x55e   : > { %v11948_v63 = vadd.f32 %v15265_v59, %v11908_v58  ;;  %v15441_v56 = vpack.c.bf16 (!%p13936_p10), %v12258_v54, %v12250_v53  ;;  %v12257_v58 = vld [vmem:[%s17388_s19 + $0x140] sm:$0xff] (!%p13936_p10)  ;;  %15440 = vmatpush1.bf16.msra.mxu1 (!%p13936_p10), %v15439_v50  ;;  %v12266_v61 = vld [vmem:[%s17388_s19 + $0x188] sm:$0xff] (!%p13936_p10)  ;;  %v15469_v50 = vpack.c.bf16 (!%p13936_p10), %v12244_v43, %v12236_v41  ;;  %v12243_v51 = vld [vmem:[%s17388_s19 + $0xd0] sm:$0xff] (!%p13936_p10) }
 0x55f   : > { %v15443_v59 = vpack.c.bf16 (!%p13936_p10), %v12257_v58, %v12249_v57  ;;  %v12274_v62 = vld [vmem:[%s17388_s19 + $0x1c8] sm:$0xff] (!%p13936_p10)  ;;  %v12252_v54 = vld [vmem:[%s17388_s19 + $0x118] sm:$0xff] (!%p13936_p10)  ;;  %v15471_v57 = vpack.c.bf16 (!%p13936_p10), %v12243_v51, %v12235_v47  ;;  %v12251_v58 = vld [vmem:[%s17388_s19 + $0x110] sm:$0xff] (!%p13936_p10) }
 0x560   : > { %15442 = vmatprep.subr.bf16.mxu1 (!%p13936_p10), %v15441_v56  ;;  %v12230_v53 = vld [vmem:[%s17388_s19 + $0x68] sm:$0xff] (!%p13936_p10)  ;;  %v15463_v56 = vpack.c.bf16 (!%p13936_p10), %v12337_v49, %v12329_v48  ;;  %v12324_v41 = vld [vmem:[%s17388_s19 + $0x358] sm:$0xff] (!%p13936_p10)  ;;  %v12293_v48 = vld [vmem:[%s17388_s19 + $0x260] sm:$0xff] (!%p13936_p10) }
 0x561   : > { %v12302_v51 = vld [vmem:[%s17388_s19 + $0x2a8] sm:$0xff] (!%p13936_p10) }
 0x562   : > { %15444 = vmatpush1.bf16.msra.mxu1 (!%p13936_p10), %v15443_v59 }
 0x578   : > { %v15285_v0 = vpop.f32.mrb[120].mxu0 }
 0x579   : > { %v15286_v1 = vpop.f32.mrb[121].mxu0 }
 0x57a   : > { %v15307_v2 = vpop.f32.mrb[120].mxu1  ;;  %v15287_v60 = vadd.f32 %v15286_v1, %v15285_v0  ;;  %v15288_v3 = vpop.f32.mrb[122].mxu0  ;;  %v15445_v0 = vpack.c.bf16 (!%p13936_p10), %v12274_v62, %v12266_v61  ;;  %v12265_v1 = vld [vmem:[%s17388_s19 + $0x180] sm:$0xff] (!%p13936_p10) }
 0x57b   : > { %v15308_v4 = vpop.f32.mrb[121].mxu1  ;;  %v15289_v5 = vpop.f32.mrb[123].mxu0  ;;  %v12140_v3 = vld [vmem:[%s17400_s20 + $0x58] sm:$0xff] (!%p13936_p10)  ;;  %v12221_v61 = vld [vmem:[%s17388_s19 + $0x20] sm:$0xff] (!%p13936_p10) }
 0x57c   : > { %v11988_v6 = vadd.f32 %v15287_v60, %v11948_v63  ;;  %v15309_v7 = vadd.f32 %v15308_v4, %v15307_v2  ;;  %v15310_v8 = vpop.f32.mrb[122].mxu1  ;;  %v15422_v63 = vpack.c.bf16 (!%p13936_p10), %v12138_v55, %v12137_v52  ;;  %v12273_v2 = vld [vmem:[%s17388_s19 + $0x1c0] sm:$0xff] (!%p13936_p10)  ;;  %v12139_v60 = vld [vmem:[%s17400_s20 + $0x50] sm:$0xff] (!%p13936_p10)  ;;  %15446 = vmatprep.subr.bf16.mxu1 (!%p13936_p10), %v15445_v0  ;;  %v12260_v55 = vld [vmem:[%s17388_s19 + $0x158] sm:$0xff] (!%p13936_p10) }
 0x57d   : > { %v15311_v9 = vpop.f32.mrb[123].mxu1  ;;  %v12282_v4 = vld [vmem:[%s17388_s19 + $0x208] sm:$0xff] (!%p13936_p10)  ;;  %v12141_v8 = vld [vmem:[%s17400_s20 + $0x60] sm:$0xff] (!%p13936_p10)  ;;  %v12259_v0 = vld [vmem:[%s17388_s19 + $0x150] sm:$0xff] (!%p13936_p10) }
 0x57e   : > { %v12028_v10 = vadd.f32 %v15309_v7, %v11988_v6  ;;  %v12290_v5 = vld [vmem:[%s17388_s19 + $0x248] sm:$0xff] (!%p13936_p10)  ;;  %v15447_v6 = vpack.c.bf16 (!%p13936_p10), %v12273_v2, %v12265_v1  ;;  %15423 = vmatpush3.bf16.msra.mxu0 (!%p13936_p10), %v15422_v63  ;;  %v15425_v7 = vpack.c.bf16 (!%p13936_p10), %v12140_v3, %v12139_v60  ;;  %v12229_v62 = vld [vmem:[%s17388_s19 + $0x60] sm:$0xff] (!%p13936_p10)  ;;  %v15473_v63 = vpack.c.bf16 (!%p13936_p10), %v12260_v55, %v12252_v54  ;;  %v12268_v60 = vld [vmem:[%s17388_s19 + $0x198] sm:$0xff] (!%p13936_p10) }
 0x57f   : > { %v15449_v9 = vpack.c.bf16 (!%p13936_p10), %v12290_v5, %v12282_v4  ;;  %15424 = vmatprep.subr.bf16.mxu0 (!%p13936_p10), %v17035_v27  ;;  %v12222_v52 = vld [vmem:[%s17388_s19 + $0x28] sm:$0xff] (!%p13936_p10)  ;;  %v12276_v3 = vld [vmem:[%s17388_s19 + $0x1d8] sm:$0xff] (!%p13936_p10)  ;;  %v15499_v4 = vpack.c.bf16 (!%p13936_p10), %v12229_v62, %v12221_v61  ;;  %v15475_v5 = vpack.c.bf16 (!%p13936_p10), %v12259_v0, %v12251_v58  ;;  %v12309_v61 = vld [vmem:[%s17388_s19 + $0x2e0] sm:$0xff] (!%p13936_p10) }
 0x580   : > { %15448 = vmatpush1.bf16.msra.mxu1 (!%p13936_p10), %v15447_v6  ;;  %v15497_v59 = vpack.c.bf16 (!%p13936_p10), %v12230_v53, %v12222_v52  ;;  %v12238_v1 = vld [vmem:[%s17388_s19 + $0xa8] sm:$0xff] (!%p13936_p10)  ;;  %v12267_v6 = vld [vmem:[%s17388_s19 + $0x190] sm:$0xff] (!%p13936_p10)  ;;  %v12332_v53 = vld [vmem:[%s17388_s19 + $0x398] sm:$0xff] (!%p13936_p10) }
 0x581   : > { %15450 = vmatprep.subr.bf16.mxu1 (!%p13936_p10), %v15449_v9  ;;  %v12246_v2 = vld [vmem:[%s17388_s19 + $0xe8] sm:$0xff] (!%p13936_p10)  ;;  %v12245_v9 = vld [vmem:[%s17388_s19 + $0xe0] sm:$0xff] (!%p13936_p10)  ;;  %v12340_v54 = vld [vmem:[%s17388_s19 + $0x3d8] sm:$0xff] (!%p13936_p10) }
 0x582   : > { %15426 = vmatpush3.bf16.msra.mxu0 (!%p13936_p10), %v15425_v7  ;;  %v15501_v7 = vpack.c.bf16 (!%p13936_p10), %v12246_v2, %v12238_v1  ;;  %v12310_v52 = vld [vmem:[%s17388_s19 + $0x2e8] sm:$0xff] (!%p13936_p10)  ;;  %v15493_v62 = vpack.c.bf16 (!%p13936_p10), %v12340_v54, %v12332_v53  ;;  %v12224_v2 = vld [vmem:[%s17388_s19 + $0x38] sm:$0xff] (!%p13936_p10)  ;;  %v12319_v54 = vld [vmem:[%s17388_s19 + $0x330] sm:$0xff] (!%p13936_p10) }
 0x583   : > { %15427 = vmatprep.subr.bf16.mxu0 (!%p13936_p10), %v17035_v27  ;;  %v15517_v58 = vpack.c.bf16 (!%p13936_p10), %v12310_v52, %v12302_v51  ;;  %v12318_v0 = vld [vmem:[%s17388_s19 + $0x328] sm:$0xff] (!%p13936_p10)  ;;  %v12328_v51 = vld [vmem:[%s17388_s19 + $0x378] sm:$0xff] (!%p13936_p10) }
 0x584   : > { %v12326_v1 = vld [vmem:[%s17388_s19 + $0x368] sm:$0xff] (!%p13936_p10) }
 0x598   : > { %v15329_v11 = vpop.f32.mrb[124].mxu0 }
 0x599   : > { %v15330_v12 = vpop.f32.mrb[125].mxu0 }
 0x59a   : > { %v15351_v42 = vpop.f32.mrb[124].mxu1  ;;  %v15331_v13 = vadd.f32 %v15330_v12, %v15329_v11  ;;  %v15332_v14 = vpop.f32.mrb[126].mxu0  ;;  %v12289_v11 = vld [vmem:[%s17388_s19 + $0x240] sm:$0xff] (!%p13936_p10) }
 0x59b   : > { %v15352_v15 = vpop.f32.mrb[125].mxu1  ;;  %v15333_v16 = vpop.f32.mrb[127].mxu0  ;;  %v12142_v12 = vld [vmem:[%s17400_s20 + $0x68] sm:$0xff] (!%p13936_p10)  ;;  %v12143_v14 = vld [vmem:[%s17400_s20 + $0x70] sm:$0xff] (!%p13936_p10) }
 0x59c   : > { %v12068_v17 = vadd.f32 %v15331_v13, %v12028_v10  ;;  %v15353_v18 = vadd.f32 %v15352_v15, %v15351_v42  ;;  %v15354_v19 = vpop.f32.mrb[126].mxu1  ;;  %12118 = sbr.rel (%p13936_p10) target bundleno = 1738 (0x6ca), region = 64  ;;  %v12281_v10 = vld [vmem:[%s17388_s19 + $0x200] sm:$0xff] (!%p13936_p10)  ;;  %v12298_v42 = vld [vmem:[%s17388_s19 + $0x288] sm:$0xff] (!%p13936_p10) }
 0x59d   : > { %v15355_v21 = vpop.f32.mrb[127].mxu1  ;;  %v12306_v13 = vld [vmem:[%s17388_s19 + $0x2c8] sm:$0xff] (!%p13936_p10)  ;;  %v15451_v16 = vpack.c.bf16 (!%p13936_p10), %v12289_v11, %v12281_v10  ;;  %v15477_v10 = vpack.c.bf16 (!%p13936_p10), %v12276_v3, %v12268_v60  ;;  %v12275_v11 = vld [vmem:[%s17388_s19 + $0x1d0] sm:$0xff] (!%p13936_p10)  ;;  %v12232_v60 = vld [vmem:[%s17388_s19 + $0x78] sm:$0xff] (!%p13936_p10) }
 0x59e   : > { %v12108_v22 = vadd.f32 %v15353_v18, %v12068_v17  ;;  %v15428_v17 = vpack.c.bf16 (!%p13936_p10), %v12142_v12, %v12141_v8  ;;  %v13937_v18 = vld [vmem:[%s341_s27] ss:$0 sm:$0xff] (!%p13936_p10)  ;;  %v15453_v19 = vpack.c.bf16 (!%p13936_p10), %v12306_v13, %v12298_v42  ;;  %v12305_v21 = vld [vmem:[%s17388_s19 + $0x2c0] sm:$0xff] (!%p13936_p10)  ;;  %v12254_v12 = vld [vmem:[%s17388_s19 + $0x128] sm:$0xff] (!%p13936_p10) }
 0x59f   : > { %15452 = vmatpush1.bf16.msra.mxu1 (!%p13936_p10), %v15451_v16  ;;  %v12237_v8 = vld [vmem:[%s17388_s19 + $0xa0] sm:$0xff] (!%p13936_p10)  ;;  %v12262_v42 = vld [vmem:[%s17388_s19 + $0x168] sm:$0xff] (!%p13936_p10)  ;;  %v12284_v13 = vld [vmem:[%s17388_s19 + $0x218] sm:$0xff] (!%p13936_p10)  ;;  %v15479_v16 = vpack.c.bf16 (!%p13936_p10), %v12275_v11, %v12267_v6  ;;  %v15521_v6 = vpack.c.bf16 (!%p13936_p10), %v12326_v1, %v12318_v0 }
 0x5a0   : > { %v12113_v23 = vadd.f32 %v12108_v22, %v432_v20  ;;  %v12297_v20 = vld [vmem:[%s17388_s19 + $0x280] sm:$0xff] (!%p13936_p10)  ;;  %v12144_v22 = vld [vmem:[%s17400_s20 + $0x78] sm:$0xff] (!%p13936_p10)  ;;  %15429 = vmatpush3.bf16.msra.mxu0 (!%p13936_p10), %v15428_v17  ;;  %15454 = vmatprep.subr.bf16.mxu1 (!%p13936_p10), %v15453_v19  ;;  %v12334_v11 = vld [vmem:[%s17388_s19 + $0x3a8] sm:$0xff] (!%p13936_p10) }
 0x5a1   : > { %v15455_v29 = vpack.c.bf16 (!%p13936_p10), %v12305_v21, %v12297_v20  ;;  %v15431_v31 = vpack.c.bf16 (!%p13936_p10), %v12144_v22, %v12143_v14  ;;  %15430 = vmatprep.subr.bf16.mxu0 (!%p13936_p10), %v17035_v27  ;;  %v15461_v27 = vpack.c.bf16 (!%p13936_p10), %v12338_v40, %v12330_v39  ;;  %v12292_v14 = vld [vmem:[%s17388_s19 + $0x258] sm:$0xff] (!%p13936_p10)  ;;  %v12283_v17 = vld [vmem:[%s17388_s19 + $0x210] sm:$0xff] (!%p13936_p10)  ;;  %v12253_v19 = vld [vmem:[%s17388_s19 + $0x120] sm:$0xff] (!%p13936_p10) }
 0x5a2   : > { %12114 = vst [vmem:[#allocation2] sm:$0x3] %v12113_v23  ;;  %v12314_v23 = vld [vmem:[%s17388_s19 + $0x308] sm:$0xff] (!%p13936_p10)  ;;  %v12261_v20 = vld [vmem:[%s17388_s19 + $0x160] sm:$0xff] (!%p13936_p10)  ;;  %v15481_v21 = vpack.c.bf16 (!%p13936_p10), %v12292_v14, %v12284_v13  ;;  %v12291_v22 = vld [vmem:[%s17388_s19 + $0x250] sm:$0xff] (!%p13936_p10) }
 0x5a3   : > { %v15457_v33 = vpack.c.bf16 %v12322_v24, %v12314_v23  ;;  %15456 = vmatpush1.bf16.msra.mxu1 %v15455_v29  ;;  %v12270_v23 = vld [vmem:[%s17388_s19 + $0x1a8] sm:$0xff]  ;;  %v15483_v29 = vpack.c.bf16 %v12291_v22, %v12283_v17  ;;  %v12316_v40 = vld [vmem:[%s17388_s19 + $0x318] sm:$0xff]  ;;  %v12333_v17 = vld [vmem:[%s17388_s19 + $0x3a0] sm:$0xff] }
 0x5a4   : > { %15432 = vmatpush3.bf16.msra.mxu0 %v15431_v31  ;;  %v12278_v24 = vld [vmem:[%s17388_s19 + $0x1e8] sm:$0xff]  ;;  %v12299_v31 = vld [vmem:[%s17388_s19 + $0x290] sm:$0xff]  ;;  %v15489_v49 = vpack.c.bf16 %v12324_v41, %v12316_v40  ;;  %v12248_v13 = vld [vmem:[%s17388_s19 + $0xf8] sm:$0xff] }
 0x5a5   : > { %15458 = vmatprep.subr.bf16.mxu1 %v15457_v33  ;;  %15466 = vmatprep.subr.bf16.mxu0 %v15465_v37  ;;  %v15509_v32 = vpack.c.bf16 %v12278_v24, %v12270_v23  ;;  %v12269_v33 = vld [vmem:[%s17388_s19 + $0x1a0] sm:$0xff]  ;;  %v12307_v37 = vld [vmem:[%s17388_s19 + $0x2d0] sm:$0xff]  ;;  %v12294_v39 = vld [vmem:[%s17388_s19 + $0x268] sm:$0xff] }
 0x5a6   : > { %v15511_v43 = vpack.c.bf16 %v12277_v35, %v12269_v33  ;;  %v15513_v47 = vpack.c.bf16 %v12294_v39, %v12286_v38  ;;  %v12256_v22 = vld [vmem:[%s17388_s19 + $0x138] sm:$0xff]  ;;  %v12287_v41 = vld [vmem:[%s17388_s19 + $0x230] sm:$0xff] }
 0x5a7   : > { %15460 = vmatpush1.bf16.msra.mxu1 %v15459_v45  ;;  %v15487_v45 = vpack.c.bf16 %v12307_v37, %v12299_v31  ;;  %v12264_v23 = vld [vmem:[%s17388_s19 + $0x178] sm:$0xff]  ;;  %v12279_v37 = vld [vmem:[%s17388_s19 + $0x1f0] sm:$0xff] }
 0x5a8   : > { %15462 = vmatprep.subr.bf16.mxu1 %v15461_v27  ;;  %v12285_v27 = vld [vmem:[%s17388_s19 + $0x220] sm:$0xff]  ;;  %v15537_v26 = vpack.c.bf16 %v12264_v23, %v12256_v22  ;;  %v12272_v31 = vld [vmem:[%s17388_s19 + $0x1b8] sm:$0xff] }
 0x5a9   : > { %v12119_v15 = vld [vmem:[#allocation2] sm:$0x3]  ;;  %v15515_v55 = vpack.c.bf16 %v12293_v48, %v12285_v27  ;;  %v12303_v48 = vld [vmem:[%s17388_s19 + $0x2b0] sm:$0xff] }
 0x5aa   : > { %v12127_v28 = vadd.f32 %v13937_v18, %v12119_v15  ;;  %v15503_v15 = vpack.c.bf16 %v12245_v9, %v12237_v8  ;;  %v15505_v18 = vpack.c.bf16 %v12262_v42, %v12254_v12  ;;  %v12325_v8 = vld [vmem:[%s17388_s19 + $0x360] sm:$0xff]  ;;  %v15529_v9 = vpack.c.bf16 %v12232_v60, %v12224_v2  ;;  %v12342_v12 = vld [vmem:[%s17388_s19 + $0x3e8] sm:$0xff]  ;;  %v12240_v42 = vld [vmem:[%s17388_s19 + $0xb8] sm:$0xff] }
 0x5ab   : > { %15464 = vmatpush1.bf16.msra.mxu1 %v15463_v56  ;;  %v12288_v38 = vld [vmem:[%s17388_s19 + $0x238] sm:$0xff] }
 0x5ac   : > { %v18768_v44 = vmax.f32 %v12127_v28, 0.0  ;;  %15498 = vmatprep.subr.bf16.mxu1 %v15497_v59  ;;  %v15507_v28 = vpack.c.bf16 %v12261_v20, %v12253_v19  ;;  %v12301_v59 = vld [vmem:[%s17388_s19 + $0x2a0] sm:$0xff]  ;;  %v15533_v19 = vpack.c.bf16 %v12248_v13, %v12240_v42  ;;  %v12239_v20 = vld [vmem:[%s17388_s19 + $0xb0] sm:$0xff]  ;;  %v12296_v39 = vld [vmem:[%s17388_s19 + $0x278] sm:$0xff] }
 0x5ad   : > { %v15519_v3 = vpack.c.bf16 %v12309_v61, %v12301_v59  ;;  %v15545_v40 = vpack.c.bf16 %v12296_v39, %v12288_v38  ;;  %v12335_v61 = vld [vmem:[%s17388_s19 + $0x3b0] sm:$0xff] }
 0x5ae   : > { %15407 = vmatmul.mubr.f32.vlgmr.msra.gmra.mrb[0].mxu0 %v18768_v44  ;;  %12410 = vmatmul.mubr.f32.vlgmr.msra.gmra.mrb[0].mxu1 %v18768_v44 }
 0x5af   : > { %15468 = vmatpush1.bf16.msra.mxu0 %v15467_v46  ;;  %12480 = vmatprep.mubr.f32.mxu0 %v17037_v30  ;;  %v12315_v46 = vld [vmem:[%s17388_s19 + $0x310] sm:$0xff] }
 0x5b0   : > { %15470 = vmatprep.subr.bf16.mxu0 %v15469_v50  ;;  %15500 = vmatpush1.bf16.msra.mxu1 %v15499_v4  ;;  %v12323_v50 = vld [vmem:[%s17388_s19 + $0x350] sm:$0xff] }
 0x5b1   : > { %12551 = vmatprep.mubr.f32.mxu1 %v17037_v30  ;;  %15502 = vmatprep.subr.bf16.mxu1 %v15501_v7  ;;  %v15491_v56 = vpack.c.bf16 %v12323_v50, %v12315_v46  ;;  %v12317_v7 = vld [vmem:[%s17388_s19 + $0x320] sm:$0xff]  ;;  %v12312_v46 = vld [vmem:[%s17388_s19 + $0x2f8] sm:$0xff] }
 0x5b2   : > { %v15523_v14 = vpack.c.bf16 %v12325_v8, %v12317_v7  ;;  %v12320_v50 = vld [vmem:[%s17388_s19 + $0x338] sm:$0xff] }
 0x5b3   : > { %15472 = vmatpush1.bf16.msra.mxu0 %v15471_v57  ;;  %v12331_v57 = vld [vmem:[%s17388_s19 + $0x390] sm:$0xff]  ;;  %v15553_v53 = vpack.c.bf16 %v12328_v51, %v12320_v50 }
 0x5b4   : > { %15474 = vmatprep.subr.bf16.mxu0 %v15473_v63  ;;  %15504 = vmatpush1.bf16.msra.mxu1 %v15503_v15  ;;  %v12339_v63 = vld [vmem:[%s17388_s19 + $0x3d0] sm:$0xff] }
 0x5b5   : > { %15506 = vmatprep.subr.bf16.mxu1 %v15505_v18  ;;  %v15495_v4 = vpack.c.bf16 %v12339_v63, %v12331_v57  ;;  %v12341_v18 = vld [vmem:[%s17388_s19 + $0x3e0] sm:$0xff]  ;;  %v12344_v57 = vld [vmem:[%s17388_s19 + $0x3f8] sm:$0xff] }
 0x5b6   : > { %v15527_v24 = vpack.c.bf16 %v12341_v18, %v12333_v17 }
 0x5b7   : > { %15476 = vmatpush1.bf16.msra.mxu0 %v15475_v5  ;;  %v12223_v5 = vld [vmem:[%s17388_s19 + $0x30] sm:$0xff] }
 0x5b8   : > { %15478 = vmatprep.subr.bf16.mxu0 %v15477_v10  ;;  %15508 = vmatpush1.bf16.msra.mxu1 %v15507_v28  ;;  %v12231_v10 = vld [vmem:[%s17388_s19 + $0x70] sm:$0xff] }
 0x5b9   : > { %15510 = vmatprep.subr.bf16.mxu1 %v15509_v32  ;;  %v15531_v15 = vpack.c.bf16 %v12231_v10, %v12223_v5  ;;  %v12255_v28 = vld [vmem:[%s17388_s19 + $0x130] sm:$0xff]  ;;  %v12280_v32 = vld [vmem:[%s17388_s19 + $0x1f8] sm:$0xff] }
 0x5ba   : > { %v15541_v35 = vpack.c.bf16 %v12280_v32, %v12272_v31 }
 0x5bb   : > { %15480 = vmatpush1.bf16.msra.mxu0 %v15479_v16  ;;  %v15525_v16 = vpack.c.bf16 %v12342_v12, %v12334_v11 }
 0x5bc   : > { %15482 = vmatprep.subr.bf16.mxu0 %v15481_v21  ;;  %15512 = vmatpush1.bf16.msra.mxu1 %v15511_v43  ;;  %v12247_v21 = vld [vmem:[%s17388_s19 + $0xf0] sm:$0xff] }
 0x5bd   : > { %15514 = vmatprep.subr.bf16.mxu1 %v15513_v47  ;;  %v15535_v25 = vpack.c.bf16 %v12247_v21, %v12239_v20  ;;  %v12295_v43 = vld [vmem:[%s17388_s19 + $0x270] sm:$0xff] }
 0x5be   : > { %v15547_v47 = vpack.c.bf16 %v12295_v43, %v12287_v41 }
 0x5bf   : > { %15484 = vmatpush1.bf16.msra.mxu0 %v15483_v29  ;;  %v12263_v29 = vld [vmem:[%s17388_s19 + $0x170] sm:$0xff] }
 0x5c0   : > { %15486 = vmatprep.subr.bf16.mxu0 %v15485_v36  ;;  %15516 = vmatpush1.bf16.msra.mxu1 %v15515_v55  ;;  %v15539_v33 = vpack.c.bf16 %v12263_v29, %v12255_v28  ;;  %v12271_v36 = vld [vmem:[%s17388_s19 + $0x1b0] sm:$0xff] }
 0x5c1   : > { %15518 = vmatprep.subr.bf16.mxu1 %v15517_v58  ;;  %v12327_v55 = vld [vmem:[%s17388_s19 + $0x370] sm:$0xff] }
 0x5c2   : > { %v15555_v58 = vpack.c.bf16 %v12327_v55, %v12319_v54 }
 0x5c3   : > { %15488 = vmatpush1.bf16.msra.mxu0 %v15487_v45  ;;  %v12304_v45 = vld [vmem:[%s17388_s19 + $0x2b8] sm:$0xff] }
 0x5c4   : > { %15490 = vmatprep.subr.bf16.mxu0 %v15489_v49  ;;  %15520 = vmatpush1.bf16.msra.mxu1 %v15519_v3  ;;  %v15549_v27 = vpack.c.bf16 %v12312_v46, %v12304_v45  ;;  %v12311_v49 = vld [vmem:[%s17388_s19 + $0x2f0] sm:$0xff] }
 0x5c5   : > { %15522 = vmatprep.subr.bf16.mxu1 %v15521_v6  ;;  %v15551_v52 = vpack.c.bf16 %v12311_v49, %v12303_v48 }
 0x5c7   : > { %15492 = vmatpush1.bf16.msra.mxu0 %v15491_v56  ;;  %v12336_v56 = vld [vmem:[%s17388_s19 + $0x3b8] sm:$0xff] }
 0x5c8   : > { %15494 = vmatprep.subr.bf16.mxu0 %v15493_v62  ;;  %15524 = vmatpush1.bf16.msra.mxu1 %v15523_v14  ;;  %v15557_v59 = vpack.c.bf16 %v12344_v57, %v12336_v56  ;;  %v12343_v62 = vld [vmem:[%s17388_s19 + $0x3f0] sm:$0xff] }
 0x5c9   : > { %15526 = vmatprep.subr.bf16.mxu1 %v15525_v16  ;;  %v15559_v63 = vpack.c.bf16 %v12343_v62, %v12335_v61 }
 0x5cb   : > { %15496 = vmatpush1.bf16.msra.mxu0 %v15495_v4  ;;  %v17038_v4 = vmov 1983009808  }
 0x5cc   : > { %15530 = vmatprep.subr.bf16.mxu0 %v15529_v9  ;;  %15528 = vmatpush1.bf16.msra.mxu1 %v15527_v24  ;;  %v12640_v5 = vunpack.c.l.s4 %v17038_v4 }
 0x5ce   : > { %12481 = vmatmul.mubr.f32.vlgmr.msra.gmra.mrb[2].mxu0 %v18768_v44  ;;  %v12641_v6 = vunpack.c.0.s8 %v12640_v5 }
 0x5cf   : > { %15532 = vmatpush1.bf16.msra.mxu0 %v15531_v15  ;;  %12622 = vmatprep.mubr.f32.mxu0 %v17037_v30  ;;  %v15543_v30 = vpack.c.bf16 %v12279_v37, %v12271_v36 }
 0x5d0   : > { %15534 = vmatprep.subr.bf16.mxu0 %v15533_v19  ;;  %12552 = vmatmul.mubr.f32.vlgmr.msra.gmra.mrb[2].mxu1 %v18768_v44  ;;  %v12644_v7 = vsub.s32 %v12641_v6, %v17440_v34 }
 0x5d3   : > { %15536 = vmatpush1.bf16.msra.mxu0 %v15535_v25 }
 0x5d4   : > { %15538 = vmatprep.subr.bf16.mxu0 %v15537_v26 }
 0x5d7   : > { %15540 = vmatpush1.bf16.msra.mxu0 %v15539_v33 }
 0x5d8   : > { %15542 = vmatprep.subr.bf16.mxu0 %v15541_v35 }
 0x5db   : > { %15544 = vmatpush1.bf16.msra.mxu0 %v15543_v30 }
 0x5dc   : > { %15546 = vmatprep.subr.bf16.mxu0 %v15545_v40 }
 0x5df   : > { %15548 = vmatpush1.bf16.msra.mxu0 %v15547_v47 }
 0x5e0   : > { %15550 = vmatprep.subr.bf16.mxu0 %v15549_v27 }
 0x5e3   : > { %15552 = vmatpush1.bf16.msra.mxu0 %v15551_v52 }
 0x5e4   : > { %15554 = vmatprep.subr.bf16.mxu0 %v15553_v53 }
 0x5e7   : > { %15556 = vmatpush1.bf16.msra.mxu0 %v15555_v58 }
 0x5e8   : > { %15558 = vmatprep.subr.bf16.mxu0 %v15557_v59 }
 0x5eb   : > { %15560 = vmatpush1.bf16.msra.mxu0 %v15559_v63 }
 0x5ee   : > { %12623 = vmatmul.mubr.f32.vlgmr.msra.gmra.mrb[4].mxu0 %v18768_v44 }
 0x681   : > { %v12211_v0 = vpop.f32.mrb[0].mxu0  ;;  %v12411_v2 = vpop.f32.mrb[0].mxu1 }
 0x682   : > { %12216 = vst.msk [vmem:[%s17402_s17] sm:$0x3] %vm12215_vm1, %v12211_v0  ;;  %v15408_v1 = vpop.f32.mrb[1].mxu0  ;;  %v12413_v60 = vpop.f32.mrb[1].mxu1 }
 0x683   : > { %v12637_v3 = vcombine.low %v12411_v2, %v12413_v60 }
 0x685   : > { %v12645_v10 = vrot.slane %v12637_v3, %v12644_v7 }
 0x6a1   : > { %v12482_v8 = vpop.f32.mrb[2].mxu0 }
 0x6a2   : > { %v12484_v9 = vpop.f32.mrb[3].mxu0 }
 0x6a3   : > { %v12638_v11 = vcombine.low %v12482_v8, %v12484_v9  ;;  %v12553_v42 = vpop.f32.mrb[2].mxu1 }
 0x6a4   : > { %v12555_v13 = vpop.f32.mrb[3].mxu1 }
 0x6a5   : > { %v12652_v12 = vrot.slane %v12638_v11, %v12644_v7  ;;  %v12654_v14 = vcombine.low %v12553_v42, %v12555_v13 }
 0x6a7   : > { %v12653_v44 = vcombine.low %v12645_v10, %v12652_v12  ;;  %v12662_v17 = vrot.slane %v12654_v14, %v12644_v7 }
 0x6a9   : > { %12673 = vst [vmem:[%s17404_s6] sm:$0xff] %v12653_v44 }
 0x6c1   : > { %v12624_v15 = vpop.f32.mrb[4].mxu0 }
 0x6c2   : > { %v12626_v16 = vpop.f32.mrb[5].mxu0 }
 0x6c3   : > { %v12655_v18 = vcombine.low %v12624_v15, %v12626_v16 }
 0x6c5   : > { %v12669_v19 = vrot.slane %v12655_v18, %v12644_v7 }
 0x6c7   : > { %v12670_v20 = vcombine.low %v12662_v17, %v12669_v19 }
 0x6c9   : > { %12674 = vst [vmem:[%s17404_s6 + $0x8] sm:$0xff] %v12670_v20 }
 0x6ca PF: > { %s13940_s14 = sshll.u32 %s17011_s28, 5  ;;  %s19019_s12 = sld [smem:[#allocation30_spill]] }
 0x6cb   : > { %s12694_s9 = sshll.u32 %s17402_s17, 4  ;;  %s12676_s5 = scalar_lea.sflag [#allocation5], %s17379_s11  ;;  %s12695_s9 = int_to_ptr.vmem [resolvable:$true] %s12694_s9 }
 0x6cc   : > { %s16857_s23 = scalar_lea.vmem %s12695_s9, 32  ;;  %p19020_p0 = scmp.ne.s32.totalorder %s19002_s15, 0 }
 0x6cd   : > { %p16858_p6 = scmp.ne.s32.totalorder %s12695_s9, %s16857_s23  ;;  %s17039_s26 = smov [#allocation11]  }
 0x6ce   : > { %s16861_s8 = sshll.u32 %s17039_s26, 4  ;;  %s16862_s8 = int_to_ptr.vmem [resolvable:$false] %s16861_s8 }
 0x6cf   : > { %p16859_p9 = pnand %p16858_p6, %p19020_p0  ;;  %s16863_s13 = scalar_lea.vmem %s16862_s8, 64 }
 0x6d0   : > { %s18878_s19 = scalar_lea.hbm %s19019_s12, %s13940_s14  ;;  %p16864_p12 = scmp.lt.s32.totalorder %s12695_s9, %s16862_s8 }
 0x6d1   : > { %p16860_p4 = pneg %p16859_p9  ;;  %p16865_p1 = scmp.lt.s32.totalorder %s16863_s13, %s16857_s23 }
 0x6d3   : > { %p16866_p7 = por %p16865_p1, %p16864_p12 }
 0x6d5   : > { %p16867_p13 = pnand %p16866_p7, %p16860_p4 }
 0x6d7   : > { %16870 = shalt.err (!%p16867_p13)
}
 0x6d8   : > { %s16871_s20 = scalar_lea.hbm %s18878_s19, 32  ;;  %s16875_s1 = scalar_lea.hbm %s19019_s12, 64 }
 0x6d9   : > { %p16872_p3 = scmp.ne.s32.totalorder %s18878_s19, %s16871_s20  ;;  %p16876_p8 = scmp.lt.u32.totalorder %s18878_s19, %s19019_s12 }
 0x6da   : > { %p16877_p5 = scmp.lt.u32.totalorder %s16875_s1, %s16871_s20  ;;  %p16879_p6 = scmp.lt.u32.totalorder %s16871_s20, %s18878_s19 }
 0x6db   : > { %p16873_p2 = pnand %p16872_p3, %p19020_p0 }
 0x6dc   : > { %p16878_p10 = por %p16877_p5, %p16876_p8 }
 0x6dd   : > { %p16874_p11 = pneg %p16873_p2 }
 0x6de   : > { %p16880_p9 = por %p16879_p6, %p16878_p10 }
 0x6e0   : > { %p16881_p4 = pnand %p16880_p9, %p16874_p11 }
 0x6e2   : > { %16884 = shalt.err (!%p16881_p4)
}
 0x6e3   : > { %15571 = dma.vmem_to_hbm [thread:$0]  (%p19020_p0), %s12695_s9, 32, %s18878_s19, %s12676_s5  }
 0x6e4   : > { %s13948_s18 = sshll.u32 %s17011_s28, 8  ;;  %s12708_s14 = sshll.u32 %s17404_s6, 4  ;;  %s12709_s14 = int_to_ptr.vmem [resolvable:$true] %s12708_s14 }
 0x6e5   : > { %s19021_s23 = sld [smem:[#allocation31_spill]]  ;;  %s12681_s13 = scalar_lea.sflag [#allocation13], %s17379_s11 }
 0x6e6   : > { %s16885_s20 = scalar_lea.vmem %s12709_s14, 256  ;;  %s17040_s17 = smov [#allocation12]  }
 0x6e7   : > { %p16886_p12 = scmp.ne.s32.totalorder %s12709_s14, %s16885_s20  ;;  %s16889_s24 = sshll.u32 %s17040_s17, 4  ;;  %s16890_s24 = int_to_ptr.vmem [resolvable:$false] %s16889_s24 }
 0x6e8   : > { %s16891_s1 = scalar_lea.vmem %s16890_s24, 512  ;;  %p16892_p13 = scmp.lt.s32.totalorder %s12709_s14, %s16890_s24 }
 0x6e9   : > { %p16887_p1 = pnand %p16886_p12, %p19020_p0  ;;  %p16893_p3 = scmp.lt.s32.totalorder %s16891_s1, %s16885_s20 }
 0x6eb   : > { %s19022_s8 = smov %s19021_s23  ;;  %s18904_s26 = scalar_lea.hbm %s19021_s23, %s13948_s18 }
 0x6ec   : > { %p16888_p7 = pneg %p16887_p1  ;;  %p16894_p2 = por %p16893_p3, %p16892_p13 }
 0x6ee   : > { %p16895_p11 = pnand %p16894_p2, %p16888_p7 }
 0x6f0   : > { %16898 = shalt.err (!%p16895_p11)
}
 0x6f1   : > { %s16899_s28 = scalar_lea.hbm %s18904_s26, 256  ;;  %s16903_s19 = scalar_lea.hbm %s19022_s8, 512 }
 0x6f2   : > { %p16900_p8 = scmp.ne.s32.totalorder %s18904_s26, %s16899_s28  ;;  %p16904_p6 = scmp.lt.u32.totalorder %s18904_s26, %s19022_s8 }
 0x6f3   : > { %p16905_p9 = scmp.lt.u32.totalorder %s16903_s19, %s16899_s28  ;;  %p16907_p12 = scmp.lt.u32.totalorder %s16899_s28, %s18904_s26 }
 0x6f4   : > { %p16901_p5 = pnand %p16900_p8, %p19020_p0 }
 0x6f5   : > { %p16906_p4 = por %p16905_p9, %p16904_p6 }
 0x6f6   : > { %p16902_p10 = pneg %p16901_p5 }
 0x6f7   : > { %p16908_p1 = por %p16907_p12, %p16906_p4 }
 0x6f9   : > { %p16909_p7 = pnand %p16908_p1, %p16902_p10 }
 0x6fb   : > { %16912 = shalt.err (!%p16909_p7)
}
 0x6fc   : > { %15572 = dma.vmem_to_hbm [thread:$0]  (%p19020_p0), %s12709_s14, 256, %s18904_s26, %s12681_s13  }
 0x6fd PF: > { %s19023_s29 = sld [smem:[#allocation28_spill]]  ;;  %p15599_p13 = scmp.ge.s32.totalorder %s17023_s7, 2 }
 0x6fe   : > { %s12720_s10 = sand.u32 1, %s16983_s21  }
 0x6ff   : > { %s12721_s18 = scalar_lea.sflag [#allocation5], %s12720_s10 }
 0x703   : > { %p19024_p3 = scmp.ne.s32.totalorder %s19023_s29, 0 }
 0x705   : > { %p15590_p2 = pnand %p15599_p13, %p19024_p3 }
 0x707   : > { %16974 = dma.done.wait (!%p15590_p2), %s12721_s18, 32  }
 0x708   : > { %16976 = vsyncadd (!%p15590_p2), %s12721_s18, 4294967264  ;;  %s12730_s27 = scalar_lea.sflag [#allocation13], %s12720_s10 }
 0x709   : > { %16978 = dma.done.wait (!%p15590_p2), %s12730_s27, 256  }
 0x70a   : > { %16980 = vsyncadd (!%p15590_p2), %s12730_s27, 4294967040  ;;  %s30_s7 = sadd.s32 1, %s17023_s7   ;;  %s19025_s15 = sld [smem:[#allocation20_spill]] }
 0x70b   : > { %p27_p11 = scmp.ge.s32.totalorder %s30_s7, 10   ;;  %s19026_s23 = sld [smem:[#allocation27_spill]] }
 0x70c   : > { %s19027_s14 = sld [smem:[#allocation21_spill]]  ;;  %s19028_s26 = sld [smem:[#allocation26_spill]] }
 0x70d   : > { %s19029_s27 = sld [smem:[#allocation23_spill]]  ;;  %s19030_s29 = sld [smem:[#allocation24_spill]] }
 0x70e   : > { %s19031_s16 = sld [smem:[#allocation25_spill]]  ;;  %s19032_s21 = smov %s16987_s22 }
 0x70f   : > { %s19034_s24 = smov %s16999_s25  ;;  %s19036_s28 = smov %s17019_s30 }
 0x710   : > { %s19033_s22 = smov %s19025_s15  ;;  %29 = sbr.rel (!%p27_p11) target bundleno = 18 (0x12), region = 143 }
 0x712   : > { %s19035_s25 = smov %s19027_s14 }
 0x714   : > { %s19037_s30 = smov %s19031_s16 }
 0x717   :  { %12735 = vsyncpa [#allocation4], 1 }
 0x718   :  { %12737 = vsyncpa [#allocation4 + $0x1], 1 }
 0x719   :  { %12738 = vsyncpa [#allocation7], 1 }
 0x71a   :  { %12740 = vsyncpa [#allocation7 + $0x1], 1 }
 0x71b   :  { %12741 = vsyncpa [#allocation10], 1 }
 0x71c   :  { %12743 = vsyncpa [#allocation10 + $0x1], 1 }
 0x71d   :  { %12744 = vsyncpa [#allocation5], 1 }
 0x71e   :  { %12746 = vsyncpa [#allocation5 + $0x1], 1 }
 0x71f   :  { %12747 = vsyncpa [#allocation13], 1 }
 0x720   :  { %12749 = vsyncpa [#allocation13 + $0x1], 1 }

</bundles_post_ra>
